<compile_context>
chip_gen: v5e
topology: v5e:2x2
jax: 0.10.0
libtpu: 0.0.40
codegen_flags: <defaults>
</compile_context>

<pallas_src>
import math

import jax
import jax.numpy as jnp
import numpy as np
from jax import lax
from jax.experimental import pallas as pl
from jax.experimental.pallas import tpu as pltpu


def _round_up(n, m):
    return ((n + m - 1) // m) * m


def _buf_bytes(rows, cols, dtype_bytes=4):
    """Approximate VMEM footprint of a (rows, cols) f32 buffer after (8,128) tiling."""
    return dtype_bytes * _round_up(rows, 8) * _round_up(cols, 128)


def _vmem_capacity_bytes():
    try:
        return int(pltpu.get_tpu_info().vmem_capacity_bytes)
    except Exception:
        return 128 * 1024 * 1024


# ----------------------------------------------------------------------------
# Pallas kernel: modulated deformable sampling + fused weight contraction
# ----------------------------------------------------------------------------
def _make_dcn_sample_kernel(Cg, A_pad, Wc, Oc, dg, K, Cgp, Pt, mxu_bf16):
    dgK = dg * K
    cdt = jnp.bfloat16 if mxu_bf16 else jnp.float32

    def kernel(x_ref, pc_ref, pr_ref, m_ref, w_ref, b_ref, out_ref,
               wxa_ref, col_ref):
        # x_ref  : (C*A_pad, Wc)  per-batch image; rows = channel*A_pad + reduce-axis,
        #                         lanes = contraction axis (the larger spatial dim)
        # pc_ref : (dgK, Pt)      sampling coordinate along the contraction axis
        # pr_ref : (dgK, Pt)      sampling coordinate along the reduce axis
        # m_ref  : (dgK, Pt)      modulation mask
        # w_ref  : (Oc, dgK*Cgp)  fused, channel-padded conv weight
        # b_ref  : (Oc, 1)
        # out_ref: (Oc, Pt)
        # wxa_ref: (Wc, K*Pt)     scratch: stacked masked contraction-axis tents
        # col_ref: (dgK*Cgp, Pt)  scratch: sampled columns

        # Hoisted, loop-invariant source-grid coordinates.
        qc = lax.broadcasted_iota(jnp.int32, (Wc, 1), 0).astype(jnp.float32)
        qr = lax.broadcasted_iota(jnp.int32, (A_pad, 1), 0).astype(jnp.float32)
        zpad = (jnp.zeros((Cgp - Cg, Pt), jnp.float32) if Cgp > Cg else None)

        # dg*K is small (e.g. 9-36); static unroll keeps slicing static.
        for g in range(dg):
            # ---- stack the K masked tents into one wide MXU RHS -------------
            for k in range(K):
                n = g * K + k
                pc = pc_ref[pl.ds(n, 1), :]                     # (1, Pt)
                mk = m_ref[pl.ds(n, 1), :]                      # (1, Pt)
                # Zero-padded bilinear "tent" along the contraction axis, with
                # the modulation mask folded in (no post-matmul mask multiply).
                wxa_ref[:, k * Pt:(k + 1) * Pt] = (
                    jnp.maximum(0.0, 1.0 - jnp.abs(pc - qc)) * mk)

            # ---- one wide matmul per group: (Cg*A_pad, Wc) @ (Wc, K*Pt) -----
            xg = x_ref[pl.ds(g * Cg * A_pad, Cg * A_pad), :]
            t_all = jnp.dot(xg.astype(cdt), wxa_ref[...].astype(cdt),
                            preferred_element_type=jnp.float32)  # (Cg*A_pad, K*Pt)

            # ---- reduce-axis tent + sublane reduction per tap (VPU/XLU) -----
            for k in range(K):
                n = g * K + k
                pr = pr_ref[pl.ds(n, 1), :]                     # (1, Pt)
                wy = jnp.maximum(0.0, 1.0 - jnp.abs(pr - qr))   # (A_pad, Pt)
                t = t_all[:, k * Pt:(k + 1) * Pt].reshape(Cg, A_pad, Pt)
                col = jnp.sum(t * wy[None, :, :], axis=1)       # (Cg, Pt)
                if zpad is not None:
                    col = jnp.concatenate([col, zpad], axis=0)  # (Cgp, Pt)
                # 8-sublane aligned, unmasked store.
                col_ref[pl.ds(n * Cgp, Cgp), :] = col

        # ---- single fused contraction over (group, tap, channel) ------------
        out_ref[...] = (
            jnp.dot(w_ref[...].astype(cdt), col_ref[...].astype(cdt),
                    preferred_element_type=jnp.float32)
            + b_ref[...])

    return kernel


# ----------------------------------------------------------------------------
# conv_offset_mask branch (plain conv) — shared by wrapper and reference
# ----------------------------------------------------------------------------
def _conv_offset_mask(x, w_off, b_off, stride, padding):
    sh, sw = stride
    ph, pw = padding
    om = lax.conv_general_dilated(
        x.astype(jnp.float32), w_off.astype(jnp.float32), (sh, sw),
        ((ph, ph), (pw, pw)),
        dimension_numbers=("NCHW", "OIHW", "NCHW"),
        precision=lax.Precision.HIGHEST)
    om = om + b_off.reshape(1, -1, 1, 1).astype(jnp.float32)
    o1, o2, mpre = jnp.split(om, 3, axis=1)
    offset = jnp.concatenate([o1, o2], axis=1)        # (B, 2*dgK, Ho, Wo)
    mask = jax.nn.sigmoid(mpre)                       # (B, dgK, Ho, Wo)
    return offset, mask


# ----------------------------------------------------------------------------
# Wrapper
# ----------------------------------------------------------------------------
def dcn_forward(x, w_off, b_off, weight, bias, *, stride, padding, dilation,
                deformable_groups, mxu_bf16=False):
    B, C, H, W = x.shape
    Oc, _, kh, kw = weight.shape
    sh, sw = stride
    ph, pw = padding
    dh, dw = dilation
    dg = deformable_groups
    Cg = C // dg
    K = kh * kw
    dgK = dg * K
    Ho = (H + 2 * ph - (dh * (kh - 1) + 1)) // sh + 1
    Wo = (W + 2 * pw - (dw * (kw - 1) + 1)) // sw + 1
    P = Ho * Wo

    x = x.astype(jnp.float32)

    # ---- offset / mask branch (standard conv) in XLA -------------------------
    offset, mask = _conv_offset_mask(x, w_off, b_off, stride, padding)
    dy = offset[:, 0::2]                               # (B, dgK, Ho, Wo)
    dx = offset[:, 1::2]                               # (B, dgK, Ho, Wo)

    # Absolute sampling coordinates (base grid + learned offsets).
    ky = jnp.tile(((jnp.arange(K) // kw) * dh).astype(jnp.float32), dg)   # (dgK,)
    kx = jnp.tile(((jnp.arange(K) % kw) * dw).astype(jnp.float32), dg)    # (dgK,)
    base_y = jnp.arange(Ho, dtype=jnp.float32) * sh - ph
    base_x = jnp.arange(Wo, dtype=jnp.float32) * sw - pw
    py = dy + ky[None, :, None, None] + base_y[None, None, :, None]
    px = dx + kx[None, :, None, None] + base_x[None, None, None, :]

    # ---- contraction axis = larger spatial dim (MXU depth / lane density) ----
    if W >= H:
        Wc, A = W, H
        pc4, pr4 = px, py
        ximg = x                                       # rows = y, lanes = x
    else:
        Wc, A = H, W
        pc4, pr4 = py, px
        ximg = jnp.swapaxes(x, 2, 3)                   # rows = x, lanes = y
    A_pad = _round_up(A, 8)                            # sublane-aligned reduce axis
    if A_pad > A:
        ximg = jnp.pad(ximg, ((0, 0), (0, 0), (0, A_pad - A), (0, 0)))
    x2 = ximg.reshape(B, C * A_pad, Wc)

    Cgp = _round_up(Cg, 8)                             # aligned per-tap col blocks

    # ---- generation-aware tile size & VMEM budget -----------------------------
    vmem_cap = _vmem_capacity_bytes()
    pt_target = 1024 if vmem_cap >= (96 << 20) else 512

    def _vmem_need(pt):
        return (2 * _buf_bytes(C * A_pad, Wc)          # image (double-buffered)
                + 2 * 3 * _buf_bytes(dgK, pt)          # pc / pr / mask tiles
                + 2 * _buf_bytes(Oc, pt)               # output tile
                + 2 * _buf_bytes(Oc, dgK * Cgp)        # fused weight
                + 2 * _buf_bytes(Oc, 1)                # bias
                + _buf_bytes(Wc, K * pt)               # stacked-tent scratch
                + _buf_bytes(Cg * A_pad, K * pt)       # matmul result
                + _buf_bytes(dgK * Cgp, pt))           # col scratch

    Pt = min(pt_target, _round_up(P, 128))
    while Pt > 128 and _vmem_need(Pt) > vmem_cap // 2:
        Pt = _round_up(Pt // 2, 128)
    P_pad = _round_up(P, Pt)
    pad = P_pad - P
    nT = P_pad // Pt
    vmem_limit = int(min(max(2 * _vmem_need(Pt), 32 << 20), (vmem_cap * 3) // 4))

    def _flat_pad(a, fill):
        a = a.reshape(B, dgK, P)
        if pad:
            a = jnp.pad(a, ((0, 0), (0, 0), (0, pad)), constant_values=fill)
        return a

    pc_f = _flat_pad(pc4, -10.0)       # OOB coords -> zero tent weight
    pr_f = _flat_pad(pr4, -10.0)
    m_f = _flat_pad(mask, 0.0)

    # Fused weight, zero-padded to Cgp channels per tap:
    # w2[oc, (g*K+k)*Cgp + c] = weight[oc, g*Cg + c, i, j], k = i*kw + j
    w4 = (weight.astype(jnp.float32)
          .reshape(Oc, dg, Cg, K).transpose(0, 1, 3, 2))          # (Oc, dg, K, Cg)
    if Cgp > Cg:
        w4 = jnp.pad(w4, ((0, 0), (0, 0), (0, 0), (0, Cgp - Cg)))
    w2 = w4.reshape(Oc, dgK * Cgp)
    b2 = bias.reshape(Oc, 1).astype(jnp.float32)

    kernel = _make_dcn_sample_kernel(Cg, A_pad, Wc, Oc, dg, K, Cgp, Pt, mxu_bf16)

    flops = int(2 * B * nT * (dg * (Cg * A_pad) * Wc * (K * Pt)
                              + Oc * dgK * Cgp * Pt))
    bytes_accessed = int(4 * (B * C * A_pad * Wc + 3 * B * dgK * P_pad
                              + B * Oc * P_pad + Oc * dgK * Cgp))

    # v7x (2 TCs): shard the batch axis when B >= 2 so each core keeps its own
    # resident image; shard the tile axis for B == 1. No-op on 1-TC chips.
    dim_sem = ("parallel", "arbitrary") if B >= 2 else ("arbitrary", "parallel")

    # TODO(synk): on <=64 MiB VMEM parts (v7x) add pipeline_mode=pl.Buffered(1)
    # to the image / fused-weight / bias specs to drop their second buffer.
    out = pl.pallas_call(
        kernel,
        out_shape=jax.ShapeDtypeStruct((B, Oc, P_pad), jnp.float32),
        grid=(B, nT),
        in_specs=[
            pl.BlockSpec((None, C * A_pad, Wc), lambda b, t: (b, 0, 0)),  # image
            pl.BlockSpec((None, dgK, Pt), lambda b, t: (b, 0, t)),        # pc
            pl.BlockSpec((None, dgK, Pt), lambda b, t: (b, 0, t)),        # pr
            pl.BlockSpec((None, dgK, Pt), lambda b, t: (b, 0, t)),        # mask
            pl.BlockSpec((Oc, dgK * Cgp), lambda b, t: (0, 0)),           # weight
            pl.BlockSpec((Oc, 1), lambda b, t: (0, 0)),                   # bias
        ],
        out_specs=pl.BlockSpec((None, Oc, Pt), lambda b, t: (b, 0, t)),
        scratch_shapes=[pltpu.VMEM((Wc, K * Pt), jnp.float32),
                        pltpu.VMEM((dgK * Cgp, Pt), jnp.float32)],
        compiler_params=pltpu.CompilerParams(
            dimension_semantics=dim_sem,
            vmem_limit_bytes=vmem_limit),
        cost_estimate=pl.CostEstimate(flops=flops, transcendentals=0,
                                      bytes_accessed=bytes_accessed),
    )(x2, pc_f, pr_f, m_f, w2, b2)

    return out[:, :, :P].reshape(B, Oc, Ho, Wo)


# ----------------------------------------------------------------------------
# Pure-JAX reference (gather-based bilinear) for correctness checking
# ----------------------------------------------------------------------------
def _bilinear(img, py, px):
    Cc, H, W = img.shape
    h0 = jnp.floor(py)
    w0 = jnp.floor(px)
    acc = jnp.zeros((Cc,) + py.shape, jnp.float32)
    for a in (0, 1):
        for b in (0, 1):
            hh = h0 + a
            ww = w0 + b
            wt = (jnp.maximum(0.0, 1.0 - jnp.abs(py - hh)) *
                  jnp.maximum(0.0, 1.0 - jnp.abs(px - ww)))
            valid = ((hh >= 0) & (hh < H) & (ww >= 0) & (ww < W)).astype(jnp.float32)
            hi = jnp.clip(hh, 0, H - 1).astype(jnp.int32)
            wi = jnp.clip(ww, 0, W - 1).astype(jnp.int32)
            acc = acc + img[:, hi, wi] * (wt * valid)[None]
    return acc


def dcn_reference(x, w_off, b_off, weight, bias, stride, padding, dilation, dg):
    B, C, H, W = x.shape
    Oc, _, kh, kw = weight.shape
    sh, sw = stride
    ph, pw = padding
    dh, dw = dilation
    Ho = (H + 2 * ph - (dh * (kh - 1) + 1)) // sh + 1
    Wo = (W + 2 * pw - (dw * (kw - 1) + 1)) // sw + 1
    K = kh * kw
    Cg = C // dg

    offset, mask = _conv_offset_mask(x, w_off, b_off, stride, padding)

    ho = jnp.arange(Ho, dtype=jnp.float32).reshape(Ho, 1)
    wo = jnp.arange(Wo, dtype=jnp.float32).reshape(1, Wo)
    out = jnp.zeros((B, Oc, Ho, Wo), jnp.float32) + bias.reshape(1, Oc, 1, 1)
    for bi in range(B):
        for g in range(dg):
            img = x[bi, g * Cg:(g + 1) * Cg]
            for i in range(kh):
                for j in range(kw):
                    k = i * kw + j
                    dy = offset[bi, 2 * (g * K + k)]
                    dx = offset[bi, 2 * (g * K + k) + 1]
                    m = mask[bi, g * K + k]
                    py = ho * sh - ph + i * dh + dy
                    px = wo * sw - pw + j * dw + dx
                    val = _bilinear(img, py, px) * m[None]
                    wk = weight[:, g * Cg:(g + 1) * Cg, i, j]
                    out = out.at[bi].add(
                        jnp.einsum("oc,chw->ohw", wk, val,
                                   precision=lax.Precision.HIGHEST))
    return out


# ----------------------------------------------------------------------------
if __name__ == "__main__":
    key = jax.random.PRNGKey(0)
    B, C, H, W = 2, 4, 16, 16
    Oc = 8
    kh = kw = 3
    stride, padding, dilation = (1, 1), (1, 1), (1, 1)
    dg = 1
    ch_off = dg * 3 * kh * kw

    k1, k2, k3, k4 = jax.random.split(key, 4)
    x = jax.random.normal(k1, (B, C, H, W), jnp.float32)

    # DCNv2.reset_parameters(): weight ~ U(-stdv, stdv), bias = 0
    stdv = 1.0 / math.sqrt(C * kh * kw)
    weight = jax.random.uniform(k2, (Oc, C, kh, kw), jnp.float32, -stdv, stdv)
    bias = jnp.zeros((Oc,), jnp.float32)

    # DCN.init_offset() zero-inits conv_offset_mask (which would degenerate the
    # deformable path); use small deterministic random values instead so the
    # bilinear-sampling hot path is actually exercised.
    w_off = 0.1 * jax.random.normal(k3, (ch_off, C, kh, kw), jnp.float32)
    b_off = 0.05 * jax.random.normal(k4, (ch_off,), jnp.float32)

    out = dcn_forward(x, w_off, b_off, weight, bias,
                      stride=stride, padding=padding, dilation=dilation,
                      deformable_groups=dg)
    out = jax.block_until_ready(out)

    ref = dcn_reference(x, w_off, b_off, weight, bias,
                        stride, padding, dilation, dg)
    np.testing.assert_allclose(np.asarray(out), np.asarray(ref),
                               rtol=2e-3, atol=2e-3)
    print("KERNEL_OK")
</pallas_src>

<mosaic_0001>
module attributes {stable_mosaic.version = 11 : i64} {
  func.func @kernel(%arg0: i32, %arg1: i32, %arg2: memref<1x64x16xf32, #tpu.memory_space<vmem>>, %arg3: memref<1x9x256xf32, #tpu.memory_space<vmem>>, %arg4: memref<1x9x256xf32, #tpu.memory_space<vmem>>, %arg5: memref<1x9x256xf32, #tpu.memory_space<vmem>>, %arg6: memref<8x72xf32, #tpu.memory_space<vmem>>, %arg7: memref<8x1xf32, #tpu.memory_space<vmem>>, %arg8: memref<1x8x256xf32, #tpu.memory_space<vmem>>, %arg9: memref<16x2304xf32, #tpu.memory_space<vmem>>, %arg10: memref<72x256xf32, #tpu.memory_space<vmem>>) attributes {dimension_semantics = [#tpu.dimension_semantics<parallel>, #tpu.dimension_semantics<arbitrary>], iteration_bounds = array<i64: 2, 1>, scalar_prefetch = 0 : i64, scratch_operands = 2 : i64, tpu.core_type = #tpu.core_type<tc>, window_params = [{transform_indices = @transform_0, window_bounds = array<i64: 1, 64, 16>}, {transform_indices = @transform_1, window_bounds = array<i64: 1, 9, 256>}, {transform_indices = @transform_2, window_bounds = array<i64: 1, 9, 256>}, {transform_indices = @transform_3, window_bounds = array<i64: 1, 9, 256>}, {pipeline_mode = #tpu.pipeline_mode<synchronous>, transform_indices = @transform_4, window_bounds = array<i64: 8, 72>}, {pipeline_mode = #tpu.pipeline_mode<synchronous>, transform_indices = @transform_5, window_bounds = array<i64: 8, 1>}, {transform_indices = @transform_6, window_bounds = array<i64: 1, 8, 256>}]} {
    %0 = tpu.iota {dimensions = array<i32: 0>} : vector<16x1xi32>
    %1 = arith.sitofp %0 : vector<16x1xi32> to vector<16x1xf32>
    %2 = tpu.iota {dimensions = array<i32: 0>} : vector<16x1xi32>
    %3 = arith.sitofp %2 : vector<16x1xi32> to vector<16x1xf32>
    %cst = arith.constant 0.000000e+00 : f32
    %4 = vector.broadcast %cst : f32 to vector<4x256xf32>
    %c0 = arith.constant 0 : index
    %c0_0 = arith.constant 0 : index
    %c0_1 = arith.constant 0 : index
    %5 = vector.load %arg3[%c0, %c0_0, %c0_1] : memref<1x9x256xf32, #tpu.memory_space<vmem>>, vector<1x1x256xf32>
    %6 = vector.shape_cast %5 : vector<1x1x256xf32> to vector<1x256xf32>
    %c0_2 = arith.constant 0 : index
    %c0_3 = arith.constant 0 : index
    %c0_4 = arith.constant 0 : index
    %7 = vector.load %arg5[%c0_2, %c0_3, %c0_4] : memref<1x9x256xf32, #tpu.memory_space<vmem>>, vector<1x1x256xf32>
    %8 = vector.shape_cast %7 : vector<1x1x256xf32> to vector<1x256xf32>
    %9 = vector.broadcast %6 : vector<1x256xf32> to vector<16x256xf32>
    %10 = vector.broadcast %1 : vector<16x1xf32> to vector<16x256xf32>
    %11 = arith.subf %9, %10 : vector<16x256xf32>
    %12 = math.absf %11 : vector<16x256xf32>
    %cst_5 = arith.constant 1.000000e+00 : f32
    %13 = vector.broadcast %cst_5 : f32 to vector<16x256xf32>
    %14 = arith.subf %13, %12 : vector<16x256xf32>
    %cst_6 = arith.constant 0.000000e+00 : f32
    %15 = vector.broadcast %cst_6 : f32 to vector<16x256xf32>
    %16 = arith.maximumf %15, %14 : vector<16x256xf32>
    %17 = vector.broadcast %8 : vector<1x256xf32> to vector<16x256xf32>
    %18 = arith.mulf %16, %17 : vector<16x256xf32>
    %c0_7 = arith.constant 0 : index
    %c0_8 = arith.constant 0 : index
    %19 = vector.load %arg9[%c0_7, %c0_8] : memref<16x2304xf32, #tpu.memory_space<vmem>>, vector<16x256xf32>
    tpu.vector_store %arg9[%c0_7, %c0_8], %18 {strides = array<i32>} : memref<16x2304xf32, #tpu.memory_space<vmem>>, vector<16x256xf32>,
    %c0_9 = arith.constant 0 : index
    %c1 = arith.constant 1 : index
    %c0_10 = arith.constant 0 : index
    %20 = vector.load %arg3[%c0_9, %c1, %c0_10] : memref<1x9x256xf32, #tpu.memory_space<vmem>>, vector<1x1x256xf32>
    %21 = vector.shape_cast %20 : vector<1x1x256xf32> to vector<1x256xf32>
    %c0_11 = arith.constant 0 : index
    %c1_12 = arith.constant 1 : index
    %c0_13 = arith.constant 0 : index
    %22 = vector.load %arg5[%c0_11, %c1_12, %c0_13] : memref<1x9x256xf32, #tpu.memory_space<vmem>>, vector<1x1x256xf32>
    %23 = vector.shape_cast %22 : vector<1x1x256xf32> to vector<1x256xf32>
    %24 = vector.broadcast %21 : vector<1x256xf32> to vector<16x256xf32>
    %25 = vector.broadcast %1 : vector<16x1xf32> to vector<16x256xf32>
    %26 = arith.subf %24, %25 : vector<16x256xf32>
    %27 = math.absf %26 : vector<16x256xf32>
    %cst_14 = arith.constant 1.000000e+00 : f32
    %28 = vector.broadcast %cst_14 : f32 to vector<16x256xf32>
    %29 = arith.subf %28, %27 : vector<16x256xf32>
    %cst_15 = arith.constant 0.000000e+00 : f32
    %30 = vector.broadcast %cst_15 : f32 to vector<16x256xf32>
    %31 = arith.maximumf %30, %29 : vector<16x256xf32>
    %32 = vector.broadcast %23 : vector<1x256xf32> to vector<16x256xf32>
    %33 = arith.mulf %31, %32 : vector<16x256xf32>
    %c0_16 = arith.constant 0 : index
    %c256 = arith.constant 256 : index
    %34 = vector.load %arg9[%c0_16, %c256] : memref<16x2304xf32, #tpu.memory_space<vmem>>, vector<16x256xf32>
    tpu.vector_store %arg9[%c0_16, %c256], %33 {strides = array<i32>} : memref<16x2304xf32, #tpu.memory_space<vmem>>, vector<16x256xf32>,
    %c0_17 = arith.constant 0 : index
    %c2 = arith.constant 2 : index
    %c0_18 = arith.constant 0 : index
    %35 = vector.load %arg3[%c0_17, %c2, %c0_18] : memref<1x9x256xf32, #tpu.memory_space<vmem>>, vector<1x1x256xf32>
    %36 = vector.shape_cast %35 : vector<1x1x256xf32> to vector<1x256xf32>
    %c0_19 = arith.constant 0 : index
    %c2_20 = arith.constant 2 : index
    %c0_21 = arith.constant 0 : index
    %37 = vector.load %arg5[%c0_19, %c2_20, %c0_21] : memref<1x9x256xf32, #tpu.memory_space<vmem>>, vector<1x1x256xf32>
    %38 = vector.shape_cast %37 : vector<1x1x256xf32> to vector<1x256xf32>
    %39 = vector.broadcast %36 : vector<1x256xf32> to vector<16x256xf32>
    %40 = vector.broadcast %1 : vector<16x1xf32> to vector<16x256xf32>
    %41 = arith.subf %39, %40 : vector<16x256xf32>
    %42 = math.absf %41 : vector<16x256xf32>
    %cst_22 = arith.constant 1.000000e+00 : f32
    %43 = vector.broadcast %cst_22 : f32 to vector<16x256xf32>
    %44 = arith.subf %43, %42 : vector<16x256xf32>
    %cst_23 = arith.constant 0.000000e+00 : f32
    %45 = vector.broadcast %cst_23 : f32 to vector<16x256xf32>
    %46 = arith.maximumf %45, %44 : vector<16x256xf32>
    %47 = vector.broadcast %38 : vector<1x256xf32> to vector<16x256xf32>
    %48 = arith.mulf %46, %47 : vector<16x256xf32>
    %c0_24 = arith.constant 0 : index
    %c512 = arith.constant 512 : index
    %49 = vector.load %arg9[%c0_24, %c512] : memref<16x2304xf32, #tpu.memory_space<vmem>>, vector<16x256xf32>
    tpu.vector_store %arg9[%c0_24, %c512], %48 {strides = array<i32>} : memref<16x2304xf32, #tpu.memory_space<vmem>>, vector<16x256xf32>,
    %c0_25 = arith.constant 0 : index
    %c3 = arith.constant 3 : index
    %c0_26 = arith.constant 0 : index
    %50 = vector.load %arg3[%c0_25, %c3, %c0_26] : memref<1x9x256xf32, #tpu.memory_space<vmem>>, vector<1x1x256xf32>
    %51 = vector.shape_cast %50 : vector<1x1x256xf32> to vector<1x256xf32>
    %c0_27 = arith.constant 0 : index
    %c3_28 = arith.constant 3 : index
    %c0_29 = arith.constant 0 : index
    %52 = vector.load %arg5[%c0_27, %c3_28, %c0_29] : memref<1x9x256xf32, #tpu.memory_space<vmem>>, vector<1x1x256xf32>
    %53 = vector.shape_cast %52 : vector<1x1x256xf32> to vector<1x256xf32>
    %54 = vector.broadcast %51 : vector<1x256xf32> to vector<16x256xf32>
    %55 = vector.broadcast %1 : vector<16x1xf32> to vector<16x256xf32>
    %56 = arith.subf %54, %55 : vector<16x256xf32>
    %57 = math.absf %56 : vector<16x256xf32>
    %cst_30 = arith.constant 1.000000e+00 : f32
    %58 = vector.broadcast %cst_30 : f32 to vector<16x256xf32>
    %59 = arith.subf %58, %57 : vector<16x256xf32>
    %cst_31 = arith.constant 0.000000e+00 : f32
    %60 = vector.broadcast %cst_31 : f32 to vector<16x256xf32>
    %61 = arith.maximumf %60, %59 : vector<16x256xf32>
    %62 = vector.broadcast %53 : vector<1x256xf32> to vector<16x256xf32>
    %63 = arith.mulf %61, %62 : vector<16x256xf32>
    %c0_32 = arith.constant 0 : index
    %c768 = arith.constant 768 : index
    %64 = vector.load %arg9[%c0_32, %c768] : memref<16x2304xf32, #tpu.memory_space<vmem>>, vector<16x256xf32>
    tpu.vector_store %arg9[%c0_32, %c768], %63 {strides = array<i32>} : memref<16x2304xf32, #tpu.memory_space<vmem>>, vector<16x256xf32>,
    %c0_33 = arith.constant 0 : index
    %c4 = arith.constant 4 : index
    %c0_34 = arith.constant 0 : index
    %65 = vector.load %arg3[%c0_33, %c4, %c0_34] : memref<1x9x256xf32, #tpu.memory_space<vmem>>, vector<1x1x256xf32>
    %66 = vector.shape_cast %65 : vector<1x1x256xf32> to vector<1x256xf32>
    %c0_35 = arith.constant 0 : index
    %c4_36 = arith.constant 4 : index
    %c0_37 = arith.constant 0 : index
    %67 = vector.load %arg5[%c0_35, %c4_36, %c0_37] : memref<1x9x256xf32, #tpu.memory_space<vmem>>, vector<1x1x256xf32>
    %68 = vector.shape_cast %67 : vector<1x1x256xf32> to vector<1x256xf32>
    %69 = vector.broadcast %66 : vector<1x256xf32> to vector<16x256xf32>
    %70 = vector.broadcast %1 : vector<16x1xf32> to vector<16x256xf32>
    %71 = arith.subf %69, %70 : vector<16x256xf32>
    %72 = math.absf %71 : vector<16x256xf32>
    %cst_38 = arith.constant 1.000000e+00 : f32
    %73 = vector.broadcast %cst_38 : f32 to vector<16x256xf32>
    %74 = arith.subf %73, %72 : vector<16x256xf32>
    %cst_39 = arith.constant 0.000000e+00 : f32
    %75 = vector.broadcast %cst_39 : f32 to vector<16x256xf32>
    %76 = arith.maximumf %75, %74 : vector<16x256xf32>
    %77 = vector.broadcast %68 : vector<1x256xf32> to vector<16x256xf32>
    %78 = arith.mulf %76, %77 : vector<16x256xf32>
    %c0_40 = arith.constant 0 : index
    %c1024 = arith.constant 1024 : index
    %79 = vector.load %arg9[%c0_40, %c1024] : memref<16x2304xf32, #tpu.memory_space<vmem>>, vector<16x256xf32>
    tpu.vector_store %arg9[%c0_40, %c1024], %78 {strides = array<i32>} : memref<16x2304xf32, #tpu.memory_space<vmem>>, vector<16x256xf32>,
    %c0_41 = arith.constant 0 : index
    %c5 = arith.constant 5 : index
    %c0_42 = arith.constant 0 : index
    %80 = vector.load %arg3[%c0_41, %c5, %c0_42] : memref<1x9x256xf32, #tpu.memory_space<vmem>>, vector<1x1x256xf32>
    %81 = vector.shape_cast %80 : vector<1x1x256xf32> to vector<1x256xf32>
    %c0_43 = arith.constant 0 : index
    %c5_44 = arith.constant 5 : index
    %c0_45 = arith.constant 0 : index
    %82 = vector.load %arg5[%c0_43, %c5_44, %c0_45] : memref<1x9x256xf32, #tpu.memory_space<vmem>>, vector<1x1x256xf32>
    %83 = vector.shape_cast %82 : vector<1x1x256xf32> to vector<1x256xf32>
    %84 = vector.broadcast %81 : vector<1x256xf32> to vector<16x256xf32>
    %85 = vector.broadcast %1 : vector<16x1xf32> to vector<16x256xf32>
    %86 = arith.subf %84, %85 : vector<16x256xf32>
    %87 = math.absf %86 : vector<16x256xf32>
    %cst_46 = arith.constant 1.000000e+00 : f32
    %88 = vector.broadcast %cst_46 : f32 to vector<16x256xf32>
    %89 = arith.subf %88, %87 : vector<16x256xf32>
    %cst_47 = arith.constant 0.000000e+00 : f32
    %90 = vector.broadcast %cst_47 : f32 to vector<16x256xf32>
    %91 = arith.maximumf %90, %89 : vector<16x256xf32>
    %92 = vector.broadcast %83 : vector<1x256xf32> to vector<16x256xf32>
    %93 = arith.mulf %91, %92 : vector<16x256xf32>
    %c0_48 = arith.constant 0 : index
    %c1280 = arith.constant 1280 : index
    %94 = vector.load %arg9[%c0_48, %c1280] : memref<16x2304xf32, #tpu.memory_space<vmem>>, vector<16x256xf32>
    tpu.vector_store %arg9[%c0_48, %c1280], %93 {strides = array<i32>} : memref<16x2304xf32, #tpu.memory_space<vmem>>, vector<16x256xf32>,
    %c0_49 = arith.constant 0 : index
    %c6 = arith.constant 6 : index
    %c0_50 = arith.constant 0 : index
    %95 = vector.load %arg3[%c0_49, %c6, %c0_50] : memref<1x9x256xf32, #tpu.memory_space<vmem>>, vector<1x1x256xf32>
    %96 = vector.shape_cast %95 : vector<1x1x256xf32> to vector<1x256xf32>
    %c0_51 = arith.constant 0 : index
    %c6_52 = arith.constant 6 : index
    %c0_53 = arith.constant 0 : index
    %97 = vector.load %arg5[%c0_51, %c6_52, %c0_53] : memref<1x9x256xf32, #tpu.memory_space<vmem>>, vector<1x1x256xf32>
    %98 = vector.shape_cast %97 : vector<1x1x256xf32> to vector<1x256xf32>
    %99 = vector.broadcast %96 : vector<1x256xf32> to vector<16x256xf32>
    %100 = vector.broadcast %1 : vector<16x1xf32> to vector<16x256xf32>
    %101 = arith.subf %99, %100 : vector<16x256xf32>
    %102 = math.absf %101 : vector<16x256xf32>
    %cst_54 = arith.constant 1.000000e+00 : f32
    %103 = vector.broadcast %cst_54 : f32 to vector<16x256xf32>
    %104 = arith.subf %103, %102 : vector<16x256xf32>
    %cst_55 = arith.constant 0.000000e+00 : f32
    %105 = vector.broadcast %cst_55 : f32 to vector<16x256xf32>
    %106 = arith.maximumf %105, %104 : vector<16x256xf32>
    %107 = vector.broadcast %98 : vector<1x256xf32> to vector<16x256xf32>
    %108 = arith.mulf %106, %107 : vector<16x256xf32>
    %c0_56 = arith.constant 0 : index
    %c1536 = arith.constant 1536 : index
    %109 = vector.load %arg9[%c0_56, %c1536] : memref<16x2304xf32, #tpu.memory_space<vmem>>, vector<16x256xf32>
    tpu.vector_store %arg9[%c0_56, %c1536], %108 {strides = array<i32>} : memref<16x2304xf32, #tpu.memory_space<vmem>>, vector<16x256xf32>,
    %c0_57 = arith.constant 0 : index
    %c7 = arith.constant 7 : index
    %c0_58 = arith.constant 0 : index
    %110 = vector.load %arg3[%c0_57, %c7, %c0_58] : memref<1x9x256xf32, #tpu.memory_space<vmem>>, vector<1x1x256xf32>
    %111 = vector.shape_cast %110 : vector<1x1x256xf32> to vector<1x256xf32>
    %c0_59 = arith.constant 0 : index
    %c7_60 = arith.constant 7 : index
    %c0_61 = arith.constant 0 : index
    %112 = vector.load %arg5[%c0_59, %c7_60, %c0_61] : memref<1x9x256xf32, #tpu.memory_space<vmem>>, vector<1x1x256xf32>
    %113 = vector.shape_cast %112 : vector<1x1x256xf32> to vector<1x256xf32>
    %114 = vector.broadcast %111 : vector<1x256xf32> to vector<16x256xf32>
    %115 = vector.broadcast %1 : vector<16x1xf32> to vector<16x256xf32>
    %116 = arith.subf %114, %115 : vector<16x256xf32>
    %117 = math.absf %116 : vector<16x256xf32>
    %cst_62 = arith.constant 1.000000e+00 : f32
    %118 = vector.broadcast %cst_62 : f32 to vector<16x256xf32>
    %119 = arith.subf %118, %117 : vector<16x256xf32>
    %cst_63 = arith.constant 0.000000e+00 : f32
    %120 = vector.broadcast %cst_63 : f32 to vector<16x256xf32>
    %121 = arith.maximumf %120, %119 : vector<16x256xf32>
    %122 = vector.broadcast %113 : vector<1x256xf32> to vector<16x256xf32>
    %123 = arith.mulf %121, %122 : vector<16x256xf32>
    %c0_64 = arith.constant 0 : index
    %c1792 = arith.constant 1792 : index
    %124 = vector.load %arg9[%c0_64, %c1792] : memref<16x2304xf32, #tpu.memory_space<vmem>>, vector<16x256xf32>
    tpu.vector_store %arg9[%c0_64, %c1792], %123 {strides = array<i32>} : memref<16x2304xf32, #tpu.memory_space<vmem>>, vector<16x256xf32>,
    %c0_65 = arith.constant 0 : index
    %c8 = arith.constant 8 : index
    %c0_66 = arith.constant 0 : index
    %125 = vector.load %arg3[%c0_65, %c8, %c0_66] : memref<1x9x256xf32, #tpu.memory_space<vmem>>, vector<1x1x256xf32>
    %126 = vector.shape_cast %125 : vector<1x1x256xf32> to vector<1x256xf32>
    %c0_67 = arith.constant 0 : index
    %c8_68 = arith.constant 8 : index
    %c0_69 = arith.constant 0 : index
    %127 = vector.load %arg5[%c0_67, %c8_68, %c0_69] : memref<1x9x256xf32, #tpu.memory_space<vmem>>, vector<1x1x256xf32>
    %128 = vector.shape_cast %127 : vector<1x1x256xf32> to vector<1x256xf32>
    %129 = vector.broadcast %126 : vector<1x256xf32> to vector<16x256xf32>
    %130 = vector.broadcast %1 : vector<16x1xf32> to vector<16x256xf32>
    %131 = arith.subf %129, %130 : vector<16x256xf32>
    %132 = math.absf %131 : vector<16x256xf32>
    %cst_70 = arith.constant 1.000000e+00 : f32
    %133 = vector.broadcast %cst_70 : f32 to vector<16x256xf32>
    %134 = arith.subf %133, %132 : vector<16x256xf32>
    %cst_71 = arith.constant 0.000000e+00 : f32
    %135 = vector.broadcast %cst_71 : f32 to vector<16x256xf32>
    %136 = arith.maximumf %135, %134 : vector<16x256xf32>
    %137 = vector.broadcast %128 : vector<1x256xf32> to vector<16x256xf32>
    %138 = arith.mulf %136, %137 : vector<16x256xf32>
    %c0_72 = arith.constant 0 : index
    %c2048 = arith.constant 2048 : index
    %139 = vector.load %arg9[%c0_72, %c2048] : memref<16x2304xf32, #tpu.memory_space<vmem>>, vector<16x256xf32>
    tpu.vector_store %arg9[%c0_72, %c2048], %138 {strides = array<i32>} : memref<16x2304xf32, #tpu.memory_space<vmem>>, vector<16x256xf32>,
    %c0_73 = arith.constant 0 : index
    %c0_74 = arith.constant 0 : index
    %c0_75 = arith.constant 0 : index
    %140 = vector.load %arg2[%c0_73, %c0_74, %c0_75] : memref<1x64x16xf32, #tpu.memory_space<vmem>>, vector<1x64x16xf32>
    %141 = vector.shape_cast %140 : vector<1x64x16xf32> to vector<64x16xf32>
    %c0_76 = arith.constant 0 : index
    %c0_77 = arith.constant 0 : index
    %142 = vector.load %arg9[%c0_76, %c0_77] : memref<16x2304xf32, #tpu.memory_space<vmem>>, vector<16x2304xf32>
    %cst_78 = arith.constant dense<0.000000e+00> : vector<64x2304xf32>
    %143 = tpu.matmul %141, %142, %cst_78 {dimension_numbers = #tpu.dot_dimension_numbers<[1], [0], [0], [1], [0, 0, 1, 1], [], []>} : vector<64x16xf32>, vector<16x2304xf32>, vector<64x2304xf32> -> vector<64x2304xf32>
    %c0_79 = arith.constant 0 : index
    %c0_80 = arith.constant 0 : index
    %c0_81 = arith.constant 0 : index
    %144 = vector.load %arg4[%c0_79, %c0_80, %c0_81] : memref<1x9x256xf32, #tpu.memory_space<vmem>>, vector<1x1x256xf32>
    %145 = vector.shape_cast %144 : vector<1x1x256xf32> to vector<1x256xf32>
    %146 = vector.broadcast %145 : vector<1x256xf32> to vector<16x256xf32>
    %147 = vector.broadcast %3 : vector<16x1xf32> to vector<16x256xf32>
    %148 = arith.subf %146, %147 : vector<16x256xf32>
    %149 = math.absf %148 : vector<16x256xf32>
    %cst_82 = arith.constant 1.000000e+00 : f32
    %150 = vector.broadcast %cst_82 : f32 to vector<16x256xf32>
    %151 = arith.subf %150, %149 : vector<16x256xf32>
    %cst_83 = arith.constant 0.000000e+00 : f32
    %152 = vector.broadcast %cst_83 : f32 to vector<16x256xf32>
    %153 = arith.maximumf %152, %151 : vector<16x256xf32>
    %154 = vector.extract_strided_slice %143 {offsets = [0, 0], sizes = [64, 256], strides = [1, 1]} : vector<64x2304xf32> to vector<64x256xf32>
    %155 = vector.shape_cast %154 : vector<64x256xf32> to vector<4x16x256xf32>
    %156 = vector.shape_cast %153 : vector<16x256xf32> to vector<1x16x256xf32>
    %157 = vector.broadcast %156 : vector<1x16x256xf32> to vector<4x16x256xf32>
    %158 = arith.mulf %155, %157 : vector<4x16x256xf32>
    %cst_84 = arith.constant dense<0.000000e+00> : vector<4x256xf32>
    %159 = vector.multi_reduction <add>, %158, %cst_84 [1] : vector<4x16x256xf32> to vector<4x256xf32>
    %160 = tpu.concatenate %159, %4 in 0 : vector<4x256xf32>, vector<4x256xf32> -> vector<8x256xf32>
    %c0_85 = arith.constant 0 : index
    %c0_86 = arith.constant 0 : index
    %161 = vector.load %arg10[%c0_85, %c0_86] : memref<72x256xf32, #tpu.memory_space<vmem>>, vector<8x256xf32>
    tpu.vector_store %arg10[%c0_85, %c0_86], %160 {strides = array<i32>} : memref<72x256xf32, #tpu.memory_space<vmem>>, vector<8x256xf32>,
    %c0_87 = arith.constant 0 : index
    %c1_88 = arith.constant 1 : index
    %c0_89 = arith.constant 0 : index
    %162 = vector.load %arg4[%c0_87, %c1_88, %c0_89] : memref<1x9x256xf32, #tpu.memory_space<vmem>>, vector<1x1x256xf32>
    %163 = vector.shape_cast %162 : vector<1x1x256xf32> to vector<1x256xf32>
    %164 = vector.broadcast %163 : vector<1x256xf32> to vector<16x256xf32>
    %165 = vector.broadcast %3 : vector<16x1xf32> to vector<16x256xf32>
    %166 = arith.subf %164, %165 : vector<16x256xf32>
    %167 = math.absf %166 : vector<16x256xf32>
    %cst_90 = arith.constant 1.000000e+00 : f32
    %168 = vector.broadcast %cst_90 : f32 to vector<16x256xf32>
    %169 = arith.subf %168, %167 : vector<16x256xf32>
    %cst_91 = arith.constant 0.000000e+00 : f32
    %170 = vector.broadcast %cst_91 : f32 to vector<16x256xf32>
    %171 = arith.maximumf %170, %169 : vector<16x256xf32>
    %172 = vector.extract_strided_slice %143 {offsets = [0, 256], sizes = [64, 256], strides = [1, 1]} : vector<64x2304xf32> to vector<64x256xf32>
    %173 = vector.shape_cast %172 : vector<64x256xf32> to vector<4x16x256xf32>
    %174 = vector.shape_cast %171 : vector<16x256xf32> to vector<1x16x256xf32>
    %175 = vector.broadcast %174 : vector<1x16x256xf32> to vector<4x16x256xf32>
    %176 = arith.mulf %173, %175 : vector<4x16x256xf32>
    %cst_92 = arith.constant dense<0.000000e+00> : vector<4x256xf32>
    %177 = vector.multi_reduction <add>, %176, %cst_92 [1] : vector<4x16x256xf32> to vector<4x256xf32>
    %178 = tpu.concatenate %177, %4 in 0 : vector<4x256xf32>, vector<4x256xf32> -> vector<8x256xf32>
    %c8_93 = arith.constant 8 : index
    %c0_94 = arith.constant 0 : index
    %179 = vector.load %arg10[%c8_93, %c0_94] : memref<72x256xf32, #tpu.memory_space<vmem>>, vector<8x256xf32>
    tpu.vector_store %arg10[%c8_93, %c0_94], %178 {strides = array<i32>} : memref<72x256xf32, #tpu.memory_space<vmem>>, vector<8x256xf32>,
    %c0_95 = arith.constant 0 : index
    %c2_96 = arith.constant 2 : index
    %c0_97 = arith.constant 0 : index
    %180 = vector.load %arg4[%c0_95, %c2_96, %c0_97] : memref<1x9x256xf32, #tpu.memory_space<vmem>>, vector<1x1x256xf32>
    %181 = vector.shape_cast %180 : vector<1x1x256xf32> to vector<1x256xf32>
    %182 = vector.broadcast %181 : vector<1x256xf32> to vector<16x256xf32>
    %183 = vector.broadcast %3 : vector<16x1xf32> to vector<16x256xf32>
    %184 = arith.subf %182, %183 : vector<16x256xf32>
    %185 = math.absf %184 : vector<16x256xf32>
    %cst_98 = arith.constant 1.000000e+00 : f32
    %186 = vector.broadcast %cst_98 : f32 to vector<16x256xf32>
    %187 = arith.subf %186, %185 : vector<16x256xf32>
    %cst_99 = arith.constant 0.000000e+00 : f32
    %188 = vector.broadcast %cst_99 : f32 to vector<16x256xf32>
    %189 = arith.maximumf %188, %187 : vector<16x256xf32>
    %190 = vector.extract_strided_slice %143 {offsets = [0, 512], sizes = [64, 256], strides = [1, 1]} : vector<64x2304xf32> to vector<64x256xf32>
    %191 = vector.shape_cast %190 : vector<64x256xf32> to vector<4x16x256xf32>
    %192 = vector.shape_cast %189 : vector<16x256xf32> to vector<1x16x256xf32>
    %193 = vector.broadcast %192 : vector<1x16x256xf32> to vector<4x16x256xf32>
    %194 = arith.mulf %191, %193 : vector<4x16x256xf32>
    %cst_100 = arith.constant dense<0.000000e+00> : vector<4x256xf32>
    %195 = vector.multi_reduction <add>, %194, %cst_100 [1] : vector<4x16x256xf32> to vector<4x256xf32>
    %196 = tpu.concatenate %195, %4 in 0 : vector<4x256xf32>, vector<4x256xf32> -> vector<8x256xf32>
    %c16 = arith.constant 16 : index
    %c0_101 = arith.constant 0 : index
    %197 = vector.load %arg10[%c16, %c0_101] : memref<72x256xf32, #tpu.memory_space<vmem>>, vector<8x256xf32>
    tpu.vector_store %arg10[%c16, %c0_101], %196 {strides = array<i32>} : memref<72x256xf32, #tpu.memory_space<vmem>>, vector<8x256xf32>,
    %c0_102 = arith.constant 0 : index
    %c3_103 = arith.constant 3 : index
    %c0_104 = arith.constant 0 : index
    %198 = vector.load %arg4[%c0_102, %c3_103, %c0_104] : memref<1x9x256xf32, #tpu.memory_space<vmem>>, vector<1x1x256xf32>
    %199 = vector.shape_cast %198 : vector<1x1x256xf32> to vector<1x256xf32>
    %200 = vector.broadcast %199 : vector<1x256xf32> to vector<16x256xf32>
    %201 = vector.broadcast %3 : vector<16x1xf32> to vector<16x256xf32>
    %202 = arith.subf %200, %201 : vector<16x256xf32>
    %203 = math.absf %202 : vector<16x256xf32>
    %cst_105 = arith.constant 1.000000e+00 : f32
    %204 = vector.broadcast %cst_105 : f32 to vector<16x256xf32>
    %205 = arith.subf %204, %203 : vector<16x256xf32>
    %cst_106 = arith.constant 0.000000e+00 : f32
    %206 = vector.broadcast %cst_106 : f32 to vector<16x256xf32>
    %207 = arith.maximumf %206, %205 : vector<16x256xf32>
    %208 = vector.extract_strided_slice %143 {offsets = [0, 768], sizes = [64, 256], strides = [1, 1]} : vector<64x2304xf32> to vector<64x256xf32>
    %209 = vector.shape_cast %208 : vector<64x256xf32> to vector<4x16x256xf32>
    %210 = vector.shape_cast %207 : vector<16x256xf32> to vector<1x16x256xf32>
    %211 = vector.broadcast %210 : vector<1x16x256xf32> to vector<4x16x256xf32>
    %212 = arith.mulf %209, %211 : vector<4x16x256xf32>
    %cst_107 = arith.constant dense<0.000000e+00> : vector<4x256xf32>
    %213 = vector.multi_reduction <add>, %212, %cst_107 [1] : vector<4x16x256xf32> to vector<4x256xf32>
    %214 = tpu.concatenate %213, %4 in 0 : vector<4x256xf32>, vector<4x256xf32> -> vector<8x256xf32>
    %c24 = arith.constant 24 : index
    %c0_108 = arith.constant 0 : index
    %215 = vector.load %arg10[%c24, %c0_108] : memref<72x256xf32, #tpu.memory_space<vmem>>, vector<8x256xf32>
    tpu.vector_store %arg10[%c24, %c0_108], %214 {strides = array<i32>} : memref<72x256xf32, #tpu.memory_space<vmem>>, vector<8x256xf32>,
    %c0_109 = arith.constant 0 : index
    %c4_110 = arith.constant 4 : index
    %c0_111 = arith.constant 0 : index
    %216 = vector.load %arg4[%c0_109, %c4_110, %c0_111] : memref<1x9x256xf32, #tpu.memory_space<vmem>>, vector<1x1x256xf32>
    %217 = vector.shape_cast %216 : vector<1x1x256xf32> to vector<1x256xf32>
    %218 = vector.broadcast %217 : vector<1x256xf32> to vector<16x256xf32>
    %219 = vector.broadcast %3 : vector<16x1xf32> to vector<16x256xf32>
    %220 = arith.subf %218, %219 : vector<16x256xf32>
    %221 = math.absf %220 : vector<16x256xf32>
    %cst_112 = arith.constant 1.000000e+00 : f32
    %222 = vector.broadcast %cst_112 : f32 to vector<16x256xf32>
    %223 = arith.subf %222, %221 : vector<16x256xf32>
    %cst_113 = arith.constant 0.000000e+00 : f32
    %224 = vector.broadcast %cst_113 : f32 to vector<16x256xf32>
    %225 = arith.maximumf %224, %223 : vector<16x256xf32>
    %226 = vector.extract_strided_slice %143 {offsets = [0, 1024], sizes = [64, 256], strides = [1, 1]} : vector<64x2304xf32> to vector<64x256xf32>
    %227 = vector.shape_cast %226 : vector<64x256xf32> to vector<4x16x256xf32>
    %228 = vector.shape_cast %225 : vector<16x256xf32> to vector<1x16x256xf32>
    %229 = vector.broadcast %228 : vector<1x16x256xf32> to vector<4x16x256xf32>
    %230 = arith.mulf %227, %229 : vector<4x16x256xf32>
    %cst_114 = arith.constant dense<0.000000e+00> : vector<4x256xf32>
    %231 = vector.multi_reduction <add>, %230, %cst_114 [1] : vector<4x16x256xf32> to vector<4x256xf32>
    %232 = tpu.concatenate %231, %4 in 0 : vector<4x256xf32>, vector<4x256xf32> -> vector<8x256xf32>
    %c32 = arith.constant 32 : index
    %c0_115 = arith.constant 0 : index
    %233 = vector.load %arg10[%c32, %c0_115] : memref<72x256xf32, #tpu.memory_space<vmem>>, vector<8x256xf32>
    tpu.vector_store %arg10[%c32, %c0_115], %232 {strides = array<i32>} : memref<72x256xf32, #tpu.memory_space<vmem>>, vector<8x256xf32>,
    %c0_116 = arith.constant 0 : index
    %c5_117 = arith.constant 5 : index
    %c0_118 = arith.constant 0 : index
    %234 = vector.load %arg4[%c0_116, %c5_117, %c0_118] : memref<1x9x256xf32, #tpu.memory_space<vmem>>, vector<1x1x256xf32>
    %235 = vector.shape_cast %234 : vector<1x1x256xf32> to vector<1x256xf32>
    %236 = vector.broadcast %235 : vector<1x256xf32> to vector<16x256xf32>
    %237 = vector.broadcast %3 : vector<16x1xf32> to vector<16x256xf32>
    %238 = arith.subf %236, %237 : vector<16x256xf32>
    %239 = math.absf %238 : vector<16x256xf32>
    %cst_119 = arith.constant 1.000000e+00 : f32
    %240 = vector.broadcast %cst_119 : f32 to vector<16x256xf32>
    %241 = arith.subf %240, %239 : vector<16x256xf32>
    %cst_120 = arith.constant 0.000000e+00 : f32
    %242 = vector.broadcast %cst_120 : f32 to vector<16x256xf32>
    %243 = arith.maximumf %242, %241 : vector<16x256xf32>
    %244 = vector.extract_strided_slice %143 {offsets = [0, 1280], sizes = [64, 256], strides = [1, 1]} : vector<64x2304xf32> to vector<64x256xf32>
    %245 = vector.shape_cast %244 : vector<64x256xf32> to vector<4x16x256xf32>
    %246 = vector.shape_cast %243 : vector<16x256xf32> to vector<1x16x256xf32>
    %247 = vector.broadcast %246 : vector<1x16x256xf32> to vector<4x16x256xf32>
    %248 = arith.mulf %245, %247 : vector<4x16x256xf32>
    %cst_121 = arith.constant dense<0.000000e+00> : vector<4x256xf32>
    %249 = vector.multi_reduction <add>, %248, %cst_121 [1] : vector<4x16x256xf32> to vector<4x256xf32>
    %250 = tpu.concatenate %249, %4 in 0 : vector<4x256xf32>, vector<4x256xf32> -> vector<8x256xf32>
    %c40 = arith.constant 40 : index
    %c0_122 = arith.constant 0 : index
    %251 = vector.load %arg10[%c40, %c0_122] : memref<72x256xf32, #tpu.memory_space<vmem>>, vector<8x256xf32>
    tpu.vector_store %arg10[%c40, %c0_122], %250 {strides = array<i32>} : memref<72x256xf32, #tpu.memory_space<vmem>>, vector<8x256xf32>,
    %c0_123 = arith.constant 0 : index
    %c6_124 = arith.constant 6 : index
    %c0_125 = arith.constant 0 : index
    %252 = vector.load %arg4[%c0_123, %c6_124, %c0_125] : memref<1x9x256xf32, #tpu.memory_space<vmem>>, vector<1x1x256xf32>
    %253 = vector.shape_cast %252 : vector<1x1x256xf32> to vector<1x256xf32>
    %254 = vector.broadcast %253 : vector<1x256xf32> to vector<16x256xf32>
    %255 = vector.broadcast %3 : vector<16x1xf32> to vector<16x256xf32>
    %256 = arith.subf %254, %255 : vector<16x256xf32>
    %257 = math.absf %256 : vector<16x256xf32>
    %cst_126 = arith.constant 1.000000e+00 : f32
    %258 = vector.broadcast %cst_126 : f32 to vector<16x256xf32>
    %259 = arith.subf %258, %257 : vector<16x256xf32>
    %cst_127 = arith.constant 0.000000e+00 : f32
    %260 = vector.broadcast %cst_127 : f32 to vector<16x256xf32>
    %261 = arith.maximumf %260, %259 : vector<16x256xf32>
    %262 = vector.extract_strided_slice %143 {offsets = [0, 1536], sizes = [64, 256], strides = [1, 1]} : vector<64x2304xf32> to vector<64x256xf32>
    %263 = vector.shape_cast %262 : vector<64x256xf32> to vector<4x16x256xf32>
    %264 = vector.shape_cast %261 : vector<16x256xf32> to vector<1x16x256xf32>
    %265 = vector.broadcast %264 : vector<1x16x256xf32> to vector<4x16x256xf32>
    %266 = arith.mulf %263, %265 : vector<4x16x256xf32>
    %cst_128 = arith.constant dense<0.000000e+00> : vector<4x256xf32>
    %267 = vector.multi_reduction <add>, %266, %cst_128 [1] : vector<4x16x256xf32> to vector<4x256xf32>
    %268 = tpu.concatenate %267, %4 in 0 : vector<4x256xf32>, vector<4x256xf32> -> vector<8x256xf32>
    %c48 = arith.constant 48 : index
    %c0_129 = arith.constant 0 : index
    %269 = vector.load %arg10[%c48, %c0_129] : memref<72x256xf32, #tpu.memory_space<vmem>>, vector<8x256xf32>
    tpu.vector_store %arg10[%c48, %c0_129], %268 {strides = array<i32>} : memref<72x256xf32, #tpu.memory_space<vmem>>, vector<8x256xf32>,
    %c0_130 = arith.constant 0 : index
    %c7_131 = arith.constant 7 : index
    %c0_132 = arith.constant 0 : index
    %270 = vector.load %arg4[%c0_130, %c7_131, %c0_132] : memref<1x9x256xf32, #tpu.memory_space<vmem>>, vector<1x1x256xf32>
    %271 = vector.shape_cast %270 : vector<1x1x256xf32> to vector<1x256xf32>
    %272 = vector.broadcast %271 : vector<1x256xf32> to vector<16x256xf32>
    %273 = vector.broadcast %3 : vector<16x1xf32> to vector<16x256xf32>
    %274 = arith.subf %272, %273 : vector<16x256xf32>
    %275 = math.absf %274 : vector<16x256xf32>
    %cst_133 = arith.constant 1.000000e+00 : f32
    %276 = vector.broadcast %cst_133 : f32 to vector<16x256xf32>
    %277 = arith.subf %276, %275 : vector<16x256xf32>
    %cst_134 = arith.constant 0.000000e+00 : f32
    %278 = vector.broadcast %cst_134 : f32 to vector<16x256xf32>
    %279 = arith.maximumf %278, %277 : vector<16x256xf32>
    %280 = vector.extract_strided_slice %143 {offsets = [0, 1792], sizes = [64, 256], strides = [1, 1]} : vector<64x2304xf32> to vector<64x256xf32>
    %281 = vector.shape_cast %280 : vector<64x256xf32> to vector<4x16x256xf32>
    %282 = vector.shape_cast %279 : vector<16x256xf32> to vector<1x16x256xf32>
    %283 = vector.broadcast %282 : vector<1x16x256xf32> to vector<4x16x256xf32>
    %284 = arith.mulf %281, %283 : vector<4x16x256xf32>
    %cst_135 = arith.constant dense<0.000000e+00> : vector<4x256xf32>
    %285 = vector.multi_reduction <add>, %284, %cst_135 [1] : vector<4x16x256xf32> to vector<4x256xf32>
    %286 = tpu.concatenate %285, %4 in 0 : vector<4x256xf32>, vector<4x256xf32> -> vector<8x256xf32>
    %c56 = arith.constant 56 : index
    %c0_136 = arith.constant 0 : index
    %287 = vector.load %arg10[%c56, %c0_136] : memref<72x256xf32, #tpu.memory_space<vmem>>, vector<8x256xf32>
    tpu.vector_store %arg10[%c56, %c0_136], %286 {strides = array<i32>} : memref<72x256xf32, #tpu.memory_space<vmem>>, vector<8x256xf32>,
    %c0_137 = arith.constant 0 : index
    %c8_138 = arith.constant 8 : index
    %c0_139 = arith.constant 0 : index
    %288 = vector.load %arg4[%c0_137, %c8_138, %c0_139] : memref<1x9x256xf32, #tpu.memory_space<vmem>>, vector<1x1x256xf32>
    %289 = vector.shape_cast %288 : vector<1x1x256xf32> to vector<1x256xf32>
    %290 = vector.broadcast %289 : vector<1x256xf32> to vector<16x256xf32>
    %291 = vector.broadcast %3 : vector<16x1xf32> to vector<16x256xf32>
    %292 = arith.subf %290, %291 : vector<16x256xf32>
    %293 = math.absf %292 : vector<16x256xf32>
    %cst_140 = arith.constant 1.000000e+00 : f32
    %294 = vector.broadcast %cst_140 : f32 to vector<16x256xf32>
    %295 = arith.subf %294, %293 : vector<16x256xf32>
    %cst_141 = arith.constant 0.000000e+00 : f32
    %296 = vector.broadcast %cst_141 : f32 to vector<16x256xf32>
    %297 = arith.maximumf %296, %295 : vector<16x256xf32>
    %298 = vector.extract_strided_slice %143 {offsets = [0, 2048], sizes = [64, 256], strides = [1, 1]} : vector<64x2304xf32> to vector<64x256xf32>
    %299 = vector.shape_cast %298 : vector<64x256xf32> to vector<4x16x256xf32>
    %300 = vector.shape_cast %297 : vector<16x256xf32> to vector<1x16x256xf32>
    %301 = vector.broadcast %300 : vector<1x16x256xf32> to vector<4x16x256xf32>
    %302 = arith.mulf %299, %301 : vector<4x16x256xf32>
    %cst_142 = arith.constant dense<0.000000e+00> : vector<4x256xf32>
    %303 = vector.multi_reduction <add>, %302, %cst_142 [1] : vector<4x16x256xf32> to vector<4x256xf32>
    %304 = tpu.concatenate %303, %4 in 0 : vector<4x256xf32>, vector<4x256xf32> -> vector<8x256xf32>
    %c64 = arith.constant 64 : index
    %c0_143 = arith.constant 0 : index
    %305 = vector.load %arg10[%c64, %c0_143] : memref<72x256xf32, #tpu.memory_space<vmem>>, vector<8x256xf32>
    tpu.vector_store %arg10[%c64, %c0_143], %304 {strides = array<i32>} : memref<72x256xf32, #tpu.memory_space<vmem>>, vector<8x256xf32>,
    %c0_144 = arith.constant 0 : index
    %c0_145 = arith.constant 0 : index
    %306 = vector.load %arg6[%c0_144, %c0_145] : memref<8x72xf32, #tpu.memory_space<vmem>>, vector<8x72xf32>
    %c0_146 = arith.constant 0 : index
    %c0_147 = arith.constant 0 : index
    %307 = vector.load %arg10[%c0_146, %c0_147] : memref<72x256xf32, #tpu.memory_space<vmem>>, vector<72x256xf32>
    %cst_148 = arith.constant dense<0.000000e+00> : vector<8x256xf32>
    %308 = tpu.matmul %306, %307, %cst_148 {dimension_numbers = #tpu.dot_dimension_numbers<[1], [0], [0], [1], [0, 0, 1, 1], [], []>} : vector<8x72xf32>, vector<72x256xf32>, vector<8x256xf32> -> vector<8x256xf32>
    %c0_149 = arith.constant 0 : index
    %c0_150 = arith.constant 0 : index
    %309 = vector.load %arg7[%c0_149, %c0_150] : memref<8x1xf32, #tpu.memory_space<vmem>>, vector<8x1xf32>
    %310 = vector.broadcast %309 : vector<8x1xf32> to vector<8x256xf32>
    %311 = arith.addf %308, %310 : vector<8x256xf32>
    %c0_151 = arith.constant 0 : index
    %c0_152 = arith.constant 0 : index
    %c0_153 = arith.constant 0 : index
    %312 = vector.load %arg8[%c0_151, %c0_152, %c0_153] : memref<1x8x256xf32, #tpu.memory_space<vmem>>, vector<1x8x256xf32>
    %313 = vector.shape_cast %312 : vector<1x8x256xf32> to vector<8x256xf32>
    %314 = vector.shape_cast %311 : vector<8x256xf32> to vector<1x8x256xf32>
    tpu.vector_store %arg8[%c0_151, %c0_152, %c0_153], %314 {strides = array<i32>} : memref<1x8x256xf32, #tpu.memory_space<vmem>>, vector<1x8x256xf32>,
    return
  }
  func.func @transform_0(%arg0: i32, %arg1: i32) -> (i32, i32, i32) {
    %c0_i32 = arith.constant 0 : i32
    %c0_i32_0 = arith.constant 0 : i32
    %c0_i32_1 = arith.constant 0 : i32
    return %arg0, %c0_i32, %c0_i32_0 : i32, i32, i32
  }
  func.func @transform_1(%arg0: i32, %arg1: i32) -> (i32, i32, i32) {
    %c0_i32 = arith.constant 0 : i32
    %c0_i32_0 = arith.constant 0 : i32
    return %arg0, %c0_i32, %arg1 : i32, i32, i32
  }
  func.func @transform_2(%arg0: i32, %arg1: i32) -> (i32, i32, i32) {
    %c0_i32 = arith.constant 0 : i32
    %c0_i32_0 = arith.constant 0 : i32
    return %arg0, %c0_i32, %arg1 : i32, i32, i32
  }
  func.func @transform_3(%arg0: i32, %arg1: i32) -> (i32, i32, i32) {
    %c0_i32 = arith.constant 0 : i32
    %c0_i32_0 = arith.constant 0 : i32
    return %arg0, %c0_i32, %arg1 : i32, i32, i32
  }
  func.func @transform_4(%arg0: i32, %arg1: i32) -> (i32, i32) {
    %c0_i32 = arith.constant 0 : i32
    %c0_i32_0 = arith.constant 0 : i32
    %c0_i32_1 = arith.constant 0 : i32
    return %c0_i32, %c0_i32_0 : i32, i32
  }
  func.func @transform_5(%arg0: i32, %arg1: i32) -> (i32, i32) {
    %c0_i32 = arith.constant 0 : i32
    %c0_i32_0 = arith.constant 0 : i32
    %c0_i32_1 = arith.constant 0 : i32
    return %c0_i32, %c0_i32_0 : i32, i32
  }
  func.func @transform_6(%arg0: i32, %arg1: i32) -> (i32, i32, i32) {
    %c0_i32 = arith.constant 0 : i32
    %c0_i32_0 = arith.constant 0 : i32
    return %arg0, %c0_i32, %arg1 : i32, i32, i32
  }
}

</mosaic_0001>

<bundles_post_ra>
// kernel: tpu_custom_call.1
= control target key start
LH: loop header
LB: loop body
LE: loop exit
PB: predicated region body
PF: predicated region fallthrough
CT: control target
= control target key end

     0   :  { %11 = vsyncpa [#allocation5], 0  ;;  %s4291_s0 = inlined_call_operand.vmem [shape: f32[2,64,16], index: 0, kind: input, shape index: {}]   ;;  %s4292_s1 = inlined_call_operand.vmem [shape: f32[2,9,256], index: 1, kind: input, shape index: {}]   ;;  %s4293_s2 = inlined_call_operand.vmem [shape: f32[2,9,256], index: 2, kind: input, shape index: {}]   ;;  %s4294_s3 = inlined_call_operand.vmem [shape: f32[2,9,256], index: 3, kind: input, shape index: {}]   ;;  %s4295_s4 = inlined_call_operand.vmem [shape: f32[8,72], index: 4, kind: input, shape index: {}]   ;;  %s4296_s5 = inlined_call_operand.vmem [shape: f32[8,1], index: 5, kind: input, shape index: {}]   ;;  %s4297_s6 = inlined_call_operand.hbm [shape: f32[2,8,256], index: 6, kind: output, shape index: {}]  }
   0x1   :  { %13 = vsyncpa [#allocation5 + $0x1], 0  ;;  %s3174_s21 = smov 0   ;;  %s3176_s22 = smov 0  }
   0x2   :  { %s3178_s23 = smov 0   ;;  %s3180_s24 = smov 0  }
   0x3   :  { %s3182_s25 = smov 0   ;;  %s3184_s26 = smov 0  }
   0x4 LB: > { %s2777_s27 = sadd.s32 4294967295, %s3136_s26   ;;  %s2778_s28 = sadd.s32 4294967294, %s3136_s26   ;;  %s3136_s26 = sphi %s3184_s26, %s19_s26   ;;  %s3132_s25 = sphi %s3182_s25, %s4324_s25   ;;  %s3128_s24 = sphi %s3180_s24, %s4323_s24   ;;  %s3124_s23 = sphi %s3178_s23, %s4322_s23   ;;  %s3120_s22 = sphi %s3176_s22, %s4321_s22   ;;  %s3116_s21 = sphi %s3174_s21, %s4320_s21  }
   0x5   : > { %s31_s29 = sadd.s32 1, %s3132_s25  ;;  %s192_s30 = sadd.s32 1, %s3124_s23 }
   0x6   : > { %p33_p0 = scmp.ge.s32.totalorder %s31_s29, 2  ;;  %p202_p1 = scmp.ne.s32.totalorder %s3124_s23, %s3120_s22 }
   0x7   : > { %p203_p2 = scmp.eq.s32.totalorder %s2777_s27, 1  ;;  %p208_p3 = scmp.ne.s32.totalorder %s3120_s22, %s3116_s21 }
   0x8   : > { %s4326_s29 = smov (%p33_p0, %s31_s29), 0  ;;  %p209_p5 = scmp.eq.s32.totalorder %s2778_s28, 1 }
   0x9   : > { %p3214_p4 = por %p203_p2, %p202_p1  ;;  %s187_s8 = ssub.s32 %s3132_s25, %s4326_s29 }
   0xa   : > { %p2781_p6 = scmp.ge.s32.totalorder %s3136_s26, 1  ;;  %p190_p7 = scmp.eq.s32.totalorder %s187_s8, 0 }
   0xb   : > { %p3221_p8 = por %p209_p5, %p208_p3  ;;  %p280_p9 = scmp.lt.s32.totalorder %s3136_s26, 3 }
   0xc   : > { %s3227_s10 = scalar_select %p190_p7, %s3124_s23, %s192_s30  }
   0xd   : > { %p281_p10 = pnand %p2781_p6, %p280_p9 }
   0xf   : > { %284 = sbr.rel (%p281_p10) target bundleno = 629 (0x275), region = 44 }
  0x14   : > { %p337_p11 = scmp.lt.s32.totalorder %s3128_s24, 1  ;;  %v373_v0 = vlaneseq  ;;  %vm762_vm0 = vcmask 130048   ;;  %vm1627_vm1 = vcmask 1041409   ;;  %vm1629_vm2 = vcmask 1042434   ;;  %s334_s16 = sand.u32 1, %s3120_s22  }
  0x15   : > { %vm1631_vm3 = vcmask 1043459   ;;  %vm1638_vm4 = vcmask 1043456   ;;  %vm2588_vm5 = vcmask 588800   ;;  %s2782_s17 = sshll.u32 %s334_s16, 4 }
  0x16   : > { %s3231_s11 = scalar_select %p337_p11, %s3128_s24, 1  ;;  %v374_v1 = vshrl.u32 %v373_v0, 7 }
  0x18   : > { %s3234_s12 = sshll.u32 %s3231_s11, 5  ;;  %v375_v2 = vadd.s32 8, %v374_v1  ;;  %v3242_v3 = vcvt.s32.f32 %v374_v1  ;;  %s2966_s19 = sshll.u32 %s3231_s11, 6 }
  0x19   : > { %s3240_s15 = scalar_lea.vmem %s4292_s1, %s3234_s12  ;;  %s3248_s18 = scalar_lea.vmem %s4294_s3, %s3234_s12 }
  0x1a   : > { %v3250_v4 = vcvt.s32.f32 %v375_v2  ;;  %v378_v5 = vld [vmem:[%s3240_s15] ss:$8 sm:$0x3]  ;;  %v2791_v13 = vld [vmem:[%s3240_s15 + $0x1] ss:$8 sm:$0x3]  ;;  %s3272_s28 = scalar_lea.vmem %s4291_s0, %s2966_s19  ;;  %s3433_s11 = scalar_lea.vmem %s4293_s2, %s3234_s12 }
  0x1b   : > { %v379_v6 = vld [vmem:[%s3248_s18] ss:$8 sm:$0x3]  ;;  %v381_v7 = vperm.slane %v378_v5, 0  ;;  %v382_v8 = vperm.slane %v378_v5, 1  ;;  %v419_v17 = vperm.slane %v2791_v13, 0 }
  0x1c   : > { %v402_v10 = vperm.slane %v379_v6, 0  ;;  %v403_v11 = vperm.slane %v379_v6, 1  ;;  %v3260_v16 = vld [vmem:[%s3248_s18 + $0x1] ss:$8 sm:$0x3]  ;;  %v420_v18 = vperm.slane %v2791_v13, 1 }
  0x1d   : > { %v387_v9 = vsub.f32 %v381_v7, %v3250_v4  ;;  %v385_v12 = vsub.f32 %v381_v7, %v3242_v3  ;;  %v388_v14 = vsub.f32 %v382_v8, %v3250_v4  ;;  %v386_v15 = vsub.f32 %v382_v8, %v3242_v3  ;;  %v2793_v47 = vld [vmem:[%s3240_s15 + $0x2] ss:$8 sm:$0x3] }
  0x1e   : > { %v440_v21 = vperm.slane %v3260_v16, 0  ;;  %v441_v22 = vperm.slane %v3260_v16, 1  ;;  %v425_v25 = vsub.f32 %v419_v17, %v3250_v4  ;;  %v426_v26 = vsub.f32 %v420_v18, %v3250_v4  ;;  %v3276_v56 = vld [vmem:[%s3272_s28] sm:$0xff]  ;;  %v3279_v57 = vld [vmem:[%s3272_s28 + $0x28] sm:$0xff]  ;;  %v3298_v16 = vld [vmem:[%s3272_s28 + $0x30] sm:$0xff] }
  0x1f   : > { %v391_v19 = vand.u32 2147483647, %v387_v9  ;;  %v389_v20 = vand.u32 2147483647, %v385_v12  ;;  %v392_v23 = vand.u32 2147483647, %v388_v14  ;;  %v423_v29 = vsub.f32 %v419_v17, %v3242_v3 }
  0x20   : > { %v390_v24 = vand.u32 2147483647, %v386_v15  ;;  %v424_v30 = vsub.f32 %v420_v18, %v3242_v3  ;;  %v429_v33 = vand.u32 2147483647, %v425_v25  ;;  %v430_v34 = vand.u32 2147483647, %v426_v26 }
  0x21   : > { %v395_v27 = vsub.f32 1.0, %v391_v19  ;;  %v393_v28 = vsub.f32 1.0, %v389_v20  ;;  %v396_v31 = vsub.f32 1.0, %v392_v23  ;;  %v427_v37 = vand.u32 2147483647, %v423_v29  ;;  %v3295_v15 = vld [vmem:[%s3272_s28 + $0x8] sm:$0xff] }
  0x22   : > { %v394_v32 = vsub.f32 1.0, %v390_v24  ;;  %v428_v38 = vand.u32 2147483647, %v424_v30  ;;  %v433_v41 = vsub.f32 1.0, %v429_v33  ;;  %v434_v42 = vsub.f32 1.0, %v430_v34  ;;  %v3309_v25 = vld [vmem:[%s3272_s28 + $0x10] sm:$0xff] }
  0x23   : > { %v399_v35 = vmax.f32 %v395_v27, 0.0  ;;  %v397_v36 = vmax.f32 %v393_v28, 0.0  ;;  %v400_v39 = vmax.f32 %v396_v31, 0.0  ;;  %v431_v45 = vsub.f32 1.0, %v427_v37  ;;  %v3312_v26 = vld [vmem:[%s3272_s28 + $0x38] sm:$0xff]  ;;  %v3334_v28 = vld [vmem:[%s3272_s28 + $0x20] sm:$0xff] }
  0x24   : > { %v398_v40 = vmax.f32 %v394_v32, 0.0  ;;  %v432_v46 = vsub.f32 1.0, %v428_v38  ;;  %v437_v50 = vmax.f32 %v433_v41, 0.0  ;;  %v438_v51 = vmax.f32 %v434_v42, 0.0  ;;  %v3323_v27 = vld [vmem:[%s3272_s28 + $0x18] sm:$0xff] }
  0x25   : > { %v408_v43 = vmul.f32 %v402_v10, %v399_v35  ;;  %v406_v44 = vmul.f32 %v402_v10, %v397_v36  ;;  %v409_v48 = vmul.f32 %v403_v11, %v400_v39  ;;  %v435_v52 = vmax.f32 %v431_v45, 0.0  ;;  %v2794_v5 = vld [vmem:[%s3248_s18 + $0x2] ss:$8 sm:$0x3] }
  0x26   : > { %v407_v49 = vmul.f32 %v403_v11, %v398_v40  ;;  %v436_v53 = vmax.f32 %v432_v46, 0.0  ;;  %v457_v54 = vperm.slane %v2793_v47, 0  ;;  %v458_v55 = vperm.slane %v2793_v47, 1  ;;  %v2795_v29 = vld [vmem:[%s3240_s15 + $0x3] ss:$8 sm:$0x3] }
  0x27   : > { %801 = vmatpush.msra.mxu0 %v408_v43  ;;  %2989 = vmatpush.msra.mxu2 %v408_v43  ;;  %v446_v58 = vmul.f32 %v440_v21, %v437_v50  ;;  %v447_v59 = vmul.f32 %v441_v22, %v438_v51  ;;  %v444_v0 = vmul.f32 %v440_v21, %v435_v52  ;;  %v478_v8 = vperm.slane %v2794_v5, 0  ;;  %v2796_v42 = vld [vmem:[%s3248_s18 + $0x3] ss:$8 sm:$0x3] }
  0x28   : > { %842 = vmatpush.msra.mxu1 %v409_v48  ;;  %2991 = vmatpush.msra.mxu3 %v409_v48  ;;  %v463_v60 = vsub.f32 %v457_v54, %v3250_v4  ;;  %v464_v61 = vsub.f32 %v458_v55, %v3250_v4  ;;  %v461_v62 = vsub.f32 %v457_v54, %v3242_v3  ;;  %v479_v11 = vperm.slane %v2794_v5, 1  ;;  %v2797_v43 = vld [vmem:[%s3240_s15 + $0x4] ss:$8 sm:$0x3] }
  0x29   : > { %802 = vmatpush.msra.mxu0 %v406_v44  ;;  %2990 = vmatpush.msra.mxu2 %v406_v44  ;;  %v462_v63 = vsub.f32 %v458_v55, %v3242_v3  ;;  %v445_v1 = vmul.f32 %v441_v22, %v436_v53  ;;  %v495_v30 = vperm.slane %v2795_v29, 0  ;;  %v496_v31 = vperm.slane %v2795_v29, 1 }
  0x2a   : > { %843 = vmatpush.msra.mxu1 %v407_v49  ;;  %2992 = vmatpush.msra.mxu3 %v407_v49  ;;  %v467_v2 = vand.u32 2147483647, %v463_v60  ;;  %v468_v6 = vand.u32 2147483647, %v464_v61  ;;  %v465_v9 = vand.u32 2147483647, %v461_v62 }
  0x2b   : > { %2807 = vmatmul.msk.f32.vlgmr.msra.gmra.mxu0 %vm762_vm0, %v3276_v56  ;;  %2812 = vmatmul.msk.f32.vlgmr.msra.gmra.mxu2 %vm762_vm0, %v3279_v57  ;;  %v466_v12 = vand.u32 2147483647, %v462_v63  ;;  %v501_v32 = vsub.f32 %v495_v30, %v3250_v4  ;;  %v502_v33 = vsub.f32 %v496_v31, %v3250_v4  ;;  %v499_v36 = vsub.f32 %v495_v30, %v3242_v3 }
  0x2c   : > { %2815 = vmatmul.msk.f32.vlgmr.msra.gmra.mxu1 %vm762_vm0, %v3276_v56  ;;  %2820 = vmatmul.msk.f32.vlgmr.msra.gmra.mxu3 %vm762_vm0, %v3279_v57  ;;  %v471_v7 = vsub.f32 1.0, %v467_v2  ;;  %v472_v10 = vsub.f32 1.0, %v468_v6  ;;  %v469_v14 = vsub.f32 1.0, %v465_v9  ;;  %v500_v37 = vsub.f32 %v496_v31, %v3242_v3 }
  0x2d   : > { %883 = vmatpush.msrb.mxu2 %v446_v58  ;;  %924 = vmatpush.msrb.mxu3 %v447_v59  ;;  %v470_v18 = vsub.f32 1.0, %v466_v12  ;;  %v505_v34 = vand.u32 2147483647, %v501_v32  ;;  %v506_v35 = vand.u32 2147483647, %v502_v33  ;;  %v516_v45 = vperm.slane %v2796_v42, 0 }
  0x2e   : > { %v475_v13 = vmax.f32 %v471_v7, 0.0  ;;  %v476_v17 = vmax.f32 %v472_v10, 0.0  ;;  %v473_v20 = vmax.f32 %v469_v14, 0.0  ;;  %v503_v40 = vand.u32 2147483647, %v499_v36 }
  0x2f   : > { %884 = vmatpush.msrb.mxu2 %v444_v0  ;;  %925 = vmatpush.msrb.mxu3 %v445_v1  ;;  %v474_v22 = vmax.f32 %v470_v18, 0.0  ;;  %v509_v38 = vsub.f32 1.0, %v505_v34  ;;  %v510_v39 = vsub.f32 1.0, %v506_v35  ;;  %v504_v41 = vand.u32 2147483647, %v500_v37 }
  0x30   : > { %v484_v19 = vmul.f32 %v478_v8, %v475_v13  ;;  %v485_v21 = vmul.f32 %v479_v11, %v476_v17  ;;  %v482_v23 = vmul.f32 %v478_v8, %v473_v20  ;;  %v517_v47 = vperm.slane %v2796_v42, 1  ;;  %v2798_v59 = vld [vmem:[%s3248_s18 + $0x4] ss:$8 sm:$0x3] }
  0x31   : > { %v483_v24 = vmul.f32 %v479_v11, %v474_v22  ;;  %v513_v44 = vmax.f32 %v509_v38, 0.0  ;;  %v514_v46 = vmax.f32 %v510_v39, 0.0  ;;  %v507_v48 = vsub.f32 1.0, %v503_v40  ;;  %v1525_v36 = vld [vmem:[%s3433_s11] ss:$8 sm:$0x3] }
  0x32   : > { %965 = vmatpush.msrb.mxu0 %v484_v19  ;;  %1006 = vmatpush.msrb.mxu1 %v485_v21  ;;  %v508_v49 = vsub.f32 1.0, %v504_v41  ;;  %v533_v50 = vperm.slane %v2797_v43, 0  ;;  %v534_v53 = vperm.slane %v2797_v43, 1  ;;  %v554_v2 = vperm.slane %v2798_v59, 0 }
  0x33   : > { %2808 = vmatmul.msk.f32.gmra.mxu0 %vm762_vm0, %v3295_v15  ;;  %2813 = vmatmul.msk.f32.gmra.mxu2 %vm762_vm0, %v3298_v16  ;;  %v522_v51 = vmul.f32 %v516_v45, %v513_v44  ;;  %v523_v52 = vmul.f32 %v517_v47, %v514_v46  ;;  %v511_v54 = vmax.f32 %v507_v48, 0.0  ;;  %v555_v6 = vperm.slane %v2798_v59, 1  ;;  %v2800_v41 = vld [vmem:[%s3248_s18 + $0x5] ss:$8 sm:$0x3] }
  0x34   : > { %2816 = vmatmul.msk.f32.gmra.mxu1 %vm762_vm0, %v3295_v15  ;;  %2821 = vmatmul.msk.f32.gmra.mxu3 %vm762_vm0, %v3298_v16  ;;  %v512_v55 = vmax.f32 %v508_v49, 0.0  ;;  %v539_v58 = vsub.f32 %v533_v50, %v3250_v4  ;;  %v540_v60 = vsub.f32 %v534_v53, %v3250_v4  ;;  %v537_v11 = vsub.f32 %v533_v50, %v3242_v3 }
  0x35   : > { %966 = vmatpush.msrb.mxu0 %v482_v23  ;;  %1007 = vmatpush.msrb.mxu1 %v483_v24  ;;  %v520_v61 = vmul.f32 %v516_v45, %v511_v54  ;;  %v538_v12 = vsub.f32 %v534_v53, %v3242_v3  ;;  %v2799_v23 = vld [vmem:[%s3240_s15 + $0x5] ss:$8 sm:$0x3]  ;;  %v592_v43 = vperm.slane %v2800_v41, 0  ;;  %v593_v45 = vperm.slane %v2800_v41, 1 }
  0x36   : > { %1047 = vmatpush.msra.mxu2 %v522_v51  ;;  %1088 = vmatpush.msra.mxu3 %v523_v52  ;;  %v521_v62 = vmul.f32 %v517_v47, %v512_v55  ;;  %v543_v63 = vand.u32 2147483647, %v539_v58  ;;  %v544_v0 = vand.u32 2147483647, %v540_v60  ;;  %v541_v13 = vand.u32 2147483647, %v537_v11 }
  0x37   : > { %v542_v14 = vand.u32 2147483647, %v538_v12  ;;  %v571_v24 = vperm.slane %v2799_v23, 0  ;;  %v572_v29 = vperm.slane %v2799_v23, 1  ;;  %v1527_v46 = vperm.slane %v1525_v36, 0 }
  0x38   : > { %v547_v1 = vsub.f32 1.0, %v543_v63  ;;  %1048 = vmatpush.msra.mxu2 %v520_v61  ;;  %1089 = vmatpush.msra.mxu3 %v521_v62  ;;  %v548_v5 = vsub.f32 1.0, %v544_v0  ;;  %v545_v17 = vsub.f32 1.0, %v541_v13  ;;  %v1528_v51 = vperm.slane %v1525_v36, 1 }
  0x39   : > { %v546_v18 = vsub.f32 1.0, %v542_v14  ;;  %v577_v30 = vsub.f32 %v571_v24, %v3250_v4  ;;  %v578_v31 = vsub.f32 %v572_v29, %v3250_v4  ;;  %v575_v34 = vsub.f32 %v571_v24, %v3242_v3  ;;  %v2801_v61 = vld [vmem:[%s3240_s15 + $0x6] ss:$8 sm:$0x3] }
  0x3a   : > { %v551_v7 = vmax.f32 %v547_v1, 0.0  ;;  %v552_v8 = vmax.f32 %v548_v5, 0.0  ;;  %v549_v19 = vmax.f32 %v545_v17, 0.0  ;;  %v576_v35 = vsub.f32 %v572_v29, %v3242_v3 }
  0x3b   : > { %2809 = vmatmul.msk.f32.gmra.mxu0 %vm762_vm0, %v3309_v25  ;;  %2814 = vmatmul.msk.f32.gmra.mxu2 %vm762_vm0, %v3312_v26  ;;  %v550_v20 = vmax.f32 %v546_v18, 0.0  ;;  %v581_v32 = vand.u32 2147483647, %v577_v30  ;;  %v582_v33 = vand.u32 2147483647, %v578_v31  ;;  %v1533_v52 = vsub.f32 %v1527_v46, %v3250_v4 }
  0x3c   : > { %2817 = vmatmul.msk.f32.gmra.mxu1 %vm762_vm0, %v3309_v25  ;;  %2822 = vmatmul.msk.f32.gmra.mxu3 %vm762_vm0, %v3312_v26  ;;  %v560_v9 = vmul.f32 %v554_v2, %v551_v7  ;;  %v561_v10 = vmul.f32 %v555_v6, %v552_v8  ;;  %v558_v21 = vmul.f32 %v554_v2, %v549_v19  ;;  %v579_v39 = vand.u32 2147483647, %v575_v34  ;;  %v2802_v19 = vld [vmem:[%s3248_s18 + $0x6] ss:$8 sm:$0x3] }
  0x3d   : > { %v559_v22 = vmul.f32 %v555_v6, %v550_v20  ;;  %v585_v37 = vsub.f32 1.0, %v581_v32  ;;  %v586_v38 = vsub.f32 1.0, %v582_v33  ;;  %v580_v40 = vand.u32 2147483647, %v576_v35 }
  0x3e   : > { %1129 = vmatpush.msra.mxu0 %v560_v9  ;;  %1170 = vmatpush.msra.mxu1 %v561_v10  ;;  %v583_v47 = vsub.f32 1.0, %v579_v39  ;;  %v1534_v55 = vsub.f32 %v1528_v51, %v3250_v4  ;;  %v1537_v60 = vand.u32 2147483647, %v1533_v52  ;;  %v609_v62 = vperm.slane %v2801_v61, 0 }
  0x3f   : > { %v589_v42 = vmax.f32 %v585_v37, 0.0  ;;  %v590_v44 = vmax.f32 %v586_v38, 0.0  ;;  %v584_v48 = vsub.f32 1.0, %v580_v40  ;;  %v610_v63 = vperm.slane %v2801_v61, 1 }
  0x40   : > { %1130 = vmatpush.msra.mxu0 %v558_v21  ;;  %1171 = vmatpush.msra.mxu1 %v559_v22  ;;  %v587_v53 = vmax.f32 %v583_v47, 0.0  ;;  %v1538_v0 = vand.u32 2147483647, %v1534_v55  ;;  %v615_v1 = vsub.f32 %v609_v62, %v3250_v4  ;;  %v1531_v6 = vsub.f32 %v1527_v46, %v3242_v3  ;;  %v2951_v38 = vld [vmem:[%s3433_s11 + $0x1] ss:$8 sm:$0x3] }
  0x41   : > { %v598_v49 = vmul.f32 %v592_v43, %v589_v42  ;;  %v599_v50 = vmul.f32 %v593_v45, %v590_v44  ;;  %v588_v54 = vmax.f32 %v584_v48, 0.0  ;;  %v616_v2 = vsub.f32 %v610_v63, %v3250_v4 }
  0x42   : > { %v596_v58 = vmul.f32 %v592_v43, %v587_v53  ;;  %v1541_v7 = vsub.f32 1.0, %v1537_v60  ;;  %v619_v9 = vand.u32 2147483647, %v615_v1  ;;  %v1532_v11 = vsub.f32 %v1528_v51, %v3242_v3 }
  0x43   : > { %2810 = vmatmul.msk.f32.gmra.mxu0 %vm762_vm0, %v3323_v27  ;;  %2823 = vmatmul.msk.f32.vlgmr.msrb.gmra.mxu2 %vm762_vm0, %v3276_v56  ;;  %v597_v59 = vmul.f32 %v593_v45, %v588_v54  ;;  %v620_v10 = vand.u32 2147483647, %v616_v2  ;;  %v1542_v12 = vsub.f32 1.0, %v1538_v0  ;;  %v1535_v17 = vand.u32 2147483647, %v1531_v6 }
  0x44   : > { %2818 = vmatmul.msk.f32.gmra.mxu1 %vm762_vm0, %v3323_v27  ;;  %2831 = vmatmul.msk.f32.vlgmr.msrb.gmra.mxu3 %vm762_vm0, %v3276_v56  ;;  %v623_v13 = vsub.f32 1.0, %v619_v9  ;;  %v3476_v18 = vmax.f32 %v1541_v7, 0.0  ;;  %v613_v20 = vsub.f32 %v609_v62, %v3242_v3  ;;  %v630_v22 = vperm.slane %v2802_v19, 0 }
  0x45   : > { %1211 = vmatpush.msrb.mxu2 %v598_v49  ;;  %1252 = vmatpush.msrb.mxu3 %v599_v50  ;;  %v624_v14 = vsub.f32 1.0, %v620_v10  ;;  %v631_v24 = vperm.slane %v2802_v19, 1  ;;  %v1536_v29 = vand.u32 2147483647, %v1532_v11  ;;  %v3480_v31 = vmax.f32 %v1542_v12, 0.0 }
  0x46   : > { %v627_v21 = vmax.f32 %v623_v13, 0.0  ;;  %v617_v39 = vand.u32 2147483647, %v613_v20  ;;  %v1539_v40 = vsub.f32 1.0, %v1535_v17  ;;  %v614_v42 = vsub.f32 %v610_v63, %v3242_v3 }
  0x47   : > { %1212 = vmatpush.msrb.mxu2 %v596_v58  ;;  %1253 = vmatpush.msrb.mxu3 %v597_v59  ;;  %v628_v23 = vmax.f32 %v624_v14, 0.0  ;;  %v1540_v43 = vsub.f32 1.0, %v1536_v29  ;;  %v1646_v45 = vperm.slane %v2951_v38, 0  ;;  %v1647_v47 = vperm.slane %v2951_v38, 1 }
  0x48   : > { %v636_v34 = vmul.f32 %v630_v22, %v627_v21  ;;  %v621_v44 = vsub.f32 1.0, %v617_v39  ;;  %v618_v46 = vand.u32 2147483647, %v614_v42  ;;  %v3498_v49 = vmax.f32 %v1539_v40, 0.0 }
  0x49   : > { %v637_v35 = vmul.f32 %v631_v24, %v628_v23  ;;  %v3500_v51 = vmax.f32 %v1540_v43, 0.0  ;;  %v1650_v58 = vsub.f32 %v1646_v45, %v3242_v3  ;;  %v1651_v62 = vsub.f32 %v1647_v47, %v3242_v3 }
  0x4a   : > { %v625_v48 = vmax.f32 %v621_v44, 0.0  ;;  %v622_v50 = vsub.f32 1.0, %v618_v46  ;;  %v1652_v13 = vsub.f32 %v1646_v45, %v3250_v4  ;;  %v1653_v21 = vsub.f32 %v1647_v47, %v3250_v4 }
  0x4b   : > { %2811 = vmatmul.msk.f32.gmra.mxu0 %vm762_vm0, %v3334_v28  ;;  %2824 = vmatmul.msk.f32.gmra.mxu2 %vm762_vm0, %v3295_v15  ;;  %v1654_v1 = vand.u32 2147483647, %v1650_v58  ;;  %v1655_v6 = vand.u32 2147483647, %v1651_v62 }
  0x4c   : > { %2819 = vmatmul.msk.f32.gmra.mxu1 %vm762_vm0, %v3334_v28  ;;  %2832 = vmatmul.msk.f32.gmra.mxu3 %vm762_vm0, %v3295_v15  ;;  %v634_v53 = vmul.f32 %v630_v22, %v625_v48  ;;  %v626_v59 = vmax.f32 %v622_v50, 0.0  ;;  %v1657_v39 = vand.u32 2147483647, %v1653_v21 }
  0x4d   : > { %v1658_v12 = vsub.f32 1.0, %v1654_v1  ;;  %v1659_v20 = vsub.f32 1.0, %v1655_v6 }
  0x4e   : > { %v635_v0 = vmul.f32 %v631_v24, %v626_v59 }
  0x53   : > { %2825 = vmatmul.msk.f32.gmra.mxu2 %vm762_vm0, %v3309_v25  ;;  %2839 = vmatmul.msk.f32.vlgmr.msrb.gmra.mxu0 %vm762_vm0, %v3276_v56 }
  0x54   : > { %2833 = vmatmul.msk.f32.gmra.mxu3 %vm762_vm0, %v3309_v25  ;;  %2847 = vmatmul.msk.f32.vlgmr.msrb.gmra.mxu1 %vm762_vm0, %v3276_v56 }
  0x55   : > { %1293 = vmatpush.msrb.mxu0 %v636_v34  ;;  %1334 = vmatpush.msrb.mxu1 %v637_v35  ;;  %v3531_v35 = vmax.f32 %v1658_v12, 0.0 }
  0x57   : > { %1294 = vmatpush.msrb.mxu0 %v634_v53  ;;  %1335 = vmatpush.msrb.mxu1 %v635_v0  ;;  %v1661_v53 = vsub.f32 1.0, %v1657_v39 }
  0x5b   : > { %2826 = vmatmul.msk.f32.gmra.mxu2 %vm762_vm0, %v3323_v27  ;;  %2840 = vmatmul.msk.f32.gmra.mxu0 %vm762_vm0, %v3295_v15 }
  0x5c   : > { %2834 = vmatmul.msk.f32.gmra.mxu3 %vm762_vm0, %v3323_v27  ;;  %2848 = vmatmul.msk.f32.gmra.mxu1 %vm762_vm0, %v3295_v15 }
  0x63   : > { %2827 = vmatmul.msk.f32.gmra.mxu2 %vm762_vm0, %v3334_v28  ;;  %2841 = vmatmul.msk.f32.gmra.mxu0 %vm762_vm0, %v3309_v25 }
  0x64   : > { %2835 = vmatmul.msk.f32.gmra.mxu3 %vm762_vm0, %v3334_v28  ;;  %2849 = vmatmul.msk.f32.gmra.mxu1 %vm762_vm0, %v3309_v25 }
  0x6b   : > { %2828 = vmatmul.msk.f32.gmra.mxu2 %vm762_vm0, %v3279_v57  ;;  %2842 = vmatmul.msk.f32.gmra.mxu0 %vm762_vm0, %v3323_v27 }
  0x6c   : > { %2836 = vmatmul.msk.f32.gmra.mxu3 %vm762_vm0, %v3279_v57  ;;  %2850 = vmatmul.msk.f32.gmra.mxu1 %vm762_vm0, %v3323_v27 }
  0x73   : > { %2829 = vmatmul.msk.f32.gmra.mxu2 %vm762_vm0, %v3298_v16  ;;  %2843 = vmatmul.msk.f32.gmra.mxu0 %vm762_vm0, %v3334_v28 }
  0x74   : > { %2837 = vmatmul.msk.f32.gmra.mxu3 %vm762_vm0, %v3298_v16  ;;  %2851 = vmatmul.msk.f32.gmra.mxu1 %vm762_vm0, %v3334_v28 }
  0x7b   : > { %2830 = vmatmul.msk.f32.gmra.mxu2 %vm762_vm0, %v3312_v26  ;;  %2844 = vmatmul.msk.f32.gmra.mxu0 %vm762_vm0, %v3279_v57 }
  0x7c   : > { %2838 = vmatmul.msk.f32.gmra.mxu3 %vm762_vm0, %v3312_v26  ;;  %2852 = vmatmul.msk.f32.gmra.mxu1 %vm762_vm0, %v3279_v57 }
  0x83   : > { %2845 = vmatmul.msk.f32.gmra.mxu0 %vm762_vm0, %v3298_v16  ;;  %2855 = vmatmul.msk.f32.vlgmr.msra.gmra.mxu2 %vm762_vm0, %v3276_v56 }
  0x84   : > { %2853 = vmatmul.msk.f32.gmra.mxu1 %vm762_vm0, %v3298_v16  ;;  %2863 = vmatmul.msk.f32.vlgmr.msra.gmra.mxu3 %vm762_vm0, %v3276_v56 }
  0x8b   : > { %2846 = vmatmul.msk.f32.gmra.mxu0 %vm762_vm0, %v3312_v26  ;;  %2856 = vmatmul.msk.f32.gmra.mxu2 %vm762_vm0, %v3295_v15 }
  0x8c   : > { %2854 = vmatmul.msk.f32.gmra.mxu1 %vm762_vm0, %v3312_v26  ;;  %2864 = vmatmul.msk.f32.gmra.mxu3 %vm762_vm0, %v3295_v15 }
  0x93   : > { %2857 = vmatmul.msk.f32.gmra.mxu2 %vm762_vm0, %v3309_v25  ;;  %2871 = vmatmul.msk.f32.vlgmr.msra.gmra.mxu0 %vm762_vm0, %v3276_v56 }
  0x94   : > { %2865 = vmatmul.msk.f32.gmra.mxu3 %vm762_vm0, %v3309_v25  ;;  %2879 = vmatmul.msk.f32.vlgmr.msra.gmra.mxu1 %vm762_vm0, %v3276_v56 }
  0x9b   : > { %2858 = vmatmul.msk.f32.gmra.mxu2 %vm762_vm0, %v3323_v27  ;;  %2872 = vmatmul.msk.f32.gmra.mxu0 %vm762_vm0, %v3295_v15 }
  0x9c   : > { %2866 = vmatmul.msk.f32.gmra.mxu3 %vm762_vm0, %v3323_v27  ;;  %2880 = vmatmul.msk.f32.gmra.mxu1 %vm762_vm0, %v3295_v15 }
  0xa3   : > { %2859 = vmatmul.msk.f32.gmra.mxu2 %vm762_vm0, %v3334_v28  ;;  %2873 = vmatmul.msk.f32.gmra.mxu0 %vm762_vm0, %v3309_v25 }
  0xa4   : > { %2867 = vmatmul.msk.f32.gmra.mxu3 %vm762_vm0, %v3334_v28  ;;  %2881 = vmatmul.msk.f32.gmra.mxu1 %vm762_vm0, %v3309_v25 }
  0xa8   : > { %v3462_v5 = vpop.f32.mrf.mxu0 }
  0xa9   : > { %v3465_v8 = vpop.f32.mrf.mxu1  ;;  %v1547_v7 = vmul.f32 %v3498_v49, %v3462_v5 }
  0xab   : > { %2860 = vmatmul.msk.f32.gmra.mxu2 %vm762_vm0, %v3279_v57  ;;  %2874 = vmatmul.msk.f32.gmra.mxu0 %vm762_vm0, %v3323_v27 }
  0xac   : > { %2868 = vmatmul.msk.f32.gmra.mxu3 %vm762_vm0, %v3279_v57  ;;  %2882 = vmatmul.msk.f32.gmra.mxu1 %vm762_vm0, %v3323_v27 }
  0xae   : > { %v819_v30 = vpop.f32.mrf.mxu2 }
  0xaf   : > { %v3483_v32 = vmul.f32 %v3476_v18, %v819_v30  ;;  %v860_v33 = vpop.f32.mrf.mxu3 }
  0xb0   : > { %v3486_v36 = vmul.f32 %v3480_v31, %v860_v33  ;;  %v807_v37 = vpop.f32.mrf.mxu0 }
  0xb1   : > { %v848_v41 = vpop.f32.mrf.mxu1  ;;  %v1549_v2 = vmul.f32 %v3476_v18, %v807_v37  ;;  %v1656_v37 = vand.u32 2147483647, %v1652_v13 }
  0xb2   : > { %v1550_v29 = vmul.f32 %v3480_v31, %v848_v41 }
  0xb3   : > { %2861 = vmatmul.msk.f32.gmra.mxu2 %vm762_vm0, %v3298_v16  ;;  %2875 = vmatmul.msk.f32.gmra.mxu0 %vm762_vm0, %v3334_v28  ;;  %v1563_v14 = vadd.f32 %v1549_v2, %v1547_v7  ;;  %v1660_v47 = vsub.f32 1.0, %v1656_v37 }
  0xb4   : > { %2869 = vmatmul.msk.f32.gmra.mxu3 %vm762_vm0, %v3298_v16  ;;  %2883 = vmatmul.msk.f32.gmra.mxu1 %vm762_vm0, %v3334_v28 }
  0xb5   : > { %v1564_v38 = vrot.slane %v1563_v14, 4 }
  0xb6   : > { %v822_v52 = vpop.f32.mrf.mxu2 }
  0xb7   : > { %v1559_v54 = vmul.f32 %v3498_v49, %v822_v52  ;;  %v863_v55 = vpop.f32.mrf.mxu3  ;;  %v1565_v48 = vadd.f32 %v1564_v38, %v1563_v14 }
  0xb8   : > { %v1560_v60 = vmul.f32 %v3500_v51, %v863_v55  ;;  %v810_v61 = vpop.f32.mrf.mxu0 }
  0xb9   : > { %v851_v63 = vpop.f32.mrf.mxu1  ;;  %v1551_v22 = vmul.f32 %v3498_v49, %v810_v61  ;;  %v1566_v0 = vrot.slane %v1565_v48, 2 }
  0xba   : > { %v1552_v40 = vmul.f32 %v3500_v51, %v851_v63  ;;  %v3551_v63 = vmax.f32 %v1660_v47, 0.0 }
  0xbb   : > { %2862 = vmatmul.msk.f32.gmra.mxu2 %vm762_vm0, %v3312_v26  ;;  %2876 = vmatmul.msk.f32.gmra.mxu0 %vm762_vm0, %v3279_v57 }
  0xbc   : > { %2870 = vmatmul.msk.f32.gmra.mxu3 %vm762_vm0, %v3312_v26  ;;  %2884 = vmatmul.msk.f32.gmra.mxu1 %vm762_vm0, %v3279_v57 }
  0xbe   : > { %v825_v9 = vpop.f32.mrf.mxu2 }
  0xbf   : > { %v1561_v10 = vmul.f32 %v3476_v18, %v825_v9  ;;  %v866_v11 = vpop.f32.mrf.mxu3 }
  0xc0   : > { %v1562_v17 = vmul.f32 %v3480_v31, %v866_v11  ;;  %v813_v19 = vpop.f32.mrf.mxu0 }
  0xc1   : > { %v1605_v23 = vadd.f32 %v1561_v10, %v1559_v54  ;;  %v1553_v24 = vmul.f32 %v3476_v18, %v813_v19  ;;  %v854_v5 = vpop.f32.mrf.mxu1  ;;  %v1548_v18 = vmul.f32 %v3500_v51, %v3465_v8 }
  0xc2   : > { %v3524_v30 = vadd.f32 %v1562_v17, %v1560_v60  ;;  %v1554_v34 = vmul.f32 %v3480_v31, %v854_v5  ;;  %v3539_v31 = vmax.f32 %v1659_v20, 0.0 }
  0xc3   : > { %v1577_v33 = vadd.f32 %v1553_v24, %v1551_v22  ;;  %2877 = vmatmul.msk.f32.gmra.mxu0 %vm762_vm0, %v3298_v16  ;;  %2887 = vmatmul.msk.f32.vlgmr.msrb.gmra.mxu2 %vm762_vm0, %v3276_v56  ;;  %v1570_v42 = vadd.f32 %v1550_v29, %v1548_v18 }
  0xc4   : > { %2885 = vmatmul.msk.f32.gmra.mxu1 %vm762_vm0, %v3298_v16  ;;  %2895 = vmatmul.msk.f32.vlgmr.msrb.gmra.mxu3 %vm762_vm0, %v3276_v56  ;;  %v1584_v45 = vadd.f32 %v1554_v34, %v1552_v40 }
  0xc5   : > { %v1578_v41 = vrot.slane %v1577_v33, 4  ;;  %v1571_v58 = vrot.slane %v1570_v42, 4 }
  0xc6   : > { %v886_v43 = vpop.f32.mrf.mxu2  ;;  %v1585_v61 = vrot.slane %v1584_v45, 4 }
  0xc7   : > { %v1579_v44 = vadd.f32 %v1578_v41, %v1577_v33  ;;  %v1666_v46 = vmul.f32 %v3531_v35, %v886_v43  ;;  %v927_v8 = vpop.f32.mrf.mxu3  ;;  %v1572_v2 = vadd.f32 %v1571_v58, %v1570_v42 }
  0xc8   : > { %v1667_v50 = vmul.f32 %v3539_v31, %v927_v8  ;;  %v816_v52 = vpop.f32.mrf.mxu0  ;;  %v1586_v10 = vadd.f32 %v1585_v61, %v1584_v45 }
  0xc9   : > { %v1555_v54 = vmul.f32 %v3498_v49, %v816_v52  ;;  %v857_v55 = vpop.f32.mrf.mxu1  ;;  %v1580_v60 = vrot.slane %v1579_v44, 2  ;;  %v3558_v49 = vmax.f32 %v1661_v53, 0.0  ;;  %v1573_v5 = vrot.slane %v1572_v2, 2 }
  0xca   : > { %v1556_v59 = vmul.f32 %v3500_v51, %v857_v55  ;;  %v1587_v34 = vrot.slane %v1586_v10, 2 }
  0xcb   : > { %v1591_v62 = vadd.f32 %v3483_v32, %v1555_v54  ;;  %2878 = vmatmul.msk.f32.gmra.mxu0 %vm762_vm0, %v3312_v26  ;;  %2888 = vmatmul.msk.f32.gmra.mxu2 %vm762_vm0, %v3295_v15  ;;  %v1606_v32 = vrot.slane %v1605_v23, 4  ;;  %v1581_v9 = vadd.f32 %v1580_v60, %v1579_v44  ;;  %v1574_v43 = vadd.f32 %v1573_v5, %v1572_v2 }
  0xcc   : > { %v1598_v1 = vadd.f32 %v3486_v36, %v1556_v59  ;;  %2886 = vmatmul.msk.f32.gmra.mxu1 %vm762_vm0, %v3312_v26  ;;  %2896 = vmatmul.msk.f32.gmra.mxu3 %vm762_vm0, %v3295_v15  ;;  %v1567_v36 = vadd.f32 %v1566_v0, %v1565_v48 }
  0xcd   : > { %v1592_v51 = vrot.slane %v1591_v62, 4  ;;  %v1607_v20 = vadd.f32 %v1606_v32, %v1605_v23  ;;  %v1582_v33 = vrot.slane %v1581_v9, 1  ;;  %v2803_v23 = vld [vmem:[%s3240_s15 + $0x7] ss:$8 sm:$0x3] }
  0xce   : > { %v1599_v6 = vrot.slane %v1598_v1, 4  ;;  %v889_v7 = vpop.f32.mrf.mxu2  ;;  %v1568_v18 = vrot.slane %v1567_v36, 1  ;;  %v647_v41 = vperm.slane %v2803_v23, 0  ;;  %v648_v42 = vperm.slane %v2803_v23, 1 }
  0xcf   : > { %v1593_v11 = vadd.f32 %v1592_v51, %v1591_v62  ;;  %v1668_v12 = vmul.f32 %v3551_v63, %v889_v7  ;;  %v930_v13 = vpop.f32.mrf.mxu3  ;;  %v1608_v39 = vrot.slane %v1607_v20, 2  ;;  %v1583_v45 = vadd.f32 %v1582_v33, %v1581_v9 }
  0xd0   : > { %v1600_v14 = vadd.f32 %v1599_v6, %v1598_v1  ;;  %v1669_v17 = vmul.f32 %v3558_v49, %v930_v13  ;;  %v3562_v19 = vpop.f32.mrf.mxu0  ;;  %v653_v48 = vsub.f32 %v647_v41, %v3250_v4  ;;  %v654_v54 = vsub.f32 %v648_v42, %v3250_v4  ;;  %v2804_v6 = vld [vmem:[%s3248_s18 + $0x7] ss:$8 sm:$0x3] }
  0xd1   : > { %v1594_v21 = vrot.slane %v1593_v11, 2  ;;  %v3564_v22 = vadd.f32 %v1668_v12, %v1666_v46  ;;  %v3566_v24 = vpop.f32.mrf.mxu1  ;;  %v1588_v46 = vadd.f32 %v1587_v34, %v1586_v10  ;;  %v1569_v55 = vadd.f32 %v1568_v18, %v1567_v36 }
  0xd2   : > { %v3568_v29 = vadd.f32 %v1669_v17, %v1667_v50  ;;  %v1601_v38 = vrot.slane %v1600_v14, 2  ;;  %v1609_v58 = vadd.f32 %v1608_v39, %v1607_v20  ;;  %v657_v60 = vand.u32 2147483647, %v653_v48 }
  0xd3   : > { %v1595_v37 = vadd.f32 %v1594_v21, %v1593_v11  ;;  %2889 = vmatmul.msk.f32.gmra.mxu2 %vm762_vm0, %v3309_v25  ;;  %2903 = vmatmul.msk.f32.vlgmr.msrb.gmra.mxu0 %vm762_vm0, %v3276_v56  ;;  %v651_v61 = vsub.f32 %v647_v41, %v3242_v3  ;;  %v658_v62 = vand.u32 2147483647, %v654_v54  ;;  %v1589_v0 = vrot.slane %v1588_v46, 1 }
  0xd4   : > { %2897 = vmatmul.msk.f32.gmra.mxu3 %vm762_vm0, %v3309_v25  ;;  %2911 = vmatmul.msk.f32.vlgmr.msrb.gmra.mxu1 %vm762_vm0, %v3276_v56  ;;  %v1602_v52 = vadd.f32 %v1601_v38, %v1600_v14  ;;  %v661_v1 = vsub.f32 1.0, %v657_v60  ;;  %v1628_v51 = vsel %vm1627_vm1, %v1583_v45, %v1569_v55  ;;  %v652_v9 = vsub.f32 %v648_v42, %v3242_v3 }
  0xd5   : > { %v1596_v40 = vrot.slane %v1595_v37, 1  ;;  %v655_v32 = vand.u32 2147483647, %v651_v61  ;;  %v662_v7 = vsub.f32 1.0, %v658_v62  ;;  %v1575_v11 = vrot.slane %v1574_v43, 1 }
  0xd6   : > { %v892_v44 = vpop.f32.mrf.mxu2  ;;  %v1603_v2 = vrot.slane %v1602_v52, 1  ;;  %v1610_v12 = vrot.slane %v1609_v58, 1  ;;  %v665_v13 = vmax.f32 %v661_v1, 0.0  ;;  %v668_v36 = vperm.slane %v2804_v6, 0 }
  0xd7   : > { %v1670_v8 = vmul.f32 %v3531_v35, %v892_v44  ;;  %v933_v47 = vpop.f32.mrf.mxu3  ;;  %v1597_v50 = vadd.f32 %v1596_v40, %v1595_v37  ;;  %v666_v17 = vmax.f32 %v662_v7, 0.0  ;;  %v669_v20 = vperm.slane %v2804_v6, 1 }
  0xd8   : > { %v1671_v56 = vmul.f32 %v3539_v31, %v933_v47  ;;  %v3582_v53 = vpop.f32.mrf.mxu0  ;;  %v1590_v21 = vadd.f32 %v1589_v0, %v1588_v46  ;;  %v674_v34 = vmul.f32 %v668_v36, %v665_v13  ;;  %v1604_v37 = vadd.f32 %v1603_v2, %v1602_v52  ;;  %v3619_v52 = vld [vmem:[%s3240_s15 + $0x10] ss:$8 sm:$0x3]  ;;  %s3078_s15 = scalar_lea.hbm %s4297_s6, 32 }
  0xd9   : > { %v3585_v59 = vpop.f32.mrf.mxu1  ;;  %v1630_v10 = vsel %vm1629_vm2, %v1597_v50, %v1628_v51  ;;  %v675_v23 = vmul.f32 %v669_v20, %v666_v17  ;;  %v656_v39 = vand.u32 2147483647, %v652_v9  ;;  %v1576_v40 = vadd.f32 %v1575_v11, %v1574_v43  ;;  %v3651_v13 = vld [vmem:[%s3248_s18 + $0x10] ss:$8 sm:$0x3]  ;;  %s2970_s18 = sshll.u32 %s3128_s24, 4 }
  0xda   : > { %1375 = vmatpush.msra.mxu2 %v674_v34  ;;  %v1611_v45 = vadd.f32 %v1610_v12, %v1609_v58  ;;  %v685_v54 = vperm.slane %v3619_v52, 0  ;;  %v686_v55 = vperm.slane %v3619_v52, 1  ;;  %v1613_v61 = vrot.slane %v3524_v30, 4  ;;  %s2648_s27 = scalar_lea.hbm %s4297_s6, %s2970_s18 }
  0xdb   : > { %2890 = vmatmul.msk.f32.gmra.mxu2 %vm762_vm0, %v3323_v27  ;;  %2904 = vmatmul.msk.f32.gmra.mxu0 %vm762_vm0, %v3295_v15  ;;  %v660_v47 = vsub.f32 1.0, %v656_v39  ;;  %v1633_v43 = vsel %vm1627_vm1, %v1590_v21, %v1576_v40  ;;  %v1683_v11 = vrot.slane %v3564_v22, 4  ;;  %v1690_v12 = vrot.slane %v3568_v29, 4  ;;  %s2652_s8 = sshll.u32 %s2648_s27, 4  ;;  %s2653_s8 = int_to_ptr.hbm [resolvable:$true] %s2652_s8 }
  0xdc   : > { %2898 = vmatmul.msk.f32.gmra.mxu3 %vm762_vm0, %v3323_v27  ;;  %2912 = vmatmul.msk.f32.gmra.mxu1 %vm762_vm0, %v3295_v15  ;;  %v659_v15 = vsub.f32 1.0, %v655_v32  ;;  %v3611_v50 = vsel %vm1631_vm3, %v1611_v45, %v1630_v10  ;;  %v692_v51 = vsub.f32 %v686_v55, %v3250_v4  ;;  %v1614_v9 = vadd.f32 %v1613_v61, %v3524_v30  ;;  %s3072_s12 = sshra.s32 %s2653_s8, 4  ;;  %s3073_s12 = int_to_ptr.hbm [resolvable:$true] %s3072_s12 }
  0xdd   : > { %1416 = vmatpush.msra.mxu3 %v675_v23  ;;  %4301 = vst [vmem:[#allocation7_spill] sm:$0xff] %v3611_v50  ;;  %v706_v17 = vperm.slane %v3651_v13, 0  ;;  %s3074_s24 = scalar_lea.hbm %s3073_s12, 16  ;;  %p3079_p1 = scmp.lt.s32.totalorder %s3073_s12, %s4297_s6 }
  0xde   : > { %v895_v14 = vpop.f32.mrf.mxu2  ;;  %v663_v44 = vmax.f32 %v659_v15, 0.0  ;;  %v696_v7 = vand.u32 2147483647, %v692_v51  ;;  %v1615_v34 = vrot.slane %v1614_v9, 2  ;;  %p3075_p12 = scmp.ne.s32.totalorder %s3073_s12, %s3074_s24  ;;  %p3080_p2 = scmp.lt.s32.totalorder %s3078_s15, %s3074_s24 }
  0xdf   : > { %v1672_v5 = vmul.f32 %v3551_v63, %v895_v14  ;;  %v936_v33 = vpop.f32.mrf.mxu3 }
  0xe0   : > { %v1673_v18 = vmul.f32 %v3558_v49, %v936_v33  ;;  %v3602_v38 = vpop.f32.mrf.mxu0  ;;  %v672_v48 = vmul.f32 %v668_v36, %v663_v44  ;;  %v700_v30 = vsub.f32 1.0, %v696_v7  ;;  %v707_v33 = vperm.slane %v3651_v13, 1  ;;  %p3076_p13 = pnand %p3075_p12, %p3214_p4  ;;  %p3081_p3 = por %p3080_p2, %p3079_p1 }
  0xe1   : > { %v1696_v41 = vadd.f32 %v1672_v5, %v1670_v8  ;;  %v3604_v42 = vpop.f32.mrf.mxu1  ;;  %v664_v8 = vmax.f32 %v660_v47, 0.0 }
  0xe2   : > { %v1703_v46 = vadd.f32 %v1673_v18, %v1671_v56  ;;  %v3622_v56 = vsel %vm1629_vm2, %v1604_v37, %v1633_v43  ;;  %1376 = vmatpush.msra.mxu2 %v672_v48  ;;  %v704_v5 = vmax.f32 %v700_v30, 0.0  ;;  %v1684_v37 = vadd.f32 %v1683_v11, %v3564_v22  ;;  %p3077_p0 = pneg %p3076_p13 }
  0xe3   : > { %2891 = vmatmul.msk.f32.gmra.mxu2 %vm762_vm0, %v3334_v28  ;;  %2905 = vmatmul.msk.f32.gmra.mxu0 %vm762_vm0, %v3309_v25  ;;  %v673_v60 = vmul.f32 %v669_v20, %v664_v8  ;;  %v1697_v36 = vrot.slane %v1696_v41, 4  ;;  %v1691_v18 = vadd.f32 %v1690_v12, %v3568_v29  ;;  %v2953_v8 = vld [vmem:[%s3433_s11 + $0x3] ss:$8 sm:$0x3] }
  0xe4   : > { %2899 = vmatmul.msk.f32.gmra.mxu3 %vm762_vm0, %v3334_v28  ;;  %2913 = vmatmul.msk.f32.gmra.mxu1 %vm762_vm0, %v3309_v25  ;;  %v691_v25 = vsub.f32 %v685_v54, %v3250_v4  ;;  %v1704_v20 = vrot.slane %v1703_v46, 4  ;;  %v713_v40 = vmul.f32 %v707_v33, %v704_v5  ;;  %v1685_v29 = vrot.slane %v1684_v37, 2  ;;  %p3082_p5 = pnand %p3081_p3, %p3077_p0 }
  0xe5   : > { %1417 = vmatpush.msra.mxu3 %v673_v60  ;;  %v1698_v44 = vadd.f32 %v1697_v36, %v1696_v41  ;;  %v1692_v60 = vrot.slane %v1691_v18, 2 }
  0xe6   : > { %v898_v58 = vpop.f32.mrf.mxu2  ;;  %v695_v6 = vand.u32 2147483647, %v691_v25  ;;  %v1705_v48 = vadd.f32 %v1704_v20, %v1703_v46  ;;  %1498 = vmatpush.msra.mxu1 %v713_v40  ;;  %v1876_v46 = vperm.slane %v2953_v8, 0  ;;  %v3677_v7 = vadd.f32 %v1685_v29, %v1684_v37  ;;  %v3690_v20 = vld [vmem:[%s3433_s11 + $0x4] ss:$8 sm:$0x3] }
  0xe7   : > { %v1674_v62 = vmul.f32 %v3531_v35, %v898_v58  ;;  %v939_v0 = vpop.f32.mrf.mxu3  ;;  %v1616_v58 = vadd.f32 %v1615_v34, %v1614_v9  ;;  %v1699_v41 = vrot.slane %v1698_v44, 2  ;;  %v3679_v9 = vadd.f32 %v1692_v60, %v1691_v18 }
  0xe8   : > { %v1675_v1 = vmul.f32 %v3539_v31, %v939_v0  ;;  %v3632_v32 = vpop.f32.mrf.mxu0  ;;  %v699_v10 = vsub.f32 1.0, %v695_v6  ;;  %v1880_v30 = vsub.f32 %v1876_v46, %v3242_v3  ;;  %v1687_v34 = vrot.slane %v3677_v7, 1 }
  0xe9   : > { %v3637_v2 = vpop.f32.mrf.mxu1  ;;  %v1617_v25 = vrot.slane %v1616_v58, 1  ;;  %v1882_v52 = vsub.f32 %v1876_v46, %v3250_v4 }
  0xea   : > { %v703_v14 = vmax.f32 %v699_v10, 0.0  ;;  %v1884_v18 = vand.u32 2147483647, %v1880_v30 }
  0xeb   : > { %2892 = vmatmul.msk.f32.gmra.mxu2 %vm762_vm0, %v3279_v57  ;;  %2906 = vmatmul.msk.f32.gmra.mxu0 %vm762_vm0, %v3323_v27  ;;  %v3702_v5 = vadd.f32 %v1617_v25, %v1616_v58 }
  0xec   : > { %2900 = vmatmul.msk.f32.gmra.mxu3 %vm762_vm0, %v3279_v57  ;;  %2914 = vmatmul.msk.f32.gmra.mxu1 %vm762_vm0, %v3323_v27  ;;  %v712_v27 = vmul.f32 %v706_v17, %v703_v14  ;;  %v1877_v14 = vperm.slane %v2953_v8, 1  ;;  %v1888_v25 = vsub.f32 1.0, %v1884_v18 }
  0xee   : > { %v901_v21 = vpop.f32.mrf.mxu2  ;;  %1457 = vmatpush.msra.mxu0 %v712_v27  ;;  %v690_v27 = vsub.f32 %v686_v55, %v3242_v3 }
  0xef   : > { %v1676_v15 = vmul.f32 %v3551_v63, %v901_v21  ;;  %v942_v57 = vpop.f32.mrf.mxu3  ;;  %v3695_v21 = vld [vmem:[%s3272_s28 + $0x28] sm:$0xff] }
  0xf0   : > { %v1677_v23 = vmul.f32 %v3558_v49, %v942_v57  ;;  %v3661_v39 = vpop.f32.mrf.mxu0 }
  0xf1   : > { %v1710_v45 = vadd.f32 %v1676_v15, %v1674_v62  ;;  %v3665_v47 = vpop.f32.mrf.mxu1  ;;  %v1706_v62 = vrot.slane %v1705_v48, 2  ;;  %v1694_v15 = vrot.slane %v3679_v9, 1 }
  0xf2   : > { %v1717_v43 = vadd.f32 %v1677_v23, %v1675_v1 }
  0xf3   : > { %v1711_v22 = vrot.slane %v1710_v45, 4  ;;  %2893 = vmatmul.msk.f32.gmra.mxu2 %vm762_vm0, %v3298_v16  ;;  %2907 = vmatmul.msk.f32.gmra.mxu0 %vm762_vm0, %v3334_v28  ;;  %v3687_v36 = vadd.f32 %v1706_v62, %v1705_v48  ;;  %v4298_v48 = vperm.slane %v3690_v20, 1 }
  0xf4   : > { %v1718_v61 = vrot.slane %v1717_v43, 4  ;;  %2901 = vmatmul.msk.f32.gmra.mxu3 %vm762_vm0, %v3298_v16  ;;  %2915 = vmatmul.msk.f32.gmra.mxu1 %vm762_vm0, %v3334_v28  ;;  %v1700_v28 = vadd.f32 %v1699_v41, %v1698_v44 }
  0xf5   : > { %v1712_v1 = vadd.f32 %v1711_v22, %v1710_v45  ;;  %v1708_v40 = vrot.slane %v3687_v36, 1  ;;  %v1881_v45 = vsub.f32 %v1877_v14, %v3242_v3 }
  0xf6   : > { %v904_v0 = vpop.f32.mrf.mxu2  ;;  %v1719_v10 = vadd.f32 %v1718_v61, %v1717_v43  ;;  %v1701_v37 = vrot.slane %v1700_v28, 1  ;;  %v1883_v61 = vsub.f32 %v1877_v14, %v3250_v4  ;;  %v3732_v14 = vld [vmem:[%s3272_s28 + $0x30] sm:$0xff] }
  0xf7   : > { %v1678_v51 = vmul.f32 %v3531_v35, %v904_v0  ;;  %v945_v6 = vpop.f32.mrf.mxu3  ;;  %v1713_v35 = vrot.slane %v1712_v1, 2 }
  0xf8   : > { %v1679_v16 = vmul.f32 %v3539_v31, %v945_v6  ;;  %v3682_v11 = vpop.f32.mrf.mxu0  ;;  %v689_v31 = vsub.f32 %v685_v54, %v3242_v3  ;;  %v1720_v57 = vrot.slane %v1719_v10, 2  ;;  %v1991_v54 = vperm.slane %v3690_v20, 0 }
  0xf9   : > { %v3684_v12 = vpop.f32.mrf.mxu1  ;;  %v1714_v43 = vadd.f32 %v1713_v35, %v1712_v1  ;;  %v1885_v6 = vand.u32 2147483647, %v1881_v45  ;;  %v1887_v18 = vand.u32 2147483647, %v1883_v61  ;;  %v1702_v45 = vadd.f32 %v1701_v37, %v1700_v28 }
  0xfa   : > { %v693_v23 = vand.u32 2147483647, %v689_v31  ;;  %v1721_v22 = vadd.f32 %v1720_v57, %v1719_v10  ;;  %v1886_v31 = vand.u32 2147483647, %v1882_v52  ;;  %v3752_v28 = vmax.f32 %v1888_v25, 0.0 }
  0xfb   : > { %2894 = vmatmul.msk.f32.gmra.mxu2 %vm762_vm0, %v3312_v26  ;;  %2908 = vmatmul.msk.f32.gmra.mxu0 %vm762_vm0, %v3695_v21  ;;  %v1715_v30 = vrot.slane %v1714_v43, 1  ;;  %v4303_v25 = vperm.slane %v3690_v20, 1 }
  0xfc   : > { %2902 = vmatmul.msk.f32.gmra.mxu3 %vm762_vm0, %v3312_v26  ;;  %2916 = vmatmul.msk.f32.gmra.mxu1 %vm762_vm0, %v3695_v21  ;;  %v694_v26 = vand.u32 2147483647, %v690_v27  ;;  %v697_v55 = vsub.f32 1.0, %v693_v23  ;;  %v1722_v57 = vrot.slane %v1721_v22, 1  ;;  %v1890_v13 = vsub.f32 1.0, %v1886_v31 }
  0xfe   : > { %v907_v44 = vpop.f32.mrf.mxu2  ;;  %v698_v41 = vsub.f32 1.0, %v694_v26  ;;  %v701_v46 = vmax.f32 %v697_v55, 0.0  ;;  %v1889_v55 = vsub.f32 1.0, %v1885_v6 }
  0xff   : > { %v1680_v8 = vmul.f32 %v3551_v63, %v907_v44  ;;  %v948_v58 = vpop.f32.mrf.mxu3  ;;  %v1995_v63 = vsub.f32 %v1991_v54, %v3242_v3  ;;  %v1688_v44 = vadd.f32 %v1687_v34, %v3677_v7 }
 0x100   : > { %v1681_v29 = vmul.f32 %v3558_v49, %v948_v58  ;;  %v3720_v60 = vpop.f32.mrf.mxu0  ;;  %v1996_v49 = vsub.f32 %v4298_v48, %v3242_v3  ;;  %v702_v10 = vmax.f32 %v698_v41, 0.0  ;;  %v1709_v41 = vadd.f32 %v1708_v40, %v3687_v36 }
 0x101   : > { %v1724_v62 = vadd.f32 %v1680_v8, %v1678_v51  ;;  %v3723_v0 = vpop.f32.mrf.mxu1  ;;  %v3737_v51 = vld [vmem:[%s3272_s28] sm:$0xff]  ;;  %v1999_v8 = vand.u32 2147483647, %v1995_v63  ;;  %v1997_v36 = vsub.f32 %v1991_v54, %v3250_v4  ;;  %v1746_v40 = vsel %vm1627_vm1, %v1702_v45, %v1688_v44 }
 0x102   : > { %4302 = vst [vmem:[#allocation8_spill] sm:$0xff] %v3723_v0  ;;  %v1731_v1 = vadd.f32 %v1681_v29, %v1679_v16  ;;  %v710_v16 = vmul.f32 %v706_v17, %v701_v46  ;;  %v711_v23 = vmul.f32 %v707_v33, %v702_v10  ;;  %v1695_v17 = vadd.f32 %v1694_v15, %v3679_v9  ;;  %v3054_v10 = vld [vmem:[%s3272_s28 + $0x8] sm:$0xff] }
 0x103   : > { %v1725_v35 = vrot.slane %v1724_v62, 4  ;;  %2909 = vmatmul.msk.f32.gmra.mxu0 %vm762_vm0, %v3732_v14  ;;  %2919 = vmatmul.msk.f32.vlgmr.msra.gmra.mxu2 %vm762_vm0, %v3737_v51  ;;  %v2000_v29 = vand.u32 2147483647, %v1996_v49  ;;  %v1716_v46 = vadd.f32 %v1715_v30, %v1714_v43  ;;  %v1723_v33 = vadd.f32 %v1722_v57, %v1721_v22  ;;  %v3768_v49 = vld [vmem:[%s3272_s28 + $0x38] sm:$0xff] }
 0x104   : > { %v1732_v27 = vrot.slane %v1731_v1, 4  ;;  %2917 = vmatmul.msk.f32.gmra.mxu1 %vm762_vm0, %v3732_v14  ;;  %2927 = vmatmul.msk.f32.vlgmr.msra.gmra.mxu3 %vm762_vm0, %v3737_v51  ;;  %v1891_v9 = vsub.f32 1.0, %v1887_v18  ;;  %v3762_v63 = vmax.f32 %v1889_v55, 0.0  ;;  %v3774_v54 = vmax.f32 %v1890_v13, 0.0 }
 0x105   : > { %v1726_v26 = vadd.f32 %v1725_v35, %v1724_v62  ;;  %1458 = vmatpush.msra.mxu0 %v710_v16  ;;  %1499 = vmatpush.msra.mxu1 %v711_v23  ;;  %v2003_v62 = vsub.f32 1.0, %v1999_v8  ;;  %v2004_v22 = vsub.f32 1.0, %v2000_v29  ;;  %v1747_v30 = vsel %vm1629_vm2, %v1716_v46, %v1746_v40 }
 0x106   : > { %v1733_v58 = vadd.f32 %v1732_v27, %v1731_v1  ;;  %v1050_v52 = vpop.f32.mrf.mxu2  ;;  %v1998_v1 = vsub.f32 %v4303_v25, %v3250_v4  ;;  %v1749_v35 = vsel %vm1627_vm1, %v1709_v41, %v1695_v17  ;;  %v3781_v20 = vmax.f32 %v1891_v9, 0.0 }
 0x107   : > { %v1727_v61 = vrot.slane %v1726_v26, 2  ;;  %v1091_v48 = vpop.f32.mrf.mxu3  ;;  %v1750_v16 = vsel %vm1629_vm2, %v1723_v33, %v1749_v35  ;;  %v3787_v57 = vsel %vm1631_vm3, %v3702_v5, %v3622_v56  ;;  %v1896_v27 = vmul.f32 %v3752_v28, %v1050_v52 }
 0x108   : > { %v1734_v7 = vrot.slane %v1733_v58, 2  ;;  %v3754_v34 = vpop.f32.mrf.mxu0  ;;  %4304 = vst [vmem:[#allocation9_spill] sm:$0xff] %v3787_v57  ;;  %v3790_v18 = vmax.f32 %v2003_v62, 0.0  ;;  %v2001_v23 = vand.u32 2147483647, %v1997_v36  ;;  %v1897_v45 = vmul.f32 %v3762_v63, %v1091_v48 }
 0x109   : > { %v1728_v15 = vadd.f32 %v1727_v61, %v1726_v26  ;;  %v3756_v37 = vpop.f32.mrf.mxu1  ;;  %v3793_v8 = vmax.f32 %v2004_v22, 0.0  ;;  %v2002_v17 = vand.u32 2147483647, %v1998_v1 }
 0x10a   : > { %v1735_v43 = vadd.f32 %v1734_v7, %v1733_v58  ;;  %v2005_v13 = vsub.f32 1.0, %v2001_v23 }
 0x10b   : > { %v1729_v6 = vrot.slane %v1728_v15, 1  ;;  %2910 = vmatmul.msk.f32.gmra.mxu0 %vm762_vm0, %v3768_v49  ;;  %2920 = vmatmul.msk.f32.gmra.mxu2 %vm762_vm0, %v3054_v10  ;;  %v2006_v9 = vsub.f32 1.0, %v2002_v17 }
 0x10c   : > { %v1736_v31 = vrot.slane %v1735_v43, 1  ;;  %2918 = vmatmul.msk.f32.gmra.mxu1 %vm762_vm0, %v3768_v49  ;;  %2928 = vmatmul.msk.f32.gmra.mxu3 %vm762_vm0, %v3054_v10  ;;  %v3812_v62 = vmax.f32 %v2005_v13, 0.0 }
 0x10d   : > { %v1730_v44 = vadd.f32 %v1729_v6, %v1728_v15  ;;  %v3055_v15 = vld [vmem:[%s3272_s28 + $0x10] sm:$0xff]  ;;  %v3814_v40 = vmax.f32 %v2006_v9, 0.0 }
 0x10e   : > { %v1053_v26 = vpop.f32.mrf.mxu2  ;;  %v1737_v58 = vadd.f32 %v1736_v31, %v1735_v43 }
 0x10f   : > { %v1898_v55 = vmul.f32 %v3774_v54, %v1053_v26  ;;  %v1094_v29 = vpop.f32.mrf.mxu3  ;;  %v3797_v56 = vsel %vm1631_vm3, %v1730_v44, %v1747_v30 }
 0x110   : > { %4305 = vst [vmem:[#allocation10_spill] sm:$0xff] %v3797_v56  ;;  %v1899_v5 = vmul.f32 %v3781_v20, %v1094_v29  ;;  %v1132_v52 = vpop.f32.mrf.mxu0  ;;  %v3801_v41 = vsel %vm1631_vm3, %v1737_v58, %v1750_v16  ;;  %v3056_v16 = vld [vmem:[%s3272_s28 + $0x18] sm:$0xff] }
 0x111   : > { %4306 = vst [vmem:[#allocation11_spill] sm:$0xff] %v3801_v41  ;;  %v1912_v46 = vadd.f32 %v1898_v55, %v1896_v27  ;;  %v2011_v48 = vmul.f32 %v3790_v18, %v1132_v52  ;;  %v1173_v61 = vpop.f32.mrf.mxu1 }
 0x112   : > { %v1919_v33 = vadd.f32 %v1899_v5, %v1897_v45  ;;  %v2012_v7 = vmul.f32 %v3793_v8, %v1173_v61 }
 0x113   : > { %2921 = vmatmul.msk.f32.gmra.mxu2 %vm762_vm0, %v3055_v15  ;;  %2935 = vmatmul.msk.f32.vlgmr.msra.gmra.mxu0 %vm762_vm0, %v3737_v51  ;;  %v1913_v27 = vrot.slane %v1912_v46, 4 }
 0x114   : > { %2929 = vmatmul.msk.f32.gmra.mxu3 %vm762_vm0, %v3055_v15  ;;  %2943 = vmatmul.msk.f32.vlgmr.msra.gmra.mxu1 %vm762_vm0, %v3737_v51  ;;  %v1920_v23 = vrot.slane %v1919_v33, 4 }
 0x115   : > { %v1914_v61 = vadd.f32 %v1913_v27, %v1912_v46 }
 0x116   : > { %v1056_v36 = vpop.f32.mrf.mxu2  ;;  %v1921_v13 = vadd.f32 %v1920_v23, %v1919_v33 }
 0x117   : > { %v1900_v43 = vmul.f32 %v3752_v28, %v1056_v36  ;;  %v1097_v22 = vpop.f32.mrf.mxu3  ;;  %v1915_v33 = vrot.slane %v1914_v61, 2 }
 0x118   : > { %v1901_v25 = vmul.f32 %v3762_v63, %v1097_v22  ;;  %v1135_v1 = vpop.f32.mrf.mxu0  ;;  %v3830_v22 = vld [vmem:[%s3272_s28 + $0x20] sm:$0xff]  ;;  %s336_s28 = scalar_lea.vmem [#allocation4], %s2782_s17 }
 0x119   : > { %v2013_v6 = vmul.f32 %v3812_v62, %v1135_v1  ;;  %v1176_v30 = vpop.f32.mrf.mxu1  ;;  %s2650_s30 = sshll.u32 %s336_s28, 4  ;;  %s2651_s30 = int_to_ptr.vmem [resolvable:$true] %s2650_s30 }
 0x11a   : > { %v2014_v35 = vmul.f32 %v3814_v40, %v1176_v30 }
 0x11b   : > { %v2027_v31 = vadd.f32 %v2013_v6, %v2011_v48  ;;  %2922 = vmatmul.msk.f32.gmra.mxu2 %vm762_vm0, %v3056_v16  ;;  %2936 = vmatmul.msk.f32.gmra.mxu0 %vm762_vm0, %v3054_v10 }
 0x11c   : > { %v2034_v51 = vadd.f32 %v2014_v35, %v2012_v7  ;;  %2930 = vmatmul.msk.f32.gmra.mxu3 %vm762_vm0, %v3056_v16  ;;  %2944 = vmatmul.msk.f32.gmra.mxu1 %vm762_vm0, %v3054_v10 }
 0x11d   : > { %v2028_v45 = vrot.slane %v2027_v31, 4 }
 0x11e   : > { %v1059_v44 = vpop.f32.mrf.mxu2  ;;  %v2035_v26 = vrot.slane %v2034_v51, 4 }
 0x11f   : > { %v1902_v17 = vmul.f32 %v3774_v54, %v1059_v44  ;;  %v1100_v58 = vpop.f32.mrf.mxu3  ;;  %v2029_v9 = vadd.f32 %v2028_v45, %v2027_v31 }
 0x120   : > { %v1903_v55 = vmul.f32 %v3781_v20, %v1100_v58  ;;  %v1138_v29 = vpop.f32.mrf.mxu0  ;;  %v2036_v36 = vadd.f32 %v2035_v26, %v2034_v51 }
 0x121   : > { %v1926_v5 = vadd.f32 %v1902_v17, %v1900_v43  ;;  %v2015_v52 = vmul.f32 %v3790_v18, %v1138_v29  ;;  %v1179_v48 = vpop.f32.mrf.mxu1  ;;  %v1922_v43 = vrot.slane %v1921_v13, 2  ;;  %v2030_v6 = vrot.slane %v2029_v9, 2 }
 0x122   : > { %v1933_v7 = vadd.f32 %v1903_v55, %v1901_v25  ;;  %v2016_v10 = vmul.f32 %v3793_v8, %v1179_v48  ;;  %v2037_v30 = vrot.slane %v2036_v36, 2  ;;  %v1916_v17 = vadd.f32 %v1915_v33, %v1914_v61 }
 0x123   : > { %2923 = vmatmul.msk.f32.gmra.mxu2 %vm762_vm0, %v3830_v22  ;;  %2937 = vmatmul.msk.f32.gmra.mxu0 %vm762_vm0, %v3055_v15  ;;  %v1927_v1 = vrot.slane %v1926_v5, 4  ;;  %v2031_v55 = vadd.f32 %v2030_v6, %v2029_v9 }
 0x124   : > { %2931 = vmatmul.msk.f32.gmra.mxu3 %vm762_vm0, %v3830_v22  ;;  %2945 = vmatmul.msk.f32.gmra.mxu1 %vm762_vm0, %v3055_v15  ;;  %v1934_v46 = vrot.slane %v1933_v7, 4  ;;  %v1923_v15 = vadd.f32 %v1922_v43, %v1921_v13  ;;  %v2038_v29 = vadd.f32 %v2037_v30, %v2036_v36  ;;  %v3849_v13 = vld [vmem:[%s3433_s11 + $0x5] ss:$8 sm:$0x3] }
 0x125   : > { %v1928_v51 = vadd.f32 %v1927_v1, %v1926_v5  ;;  %v2032_v33 = vrot.slane %v2031_v55, 1 }
 0x126   : > { %v1062_v25 = vpop.f32.mrf.mxu2  ;;  %v1935_v44 = vadd.f32 %v1934_v46, %v1933_v7  ;;  %v1917_v46 = vrot.slane %v1916_v17, 1  ;;  %v1924_v9 = vrot.slane %v1923_v15, 1  ;;  %v2039_v43 = vrot.slane %v2038_v29, 1 }
 0x127   : > { %v1904_v35 = vmul.f32 %v3752_v28, %v1062_v25  ;;  %v1103_v31 = vpop.f32.mrf.mxu3  ;;  %v1929_v5 = vrot.slane %v1928_v51, 2 }
 0x128   : > { %v1905_v27 = vmul.f32 %v3762_v63, %v1103_v31  ;;  %v1141_v23 = vpop.f32.mrf.mxu0  ;;  %v1936_v7 = vrot.slane %v1935_v44, 2 }
 0x129   : > { %v2017_v45 = vmul.f32 %v3812_v62, %v1141_v23  ;;  %v1182_v26 = vpop.f32.mrf.mxu1 }
 0x12a   : > { %v2018_v58 = vmul.f32 %v3814_v40, %v1182_v26  ;;  %v1937_v26 = vadd.f32 %v1936_v7, %v1935_v44 }
 0x12b   : > { %v2041_v48 = vadd.f32 %v2017_v45, %v2015_v52  ;;  %2924 = vmatmul.msk.f32.gmra.mxu2 %vm762_vm0, %v3695_v21  ;;  %2938 = vmatmul.msk.f32.gmra.mxu0 %vm762_vm0, %v3056_v16 }
 0x12c   : > { %v2048_v1 = vadd.f32 %v2018_v58, %v2016_v10  ;;  %2932 = vmatmul.msk.f32.gmra.mxu3 %vm762_vm0, %v3695_v21  ;;  %2946 = vmatmul.msk.f32.gmra.mxu1 %vm762_vm0, %v3056_v16  ;;  %v1930_v10 = vadd.f32 %v1929_v5, %v1928_v51  ;;  %v2106_v16 = vperm.slane %v3849_v13, 0  ;;  %v1925_v51 = vadd.f32 %v1924_v9, %v1923_v15 }
 0x12d   : > { %v2042_v61 = vrot.slane %v2041_v48, 4 }
 0x12e   : > { %v2049_v36 = vrot.slane %v2048_v1, 4  ;;  %v1065_v52 = vpop.f32.mrf.mxu2  ;;  %v1931_v44 = vrot.slane %v1930_v10, 1  ;;  %v2110_v15 = vsub.f32 %v2106_v16, %v3242_v3 }
 0x12f   : > { %v2043_v25 = vadd.f32 %v2042_v61, %v2041_v48  ;;  %v1906_v6 = vmul.f32 %v3774_v54, %v1065_v52  ;;  %v1106_v30 = vpop.f32.mrf.mxu3  ;;  %v2107_v61 = vperm.slane %v3849_v13, 1  ;;  %v1918_v52 = vadd.f32 %v1917_v46, %v1916_v17 }
 0x130   : > { %v2050_v31 = vadd.f32 %v2049_v36, %v2048_v1  ;;  %v1907_v23 = vmul.f32 %v3781_v20, %v1106_v30  ;;  %v1144_v45 = vpop.f32.mrf.mxu0  ;;  %v2040_v13 = vadd.f32 %v2039_v43, %v2038_v29 }
 0x131   : > { %v2044_v58 = vrot.slane %v2043_v25, 2  ;;  %v1940_v57 = vadd.f32 %v1906_v6, %v1904_v35  ;;  %v2019_v50 = vmul.f32 %v3790_v18, %v1144_v45  ;;  %v1185_v41 = vpop.f32.mrf.mxu1  ;;  %v2033_v35 = vadd.f32 %v2032_v33, %v2031_v55 }
 0x132   : > { %v2051_v56 = vrot.slane %v2050_v31, 2  ;;  %v1947_v0 = vadd.f32 %v1907_v23, %v1905_v27  ;;  %v2020_v48 = vmul.f32 %v3793_v8, %v1185_v41  ;;  %v1938_v41 = vrot.slane %v1937_v26, 1 }
 0x133   : > { %v2045_v5 = vadd.f32 %v2044_v58, %v2043_v25  ;;  %v1941_v1 = vrot.slane %v1940_v57, 4  ;;  %2925 = vmatmul.msk.f32.gmra.mxu2 %vm762_vm0, %v3732_v14  ;;  %2939 = vmatmul.msk.f32.gmra.mxu0 %vm762_vm0, %v3830_v22  ;;  %v2111_v55 = vsub.f32 %v2107_v61, %v3242_v3 }
 0x134   : > { %v2052_v7 = vadd.f32 %v2051_v56, %v2050_v31  ;;  %v1948_v36 = vrot.slane %v1947_v0, 4  ;;  %2933 = vmatmul.msk.f32.gmra.mxu3 %vm762_vm0, %v3732_v14  ;;  %2947 = vmatmul.msk.f32.gmra.mxu1 %vm762_vm0, %v3830_v22  ;;  %v3869_v31 = vsub.f32 %v2106_v16, %v3250_v4  ;;  %v1932_v22 = vadd.f32 %v1931_v44, %v1930_v10 }
 0x135   : > { %v2046_v27 = vrot.slane %v2045_v5, 1  ;;  %v1942_v17 = vadd.f32 %v1941_v1, %v1940_v57  ;;  %v1939_v43 = vadd.f32 %v1938_v41, %v1937_v26 }
 0x136   : > { %v2053_v46 = vrot.slane %v2052_v7, 1  ;;  %v1949_v9 = vadd.f32 %v1948_v36, %v1947_v0  ;;  %v1068_v25 = vpop.f32.mrf.mxu2 }
 0x137   : > { %v2047_v33 = vadd.f32 %v2046_v27, %v2045_v5  ;;  %v1943_v56 = vrot.slane %v1942_v17, 2  ;;  %v1908_v6 = vmul.f32 %v3752_v28, %v1068_v25  ;;  %v1109_v30 = vpop.f32.mrf.mxu3  ;;  %v2114_v5 = vand.u32 2147483647, %v2110_v15  ;;  %v3876_v25 = vld [vmem:[%s3433_s11 + $0x6] ss:$8 sm:$0x3] }
 0x138   : > { %v2054_v23 = vadd.f32 %v2053_v46, %v2052_v7  ;;  %v1950_v57 = vrot.slane %v1949_v9, 2  ;;  %v1909_v45 = vmul.f32 %v3762_v63, %v1109_v30  ;;  %v1147_v29 = vpop.f32.mrf.mxu0  ;;  %v2113_v27 = vsub.f32 %v2107_v61, %v3250_v4 }
 0x139   : > { %v1944_v0 = vadd.f32 %v1943_v56, %v1942_v17  ;;  %v2021_v58 = vmul.f32 %v3812_v62, %v1147_v29  ;;  %v1188_v1 = vpop.f32.mrf.mxu1  ;;  %v3879_v10 = vsel %vm1627_vm1, %v2047_v33, %v2033_v35  ;;  %v2115_v63 = vand.u32 2147483647, %v2111_v55 }
 0x13a   : > { %v1951_v36 = vadd.f32 %v1950_v57, %v1949_v9  ;;  %v2022_v28 = vmul.f32 %v3814_v40, %v1188_v1  ;;  %v3886_v26 = vsel %vm1627_vm1, %v2054_v23, %v2040_v13  ;;  %v1976_v61 = vsel %vm1627_vm1, %v1932_v22, %v1918_v52 }
 0x13b   : > { %v1945_v16 = vrot.slane %v1944_v0, 1  ;;  %v2055_v44 = vadd.f32 %v2021_v58, %v2019_v50  ;;  %2926 = vmatmul.msk.f32.gmra.mxu2 %vm762_vm0, %v3768_v49  ;;  %2940 = vmatmul.msk.f32.gmra.mxu0 %vm762_vm0, %v3695_v21  ;;  %v2116_v50 = vand.u32 2147483647, %v3869_v31  ;;  %v2221_v15 = vperm.slane %v3876_v25, 0 }
 0x13c   : > { %v1952_v7 = vrot.slane %v1951_v36, 1  ;;  %v2062_v41 = vadd.f32 %v2022_v28, %v2020_v48  ;;  %2934 = vmatmul.msk.f32.gmra.mxu3 %vm762_vm0, %v3768_v49  ;;  %2948 = vmatmul.msk.f32.gmra.mxu1 %vm762_vm0, %v3695_v21  ;;  %v1979_v46 = vsel %vm1627_vm1, %v1939_v43, %v1925_v51  ;;  %v2118_v48 = vsub.f32 1.0, %v2114_v5 }
 0x13d   : > { %v1946_v35 = vadd.f32 %v1945_v16, %v1944_v0  ;;  %v2056_v17 = vrot.slane %v2055_v44, 4  ;;  %v2222_v33 = vperm.slane %v3876_v25, 1  ;;  %v2117_v23 = vand.u32 2147483647, %v2113_v27 }
 0x13e   : > { %v1953_v13 = vadd.f32 %v1952_v7, %v1951_v36  ;;  %v2063_v9 = vrot.slane %v2062_v41, 4  ;;  %v1071_v55 = vpop.f32.mrf.mxu2  ;;  %v2119_v29 = vsub.f32 1.0, %v2115_v63  ;;  %v3911_v16 = vmax.f32 %v2118_v48, 0.0 }
 0x13f   : > { %v2057_v56 = vadd.f32 %v2056_v17, %v2055_v44  ;;  %v1910_v30 = vmul.f32 %v3774_v54, %v1071_v55  ;;  %v1112_v21 = vpop.f32.mrf.mxu3  ;;  %v3899_v31 = vsel %vm1629_vm2, %v1946_v35, %v1976_v61  ;;  %v2225_v54 = vsub.f32 %v2221_v15, %v3242_v3 }
 0x140   : > { %v2064_v52 = vadd.f32 %v2063_v9, %v2062_v41  ;;  %v1911_v22 = vmul.f32 %v3781_v20, %v1112_v21  ;;  %v1150_v57 = vpop.f32.mrf.mxu0  ;;  %v3903_v51 = vsel %vm1629_vm2, %v1953_v13, %v1979_v46  ;;  %v2226_v27 = vsub.f32 %v2222_v33, %v3242_v3 }
 0x141   : > { %v2058_v43 = vrot.slane %v2057_v56, 2  ;;  %v1954_v0 = vadd.f32 %v1910_v30, %v1908_v6  ;;  %v2023_v58 = vmul.f32 %v3790_v18, %v1150_v57  ;;  %v1191_v1 = vpop.f32.mrf.mxu1  ;;  %v3915_v18 = vmax.f32 %v2119_v29, 0.0 }
 0x142   : > { %v2065_v5 = vrot.slane %v2064_v52, 2  ;;  %v1961_v36 = vadd.f32 %v1911_v22, %v1909_v45  ;;  %v2024_v28 = vmul.f32 %v3793_v8, %v1191_v1  ;;  %v2120_v7 = vsub.f32 1.0, %v2116_v50 }
 0x143   : > { %v2059_v25 = vadd.f32 %v2058_v43, %v2057_v56  ;;  %v1955_v20 = vrot.slane %v1954_v0, 4  ;;  %2941 = vmatmul.msk.f32.gmra.mxu0 %vm762_vm0, %v3732_v14  ;;  %v2229_v8 = vand.u32 2147483647, %v2225_v54  ;;  %v2121_v17 = vsub.f32 1.0, %v2117_v23 }
 0x144   : > { %v2066_v44 = vadd.f32 %v2065_v5, %v2064_v52  ;;  %v1962_v6 = vrot.slane %v1961_v36, 4  ;;  %2949 = vmatmul.msk.f32.gmra.mxu1 %vm762_vm0, %v3732_v14  ;;  %v2230_v46 = vand.u32 2147483647, %v2226_v27  ;;  %v2227_v56 = vsub.f32 %v2221_v15, %v3250_v4 }
 0x145   : > { %v2060_v63 = vrot.slane %v2059_v25, 1  ;;  %v1956_v45 = vadd.f32 %v1955_v20, %v1954_v0  ;;  %v2228_v50 = vsub.f32 %v2222_v33, %v3250_v4  ;;  %v2233_v23 = vsub.f32 1.0, %v2229_v8 }
 0x146   : > { %v2067_v41 = vrot.slane %v2066_v44, 1  ;;  %v1963_v61 = vadd.f32 %v1962_v6, %v1961_v36  ;;  %v1214_v35 = vpop.f32.mrf.mxu2  ;;  %v2234_v54 = vsub.f32 1.0, %v2230_v46  ;;  %v3929_v33 = vmax.f32 %v2120_v7, 0.0 }
 0x147   : > { %v2061_v13 = vadd.f32 %v2060_v63, %v2059_v25  ;;  %v1957_v9 = vrot.slane %v1956_v45, 2  ;;  %v2126_v55 = vmul.f32 %v3911_v16, %v1214_v35  ;;  %v1255_v48 = vpop.f32.mrf.mxu3  ;;  %v2231_v20 = vand.u32 2147483647, %v2227_v56 }
 0x148   : > { %v2068_v30 = vadd.f32 %v2067_v41, %v2066_v44  ;;  %v1964_v14 = vrot.slane %v1963_v61, 2  ;;  %v2127_v21 = vmul.f32 %v3915_v18, %v1255_v48  ;;  %v1153_v52 = vpop.f32.mrf.mxu0  ;;  %v2232_v63 = vand.u32 2147483647, %v2228_v50 }
 0x149   : > { %v1958_v22 = vadd.f32 %v1957_v9, %v1956_v45  ;;  %v2025_v57 = vmul.f32 %v3812_v62, %v1153_v52  ;;  %v1194_v29 = vpop.f32.mrf.mxu1  ;;  %v2092_v43 = vsel %vm1629_vm2, %v2061_v13, %v3879_v10  ;;  %v3933_v10 = vmax.f32 %v2121_v17, 0.0 }
 0x14a   : > { %v1965_v0 = vadd.f32 %v1964_v14, %v1963_v61  ;;  %v2026_v1 = vmul.f32 %v3814_v40, %v1194_v29  ;;  %v2095_v15 = vsel %vm1629_vm2, %v2068_v30, %v3886_v26  ;;  %v3935_v40 = vmax.f32 %v2233_v23, 0.0 }
 0x14b   : > { %v1959_v5 = vrot.slane %v1958_v22, 1  ;;  %v2069_v36 = vadd.f32 %v2025_v57, %v2023_v58  ;;  %2942 = vmatmul.msk.f32.gmra.mxu0 %vm762_vm0, %v3768_v49  ;;  %v3937_v58 = vmax.f32 %v2234_v54, 0.0  ;;  %v2235_v56 = vsub.f32 1.0, %v2231_v20 }
 0x14c   : > { %v1966_v62 = vrot.slane %v1965_v0, 1  ;;  %v2076_v27 = vadd.f32 %v2026_v1, %v2024_v28  ;;  %2950 = vmatmul.msk.f32.gmra.mxu1 %vm762_vm0, %v3768_v49 }
 0x14d   : > { %v2070_v25 = vrot.slane %v2069_v36, 4  ;;  %v1960_v44 = vadd.f32 %v1959_v5, %v1958_v22  ;;  %v3951_v29 = vmax.f32 %v2235_v56, 0.0 }
 0x14e   : > { %v2077_v26 = vrot.slane %v2076_v27, 4  ;;  %v1217_v6 = vpop.f32.mrf.mxu2  ;;  %v1967_v45 = vadd.f32 %v1966_v62, %v1965_v0 }
 0x14f   : > { %v2071_v7 = vadd.f32 %v2070_v25, %v2069_v36  ;;  %v2128_v8 = vmul.f32 %v3929_v33, %v1217_v6  ;;  %v1258_v28 = vpop.f32.mrf.mxu3  ;;  %v3942_v49 = vsel %vm1631_vm3, %v1960_v44, %v3899_v31  ;;  %v2236_v31 = vsub.f32 1.0, %v2232_v63 }
 0x150   : > { %4307 = vst [vmem:[#allocation12_spill] sm:$0xff] %v3942_v49  ;;  %v2078_v41 = vadd.f32 %v2077_v26, %v2076_v27  ;;  %v2129_v61 = vmul.f32 %v3933_v10, %v1258_v28  ;;  %v1296_v35 = vpop.f32.mrf.mxu0  ;;  %v3947_v17 = vsel %vm1631_vm3, %v1967_v45, %v3903_v51 }
 0x151   : > { %4308 = vst [vmem:[#allocation13_spill] sm:$0xff] %v3947_v17  ;;  %v2072_v46 = vrot.slane %v2071_v7, 2  ;;  %v2142_v13 = vadd.f32 %v2128_v8, %v2126_v55  ;;  %v2241_v9 = vmul.f32 %v3935_v40, %v1296_v35  ;;  %v1337_v48 = vpop.f32.mrf.mxu1  ;;  %v3953_v51 = vmax.f32 %v2236_v31, 0.0 }
 0x152   : > { %v2079_v30 = vrot.slane %v2078_v41, 2  ;;  %v2149_v14 = vadd.f32 %v2129_v61, %v2127_v21  ;;  %v2242_v52 = vmul.f32 %v3937_v58, %v1337_v48 }
 0x153   : > { %v2073_v50 = vadd.f32 %v2072_v46, %v2071_v7  ;;  %v2143_v48 = vrot.slane %v2142_v13, 4 }
 0x154   : > { %v2080_v22 = vadd.f32 %v2079_v30, %v2078_v41 }
 0x155   : > { %v2074_v57 = vrot.slane %v2073_v50, 1 }
 0x156   : > { %v2081_v23 = vrot.slane %v2080_v22, 1  ;;  %v1220_v0 = vpop.f32.mrf.mxu2 }
 0x157   : > { %v2130_v55 = vmul.f32 %v3911_v16, %v1220_v0  ;;  %v1261_v1 = vpop.f32.mrf.mxu3  ;;  %v2075_v54 = vadd.f32 %v2074_v57, %v2073_v50  ;;  %v2144_v50 = vadd.f32 %v2143_v48, %v2142_v13 }
 0x158   : > { %v2131_v5 = vmul.f32 %v3915_v18, %v1261_v1  ;;  %v1299_v36 = vpop.f32.mrf.mxu0  ;;  %v2082_v21 = vadd.f32 %v2081_v23, %v2080_v22 }
 0x159   : > { %v2243_v62 = vmul.f32 %v3951_v29, %v1299_v36  ;;  %v1340_v27 = vpop.f32.mrf.mxu1  ;;  %v3959_v25 = vsel %vm1631_vm3, %v2075_v54, %v2092_v43 }
 0x15a   : > { %4309 = vst [vmem:[#allocation14_spill] sm:$0xff] %v3959_v25  ;;  %v2244_v20 = vmul.f32 %v3953_v51, %v1340_v27  ;;  %v3963_v44 = vsel %vm1631_vm3, %v2082_v21, %v2095_v15 }
 0x15b   : > { %4310 = vst [vmem:[#allocation15_spill] sm:$0xff] %v3963_v44  ;;  %v2257_v26 = vadd.f32 %v2243_v62, %v2241_v9 }
 0x15c   : > { %v2264_v6 = vadd.f32 %v2244_v20, %v2242_v52  ;;  %v2150_v52 = vrot.slane %v2149_v14, 4  ;;  %v2145_v20 = vrot.slane %v2144_v50, 2 }
 0x15d   : > { %v2258_v56 = vrot.slane %v2257_v26, 4 }
 0x15e   : > { %v1223_v63 = vpop.f32.mrf.mxu2  ;;  %v2265_v15 = vrot.slane %v2264_v6, 4  ;;  %v2151_v62 = vadd.f32 %v2150_v52, %v2149_v14  ;;  %v2146_v48 = vadd.f32 %v2145_v20, %v2144_v50 }
 0x15f   : > { %v2132_v45 = vmul.f32 %v3929_v33, %v1223_v63  ;;  %v1264_v7 = vpop.f32.mrf.mxu3  ;;  %v2259_v22 = vadd.f32 %v2258_v56, %v2257_v26 }
 0x160   : > { %v2133_v8 = vmul.f32 %v3933_v10, %v1264_v7  ;;  %v1302_v28 = vpop.f32.mrf.mxu0  ;;  %v2266_v0 = vadd.f32 %v2265_v15, %v2264_v6  ;;  %v2152_v6 = vrot.slane %v2151_v62, 2 }
 0x161   : > { %v2156_v41 = vadd.f32 %v2132_v45, %v2130_v55  ;;  %v2245_v61 = vmul.f32 %v3935_v40, %v1302_v28  ;;  %v1343_v35 = vpop.f32.mrf.mxu1  ;;  %v2260_v63 = vrot.slane %v2259_v22, 2 }
 0x162   : > { %v2163_v43 = vadd.f32 %v2133_v8, %v2131_v5  ;;  %v2246_v46 = vmul.f32 %v3937_v58, %v1343_v35  ;;  %v2267_v13 = vrot.slane %v2266_v0, 2 }
 0x163   : > { %v2157_v30 = vrot.slane %v2156_v41, 4  ;;  %v2261_v56 = vadd.f32 %v2260_v63, %v2259_v22 }
 0x164   : > { %v2164_v9 = vrot.slane %v2163_v43, 4  ;;  %v2268_v14 = vadd.f32 %v2267_v13, %v2266_v0 }
 0x165   : > { %v2158_v55 = vadd.f32 %v2157_v30, %v2156_v41  ;;  %v2262_v20 = vrot.slane %v2261_v56, 1 }
 0x166   : > { %v1226_v31 = vpop.f32.mrf.mxu2  ;;  %v2165_v5 = vadd.f32 %v2164_v9, %v2163_v43 }
 0x167   : > { %v2134_v57 = vmul.f32 %v3911_v16, %v1226_v31  ;;  %v1267_v23 = vpop.f32.mrf.mxu3  ;;  %v2159_v26 = vrot.slane %v2158_v55, 2 }
 0x168   : > { %v2135_v1 = vmul.f32 %v3915_v18, %v1267_v23  ;;  %v1305_v54 = vpop.f32.mrf.mxu0  ;;  %v2166_v8 = vrot.slane %v2165_v5, 2 }
 0x169   : > { %v2247_v36 = vmul.f32 %v3951_v29, %v1305_v54  ;;  %v1346_v21 = vpop.f32.mrf.mxu1  ;;  %v2160_v9 = vadd.f32 %v2159_v26, %v2158_v55  ;;  %v2269_v26 = vrot.slane %v2268_v14, 1 }
 0x16a   : > { %v2248_v27 = vmul.f32 %v3953_v51, %v1346_v21  ;;  %v2167_v23 = vadd.f32 %v2166_v8, %v2165_v5  ;;  %v2147_v8 = vrot.slane %v2146_v48, 1 }
 0x16b   : > { %v2271_v45 = vadd.f32 %v2247_v36, %v2245_v61  ;;  %v2161_v0 = vrot.slane %v2160_v9, 1 }
 0x16c   : > { %v2278_v7 = vadd.f32 %v2248_v27, %v2246_v46  ;;  %v2153_v27 = vadd.f32 %v2152_v6, %v2151_v62  ;;  %v2263_v62 = vadd.f32 %v2262_v20, %v2261_v56 }
 0x16d   : > { %v2272_v28 = vrot.slane %v2271_v45, 4 }
 0x16e   : > { %v2279_v41 = vrot.slane %v2278_v7, 4  ;;  %v1229_v35 = vpop.f32.mrf.mxu2 }
 0x16f   : > { %v2273_v43 = vadd.f32 %v2272_v28, %v2271_v45  ;;  %v2136_v15 = vmul.f32 %v3929_v33, %v1229_v35  ;;  %v1270_v30 = vpop.f32.mrf.mxu3 }
 0x170   : > { %v2280_v52 = vadd.f32 %v2279_v41, %v2278_v7  ;;  %v2137_v31 = vmul.f32 %v3933_v10, %v1270_v30  ;;  %v1308_v61 = vpop.f32.mrf.mxu0  ;;  %v2168_v7 = vrot.slane %v2167_v23, 1 }
 0x171   : > { %v2274_v54 = vrot.slane %v2273_v43, 2  ;;  %v2170_v46 = vadd.f32 %v2136_v15, %v2134_v57  ;;  %v2249_v36 = vmul.f32 %v3935_v40, %v1308_v61  ;;  %v1349_v21 = vpop.f32.mrf.mxu1  ;;  %v2154_v57 = vrot.slane %v2153_v27, 1 }
 0x172   : > { %v2281_v17 = vrot.slane %v2280_v52, 2  ;;  %v2177_v50 = vadd.f32 %v2137_v31, %v2135_v1  ;;  %v2250_v22 = vmul.f32 %v3937_v58, %v1349_v21  ;;  %v2270_v21 = vadd.f32 %v2269_v26, %v2268_v14 }
 0x173   : > { %v2275_v63 = vadd.f32 %v2274_v54, %v2273_v43  ;;  %v2171_v45 = vrot.slane %v2170_v46, 4  ;;  %v2162_v43 = vadd.f32 %v2161_v0, %v2160_v9  ;;  %v2169_v49 = vadd.f32 %v2168_v7, %v2167_v23 }
 0x174   : > { %v2282_v55 = vadd.f32 %v2281_v17, %v2280_v52  ;;  %v2178_v13 = vrot.slane %v2177_v50, 4 }
 0x175   : > { %v2276_v28 = vrot.slane %v2275_v63, 1  ;;  %v2172_v5 = vadd.f32 %v2171_v45, %v2170_v46 }
 0x176   : > { %v2283_v41 = vrot.slane %v2282_v55, 1  ;;  %v2179_v35 = vadd.f32 %v2178_v13, %v2177_v50  ;;  %v1232_v15 = vpop.f32.mrf.mxu2  ;;  %v2148_v50 = vadd.f32 %v2147_v8, %v2146_v48 }
 0x177   : > { %v2277_v6 = vadd.f32 %v2276_v28, %v2275_v63  ;;  %v2173_v1 = vrot.slane %v2172_v5, 2  ;;  %v2138_v30 = vmul.f32 %v3911_v16, %v1232_v15  ;;  %v1273_v31 = vpop.f32.mrf.mxu3  ;;  %v2155_v16 = vadd.f32 %v2154_v57, %v2153_v27 }
 0x178   : > { %v2284_v61 = vadd.f32 %v2283_v41, %v2282_v55  ;;  %v2180_v54 = vrot.slane %v2179_v35, 2  ;;  %v2139_v17 = vmul.f32 %v3915_v18, %v1273_v31  ;;  %v1311_v52 = vpop.f32.mrf.mxu0  ;;  %v2206_v14 = vsel %vm1627_vm1, %v2162_v43, %v2148_v50 }
 0x179   : > { %v2174_v46 = vadd.f32 %v2173_v1, %v2172_v5  ;;  %v2251_v45 = vmul.f32 %v3951_v29, %v1311_v52  ;;  %v1352_v44 = vpop.f32.mrf.mxu1  ;;  %v2321_v20 = vsel %vm1627_vm1, %v2277_v6, %v2263_v62  ;;  %v2209_v7 = vsel %vm1627_vm1, %v2169_v49, %v2155_v16 }
 0x17a   : > { %v2181_v13 = vadd.f32 %v2180_v54, %v2179_v35  ;;  %v2252_v56 = vmul.f32 %v3953_v51, %v1352_v44  ;;  %v2324_v0 = vsel %vm1627_vm1, %v2284_v61, %v2270_v21 }
 0x17b   : > { %v2175_v63 = vrot.slane %v2174_v46, 1  ;;  %v2285_v9 = vadd.f32 %v2251_v45, %v2249_v36 }
 0x17c   : > { %v2182_v55 = vrot.slane %v2181_v13, 1  ;;  %v2292_v18 = vadd.f32 %v2252_v56, %v2250_v22 }
 0x17d   : > { %v2176_v23 = vadd.f32 %v2175_v63, %v2174_v46  ;;  %v2286_v26 = vrot.slane %v2285_v9, 4 }
 0x17e   : > { %v2183_v28 = vadd.f32 %v2182_v55, %v2181_v13  ;;  %v2293_v48 = vrot.slane %v2292_v18, 4  ;;  %v1235_v5 = vpop.f32.mrf.mxu2 }
 0x17f   : > { %v2287_v8 = vadd.f32 %v2286_v26, %v2285_v9  ;;  %v2140_v44 = vmul.f32 %v3929_v33, %v1235_v5  ;;  %v1276_v41 = vpop.f32.mrf.mxu3  ;;  %v2207_v27 = vsel %vm1629_vm2, %v2176_v23, %v2206_v14 }
 0x180   : > { %v2294_v36 = vadd.f32 %v2293_v48, %v2292_v18  ;;  %v2141_v57 = vmul.f32 %v3933_v10, %v1276_v41  ;;  %v1314_v22 = vpop.f32.mrf.mxu0  ;;  %v2210_v35 = vsel %vm1629_vm2, %v2183_v28, %v2209_v7  ;;  %v2952_v10 = vld [vmem:[%s3433_s11 + $0x2] ss:$8 sm:$0x3] }
 0x181   : > { %v2288_v15 = vrot.slane %v2287_v8, 2  ;;  %v2184_v62 = vadd.f32 %v2140_v44, %v2138_v30  ;;  %v2253_v49 = vmul.f32 %v3935_v40, %v1314_v22  ;;  %v1355_v6 = vpop.f32.mrf.mxu1  ;;  %v1761_v9 = vperm.slane %v2952_v10, 0 }
 0x182   : > { %v2295_v1 = vrot.slane %v2294_v36, 2  ;;  %v2191_v31 = vadd.f32 %v2141_v57, %v2139_v17  ;;  %v2254_v43 = vmul.f32 %v3937_v58, %v1355_v6  ;;  %v1762_v23 = vperm.slane %v2952_v10, 1  ;;  %v2957_v6 = vld [vmem:[%s3433_s11 + $0x7] ss:$8 sm:$0x3] }
 0x183   : > { %v2289_v33 = vadd.f32 %v2288_v15, %v2287_v8  ;;  %v2185_v61 = vrot.slane %v2184_v62, 4  ;;  %v1767_v8 = vsub.f32 %v1761_v9, %v3250_v4 }
 0x184   : > { %v2296_v54 = vadd.f32 %v2295_v1, %v2294_v36  ;;  %v2192_v52 = vrot.slane %v2191_v31, 4  ;;  %v1768_v44 = vsub.f32 %v1762_v23, %v3250_v4 }
 0x185   : > { %v2290_v21 = vrot.slane %v2289_v33, 1  ;;  %v2186_v46 = vadd.f32 %v2185_v61, %v2184_v62 }
 0x186   : > { %v2297_v45 = vrot.slane %v2296_v54, 1  ;;  %v2193_v50 = vadd.f32 %v2192_v52, %v2191_v31  ;;  %v3992_v13 = vpop.f32.mrf.mxu2  ;;  %v1771_v31 = vand.u32 2147483647, %v1767_v8 }
 0x187   : > { %v2291_v56 = vadd.f32 %v2290_v21, %v2289_v33  ;;  %v2187_v30 = vrot.slane %v2186_v46, 2  ;;  %v3994_v16 = vpop.f32.mrf.mxu3  ;;  %v1772_v33 = vand.u32 2147483647, %v1768_v44 }
 0x188   : > { %v2298_v40 = vadd.f32 %v2297_v45, %v2296_v54  ;;  %v2194_v63 = vrot.slane %v2193_v50, 2  ;;  %v1317_v17 = vpop.f32.mrf.mxu0  ;;  %v2336_v45 = vperm.slane %v2957_v6, 0 }
 0x189   : > { %v2188_v58 = vadd.f32 %v2187_v30, %v2186_v46  ;;  %v2255_v55 = vmul.f32 %v3951_v29, %v1317_v17  ;;  %v1358_v18 = vpop.f32.mrf.mxu1  ;;  %v2322_v14 = vsel %vm1629_vm2, %v2291_v56, %v2321_v20  ;;  %v1765_v29 = vsub.f32 %v1761_v9, %v3242_v3 }
 0x18a   : > { %v2195_v26 = vadd.f32 %v2194_v63, %v2193_v50  ;;  %v2256_v7 = vmul.f32 %v3953_v51, %v1358_v18  ;;  %v2325_v28 = vsel %vm1629_vm2, %v2298_v40, %v2324_v0  ;;  %v1766_v20 = vsub.f32 %v1762_v23, %v3242_v3 }
 0x18b   : > { %v2189_v48 = vrot.slane %v2188_v58, 1  ;;  %v2299_v5 = vadd.f32 %v2255_v55, %v2253_v49  ;;  %v1769_v52 = vand.u32 2147483647, %v1765_v29  ;;  %v2337_v56 = vperm.slane %v2957_v6, 1 }
 0x18c   : > { %v2196_v41 = vrot.slane %v2195_v26, 1  ;;  %v2306_v36 = vadd.f32 %v2256_v7, %v2254_v43  ;;  %v1770_v10 = vand.u32 2147483647, %v1766_v20  ;;  %v1775_v40 = vsub.f32 1.0, %v1771_v31 }
 0x18d   : > { %v2300_v57 = vrot.slane %v2299_v5, 4  ;;  %v2190_v22 = vadd.f32 %v2189_v48, %v2188_v58  ;;  %v1773_v17 = vsub.f32 1.0, %v1769_v52  ;;  %v2340_v55 = vsub.f32 %v2336_v45, %v3242_v3 }
 0x18e   : > { %v2307_v15 = vrot.slane %v2306_v36, 4  ;;  %v4004_v62 = vpop.f32.mrf.mxu2  ;;  %v2197_v51 = vadd.f32 %v2196_v41, %v2195_v26  ;;  %v1774_v58 = vsub.f32 1.0, %v1770_v10  ;;  %v2341_v26 = vsub.f32 %v2337_v56, %v3242_v3 }
 0x18f   : > { %v2301_v0 = vadd.f32 %v2300_v57, %v2299_v5  ;;  %v4007_v1 = vpop.f32.mrf.mxu3  ;;  %v4010_v49 = vsel %vm1631_vm3, %v2190_v22, %v2207_v27  ;;  %v1776_v27 = vsub.f32 1.0, %v1772_v33  ;;  %v2343_v7 = vsub.f32 %v2337_v56, %v3250_v4  ;;  %v2958_v56 = vld [vmem:[%s3433_s11 + $0x10] ss:$8 sm:$0x3]  ;;  %s2635_s11 = scalar_lea.sflag [#allocation5], %s334_s16 }
 0x190   : > { %v2308_v43 = vadd.f32 %v2307_v15, %v2306_v36  ;;  %v4012_v61 = vpop.f32.mrf.mxu0  ;;  %v4015_v54 = vsel %vm1631_vm3, %v2197_v51, %v2210_v35  ;;  %v2342_v35 = vsub.f32 %v2336_v45, %v3250_v4  ;;  %v4027_v8 = vmax.f32 %v1775_v40, 0.0 }
 0x191   : > { %v2302_v21 = vrot.slane %v2301_v0, 2  ;;  %v4017_v46 = vpop.f32.mrf.mxu1  ;;  %v4029_v44 = vmax.f32 %v1776_v27, 0.0  ;;  %v4033_v29 = vmax.f32 %v1773_v17, 0.0  ;;  %v4040_v20 = vmax.f32 %v1774_v58, 0.0 }
 0x192   : > { %v2309_v50 = vrot.slane %v2308_v43, 2  ;;  %v2344_v15 = vand.u32 2147483647, %v2340_v55  ;;  %v2346_v51 = vand.u32 2147483647, %v2342_v35  ;;  %v1783_v33 = vmul.f32 %v4027_v8, %v3582_v53 }
 0x193   : > { %v2303_v30 = vadd.f32 %v2302_v21, %v2301_v0  ;;  %v2345_v0 = vand.u32 2147483647, %v2341_v26  ;;  %v2347_v31 = vand.u32 2147483647, %v2343_v7  ;;  %v1782_v52 = vmul.f32 %v4040_v20, %v3566_v24 }
 0x194   : > { %v2310_v63 = vadd.f32 %v2309_v50, %v2308_v43  ;;  %v1784_v43 = vmul.f32 %v4029_v44, %v3585_v59  ;;  %v2348_v21 = vsub.f32 1.0, %v2344_v15  ;;  %v2350_v10 = vsub.f32 1.0, %v2346_v51 }
 0x195   : > { %v2304_v9 = vrot.slane %v2303_v30, 1  ;;  %v2351_v50 = vsub.f32 1.0, %v2347_v31  ;;  %v1787_v59 = vmul.f32 %v4027_v8, %v3632_v32  ;;  %v1785_v24 = vmul.f32 %v4033_v29, %v3602_v38 }
 0x196   : > { %v2311_v18 = vrot.slane %v2310_v63, 1  ;;  %v4021_v23 = vpop.f32.mrf.mxu2  ;;  %v1804_v53 = vadd.f32 %v1784_v43, %v1782_v52  ;;  %v1791_v17 = vmul.f32 %v4027_v8, %v3682_v11  ;;  %v4074_v32 = vmax.f32 %v2348_v21, 0.0 }
 0x197   : > { %v4025_v48 = vpop.f32.mrf.mxu3  ;;  %v2305_v5 = vadd.f32 %v2304_v9, %v2303_v30  ;;  %v1792_v9 = vmul.f32 %v4029_v44, %v3684_v12  ;;  %v4076_v55 = vmax.f32 %v2350_v10, 0.0  ;;  %v1789_v38 = vmul.f32 %v4033_v29, %v3661_v39 }
 0x198   : > { %v4031_v41 = vpop.f32.mrf.mxu0  ;;  %v2312_v36 = vadd.f32 %v2311_v18, %v2310_v63  ;;  %v1786_v63 = vmul.f32 %v4040_v20, %v3604_v42  ;;  %v2452_v18 = vperm.slane %v2958_v56, 1  ;;  %v1790_v42 = vmul.f32 %v4040_v20, %v3665_v47 }
 0x199   : > { %v4035_v57 = vpop.f32.mrf.mxu1  ;;  %v4038_v22 = vsel %vm1631_vm3, %v2305_v5, %v2322_v14  ;;  %v1781_v14 = vmul.f32 %v4033_v29, %v3562_v19  ;;  %v1788_v19 = vmul.f32 %v4029_v44, %v3637_v2  ;;  %v2451_v2 = vperm.slane %v2958_v56, 0 }
 0x19a   : > { %v4043_v6 = vsel %vm1631_vm3, %v2312_v36, %v2325_v28  ;;  %v2349_v28 = vsub.f32 1.0, %v2345_v0  ;;  %v4084_v11 = vmax.f32 %v2351_v50, 0.0  ;;  %v1811_v26 = vadd.f32 %v1787_v59, %v1785_v24 }
 0x19b   : > { %v1797_v40 = vadd.f32 %v1783_v33, %v1781_v14  ;;  %v1818_v12 = vadd.f32 %v1788_v19, %v1786_v63  ;;  %v2457_v7 = vsub.f32 %v2451_v2, %v3250_v4  ;;  %v2458_v5 = vsub.f32 %v2452_v18, %v3250_v4 }
 0x19c   : > { %v4082_v35 = vmax.f32 %v2349_v28, 0.0  ;;  %v1825_v36 = vadd.f32 %v1791_v17, %v1789_v38  ;;  %v1832_v15 = vadd.f32 %v1792_v9, %v1790_v42  ;;  %v2356_v51 = vmul.f32 %v4074_v32, %v3992_v13 }
 0x19d   : > { %v2358_v39 = vmul.f32 %v4076_v55, %v4004_v62  ;;  %v2455_v47 = vsub.f32 %v2451_v2, %v3242_v3  ;;  %v2456_v0 = vsub.f32 %v2452_v18, %v3242_v3  ;;  %v1798_v33 = vrot.slane %v1797_v40, 4 }
 0x19e   : > { %v4053_v45 = vpop.f32.mrf.mxu2  ;;  %v1805_v43 = vrot.slane %v1804_v53, 4  ;;  %v2357_v14 = vmul.f32 %v4082_v35, %v3994_v16  ;;  %v2359_v4 = vmul.f32 %v4084_v11, %v4007_v1  ;;  %v1812_v13 = vrot.slane %v1811_v26, 4 }
 0x19f   : > { %v4056_v30 = vpop.f32.mrf.mxu3  ;;  %v1819_v21 = vrot.slane %v1818_v12, 4  ;;  %v2461_v10 = vand.u32 2147483647, %v2457_v7  ;;  %v2462_v62 = vand.u32 2147483647, %v2458_v5  ;;  %v1826_v50 = vrot.slane %v1825_v36, 4 }
 0x1a0   : > { %v4062_v27 = vpop.f32.mrf.mxu0  ;;  %v1833_v56 = vrot.slane %v1832_v15, 4  ;;  %v1795_v3 = vmul.f32 %v4027_v8, %v3754_v34  ;;  %v2372_v19 = vadd.f32 %v2358_v39, %v2356_v51  ;;  %v2459_v24 = vand.u32 2147483647, %v2455_v47 }
 0x1a1   : > { %v4072_v58 = vpop.f32.mrf.mxu1  ;;  %v2460_v63 = vand.u32 2147483647, %v2456_v0  ;;  %v1799_v16 = vadd.f32 %v1798_v33, %v1797_v40  ;;  %v1806_v17 = vadd.f32 %v1805_v43, %v1804_v53  ;;  %v1793_v1 = vmul.f32 %v4033_v29, %v3720_v60  ;;  %v4311_v0 = vld [vmem:[#allocation8_spill] sm:$0xff] }
 0x1a2   : > { %v2379_v9 = vadd.f32 %v2359_v4, %v2357_v14  ;;  %v1813_v2 = vadd.f32 %v1812_v13, %v1811_v26  ;;  %v1820_v18 = vadd.f32 %v1819_v21, %v1818_v12  ;;  %v2465_v38 = vsub.f32 1.0, %v2461_v10 }
 0x1a3   : > { %v2466_v42 = vsub.f32 1.0, %v2462_v62  ;;  %v1827_v7 = vadd.f32 %v1826_v50, %v1825_v36  ;;  %v1834_v5 = vadd.f32 %v1833_v56, %v1832_v15  ;;  %v1839_v25 = vadd.f32 %v1795_v3, %v1793_v1 }
 0x1a4   : > { %v1796_v34 = vmul.f32 %v4029_v44, %v3756_v37  ;;  %v2373_v8 = vrot.slane %v2372_v19, 4  ;;  %v2463_v51 = vsub.f32 1.0, %v2459_v24  ;;  %v2464_v39 = vsub.f32 1.0, %v2460_v63 }
 0x1a5   : > { %v1800_v40 = vrot.slane %v1799_v16, 2  ;;  %v1807_v53 = vrot.slane %v1806_v17, 2  ;;  %v1794_v60 = vmul.f32 %v4040_v20, %v4311_v0  ;;  %v2380_v29 = vrot.slane %v2379_v9, 4 }
 0x1a6   : > { %v4094_v31 = vpop.f32.mrf.mxu2  ;;  %v1814_v12 = vrot.slane %v1813_v2, 2  ;;  %v1821_v33 = vrot.slane %v1820_v18, 2  ;;  %v4110_v43 = vmax.f32 %v2465_v38, 0.0  ;;  %v4112_v36 = vmax.f32 %v2466_v42, 0.0 }
 0x1a7   : > { %v4100_v52 = vpop.f32.mrf.mxu3  ;;  %v1828_v14 = vrot.slane %v1827_v7, 2  ;;  %v1835_v37 = vrot.slane %v1834_v5, 2  ;;  %v1840_v44 = vrot.slane %v1839_v25, 4  ;;  %v1846_v4 = vadd.f32 %v1796_v34, %v1794_v60 }
 0x1a8   : > { %v1469_v28 = vpop.f32.mrf.mxu0  ;;  %v2374_v21 = vadd.f32 %v2373_v8, %v2372_v19  ;;  %v4114_v10 = vmax.f32 %v2463_v51, 0.0  ;;  %v4116_v62 = vmax.f32 %v2464_v39, 0.0  ;;  %v4118_v20 = vadd.f32 %v1800_v40, %v1799_v16 }
 0x1a9   : > { %v1510_v59 = vpop.f32.mrf.mxu1  ;;  %v4120_v50 = vadd.f32 %v1807_v53, %v1806_v17  ;;  %v2381_v56 = vadd.f32 %v2380_v29, %v2379_v9  ;;  %v4122_v3 = vadd.f32 %v1814_v12, %v1813_v2  ;;  %v4124_v24 = vadd.f32 %v1821_v33, %v1820_v18 }
 0x1aa   : > { %v2473_v63 = vmul.f32 %v4110_v43, %v4031_v41  ;;  %v2474_v1 = vmul.f32 %v4112_v36, %v4035_v57  ;;  %v4130_v19 = vadd.f32 %v1828_v14, %v1827_v7  ;;  %v4132_v38 = vadd.f32 %v1835_v37, %v1834_v5 }
 0x1ab   : > { %v4134_v42 = vadd.f32 %v1840_v44, %v1839_v25  ;;  %v1847_v16 = vrot.slane %v1846_v4, 4  ;;  %v2375_v17 = vrot.slane %v2374_v21, 2  ;;  %v2471_v9 = vmul.f32 %v4114_v10, %v4012_v61 }
 0x1ac   : > { %v2472_v2 = vmul.f32 %v4116_v62, %v4017_v46  ;;  %v2477_v18 = vmul.f32 %v4110_v43, %v1469_v28  ;;  %v2382_v34 = vrot.slane %v2381_v56, 2  ;;  %v2360_v57 = vmul.f32 %v4074_v32, %v4021_v23 }
 0x1ad   : > { %v2361_v7 = vmul.f32 %v4082_v35, %v4025_v48  ;;  %v2478_v25 = vmul.f32 %v4112_v36, %v1510_v59  ;;  %v2487_v8 = vadd.f32 %v2473_v63, %v2471_v9  ;;  %v2362_v61 = vmul.f32 %v4076_v55, %v4053_v45 }
 0x1ae   : > { %v1393_v47 = vpop.f32.mrf.mxu2  ;;  %v2494_v51 = vadd.f32 %v2474_v1, %v2472_v2  ;;  %v2475_v46 = vmul.f32 %v4114_v10, %v4062_v27  ;;  %v2363_v39 = vmul.f32 %v4084_v11, %v4056_v30  ;;  %v2476_v23 = vmul.f32 %v4116_v62, %v4072_v58 }
 0x1af   : > { %v1434_v26 = vpop.f32.mrf.mxu3  ;;  %v2364_v48 = vmul.f32 %v4074_v32, %v4094_v31  ;;  %v2366_v0 = vmul.f32 %v4076_v55, %v1393_v47  ;;  %v2365_v60 = vmul.f32 %v4082_v35, %v4100_v52  ;;  %v4164_v12 = vadd.f32 %v1847_v16, %v1846_v4 }
 0x1b0   : > { %v1472_v15 = vpop.f32.mrf.mxu0  ;;  %v2501_v53 = vadd.f32 %v2477_v18, %v2475_v46  ;;  %v2508_v30 = vadd.f32 %v2478_v25, %v2476_v23  ;;  %v2367_v29 = vmul.f32 %v4084_v11, %v1434_v26  ;;  %v2488_v31 = vrot.slane %v2487_v8, 4 }
 0x1b1   : > { %v1513_v13 = vpop.f32.mrf.mxu1  ;;  %v2479_v45 = vmul.f32 %v4114_v10, %v1472_v15  ;;  %v2386_v33 = vadd.f32 %v2362_v61, %v2360_v57  ;;  %v2376_v37 = vadd.f32 %v2375_v17, %v2374_v21  ;;  %v2393_v44 = vadd.f32 %v2363_v39, %v2361_v7 }
 0x1b2   : > { %v2480_v58 = vmul.f32 %v4116_v62, %v1513_v13  ;;  %v2383_v63 = vadd.f32 %v2382_v34, %v2381_v56  ;;  %v2502_v1 = vrot.slane %v2501_v53, 4  ;;  %v2400_v9 = vadd.f32 %v2366_v0, %v2364_v48 }
 0x1b3   : > { %v2495_v18 = vrot.slane %v2494_v51, 4  ;;  %v2509_v26 = vrot.slane %v2508_v30, 4  ;;  %v2407_v25 = vadd.f32 %v2367_v29, %v2365_v60  ;;  %v2489_v16 = vadd.f32 %v2488_v31, %v2487_v8 }
 0x1b4   : > { %v2387_v57 = vrot.slane %v2386_v33, 4  ;;  %v2384_v46 = vrot.slane %v2383_v63, 1 }
 0x1b5   : > { %v2496_v39 = vadd.f32 %v2495_v18, %v2494_v51  ;;  %v2510_v23 = vadd.f32 %v2509_v26, %v2508_v30  ;;  %v2408_v48 = vrot.slane %v2407_v25, 4 }
 0x1b6   : > { %v1396_v41 = vpop.f32.mrf.mxu2  ;;  %v2388_v8 = vadd.f32 %v2387_v57, %v2386_v33 }
 0x1b7   : > { %v1437_v5 = vpop.f32.mrf.mxu3  ;;  %v2368_v47 = vmul.f32 %v4074_v32, %v1396_v41  ;;  %v2377_v32 = vrot.slane %v2376_v37, 1  ;;  %v2394_v41 = vrot.slane %v2393_v44, 4  ;;  %v2497_v51 = vrot.slane %v2496_v39, 2 }
 0x1b8   : > { %v1475_v28 = vpop.f32.mrf.mxu0  ;;  %v2369_v52 = vmul.f32 %v4082_v35, %v1437_v5  ;;  %v2503_v35 = vadd.f32 %v2502_v1, %v2501_v53  ;;  %v2401_v5 = vrot.slane %v2400_v9, 4  ;;  %v2511_v30 = vrot.slane %v2510_v23, 2 }
 0x1b9   : > { %v2481_v59 = vmul.f32 %v4110_v43, %v1475_v28  ;;  %v1516_v40 = vpop.f32.mrf.mxu1  ;;  %v4172_v29 = vadd.f32 %v2377_v32, %v2376_v37  ;;  %v2389_v33 = vrot.slane %v2388_v8, 2 }
 0x1ba   : > { %v2482_v27 = vmul.f32 %v4112_v36, %v1516_v40  ;;  %v2504_v53 = vrot.slane %v2503_v35, 2  ;;  %v2402_v31 = vadd.f32 %v2401_v5, %v2400_v9 }
 0x1bb   : > { %v2515_v14 = vadd.f32 %v2481_v59, %v2479_v45  ;;  %v2490_v59 = vrot.slane %v2489_v16, 2  ;;  %v1849_v45 = vrot.slane %v4164_v12, 2 }
 0x1bc   : > { %v2522_v15 = vadd.f32 %v2482_v27, %v2480_v58  ;;  %v2395_v27 = vadd.f32 %v2394_v41, %v2393_v44  ;;  %v4174_v58 = vadd.f32 %v2384_v46, %v2383_v63  ;;  %v2505_v63 = vadd.f32 %v2504_v53, %v2503_v35 }
 0x1bd   : > { %v2516_v61 = vrot.slane %v2515_v14, 4  ;;  %v3138_v35 = vmov 0  }
 0x1be   : > { %v1399_v2 = vpop.f32.mrf.mxu2  ;;  %v2523_v56 = vrot.slane %v2522_v15, 4  ;;  %v2396_v26 = vrot.slane %v2395_v27, 2  ;;  %3049 = vset.pattern.permute.xlu0 %v3138_v35  ;;  %v1850_v35 = vadd.f32 %v1849_v45, %v4164_v12  ;;  %v1830_v12 = vrot.slane %v4130_v19, 1 }
 0x1bf   : > { %v2370_v4 = vmul.f32 %v4076_v55, %v1399_v2  ;;  %v1440_v13 = vpop.f32.mrf.mxu3  ;;  %v2517_v40 = vadd.f32 %v2516_v61, %v2515_v14 }
 0x1c0   : > { %v2371_v21 = vmul.f32 %v4084_v11, %v1440_v13  ;;  %v1478_v17 = vpop.f32.mrf.mxu0  ;;  %v1842_v11 = vrot.slane %v4134_v42, 2  ;;  %v2524_v60 = vadd.f32 %v2523_v56, %v2522_v15  ;;  %v2403_v13 = vrot.slane %v2402_v31, 2 }
 0x1c1   : > { %v2414_v34 = vadd.f32 %v2370_v4, %v2368_v47  ;;  %v1519_v7 = vpop.f32.mrf.mxu1  ;;  %v2409_v47 = vadd.f32 %v2408_v48, %v2407_v25  ;;  %v2518_v14 = vrot.slane %v2517_v40, 2  ;;  %v2483_v44 = vmul.f32 %v4114_v10, %v1478_v17  ;;  %v2582_v10 = vld [vmem:[%s4296_s5] sm:$0xff] }
 0x1c2   : > { %v2421_v28 = vadd.f32 %v2371_v21, %v2369_v52  ;;  %v2491_v52 = vadd.f32 %v2490_v59, %v2489_v16  ;;  %v2525_v4 = vrot.slane %v2524_v60, 2  ;;  %v2484_v9 = vmul.f32 %v4116_v62, %v1519_v7  ;;  %2585 = vperm.xlu0 %3049, %v2582_v10  }
 0x1c3   : > { %v2415_v55 = vrot.slane %v2414_v34, 4  ;;  %v2512_v25 = vadd.f32 %v2511_v30, %v2510_v23  ;;  %v2410_v61 = vrot.slane %v2409_v47, 2  ;;  %v2519_v32 = vadd.f32 %v2518_v14, %v2517_v40 }
 0x1c4   : > { %v2422_v0 = vrot.slane %v2421_v28, 4  ;;  %v2498_v17 = vadd.f32 %v2497_v51, %v2496_v39  ;;  %v2492_v62 = vrot.slane %v2491_v52, 1  ;;  %v2397_v7 = vadd.f32 %v2396_v26, %v2395_v27 }
 0x1c5   : > { %v2416_v1 = vadd.f32 %v2415_v55, %v2414_v34  ;;  %v2526_v34 = vadd.f32 %v2525_v4, %v2524_v60  ;;  %v2411_v23 = vadd.f32 %v2410_v61, %v2409_v47  ;;  %v2513_v59 = vrot.slane %v2512_v25, 1 }
 0x1c6   : > { %v2423_v2 = vadd.f32 %v2422_v0, %v2421_v28  ;;  %v2506_v28 = vrot.slane %v2505_v63, 1  ;;  %v2520_v40 = vrot.slane %v2519_v32, 1  ;;  %v2499_v30 = vrot.slane %v2498_v17, 1 }
 0x1c7   : > { %v2417_v16 = vrot.slane %v2416_v1, 2  ;;  %v2493_v51 = vadd.f32 %v2492_v62, %v2491_v52 }
 0x1c8   : > { %v1481_v18 = vpop.f32.mrf.mxu0  ;;  %v2424_v41 = vrot.slane %v2423_v2, 2  ;;  %v2507_v27 = vadd.f32 %v2506_v28, %v2505_v63  ;;  %v2521_v47 = vadd.f32 %v2520_v40, %v2519_v32  ;;  %v1802_v28 = vrot.slane %v4118_v20, 1 }
 0x1c9   : > { %v2485_v37 = vmul.f32 %v4110_v43, %v1481_v18  ;;  %v1522_v15 = vpop.f32.mrf.mxu1  ;;  %v2390_v43 = vadd.f32 %v2389_v33, %v2388_v8  ;;  %v2418_v48 = vadd.f32 %v2417_v16, %v2416_v1  ;;  %v2527_v8 = vrot.slane %v2526_v34, 1 }
 0x1ca   : > { %v2486_v57 = vmul.f32 %v4112_v36, %v1522_v15  ;;  %v2404_v36 = vadd.f32 %v2403_v13, %v2402_v31  ;;  %v2425_v0 = vadd.f32 %v2424_v41, %v2423_v2  ;;  %v2398_v33 = vrot.slane %v2397_v7, 1 }
 0x1cb   : > { %v2529_v21 = vadd.f32 %v2485_v37, %v2483_v44  ;;  %v2391_v39 = vrot.slane %v2390_v43, 1  ;;  %v2412_v31 = vrot.slane %v2411_v23, 1  ;;  %v2419_v26 = vrot.slane %v2418_v48, 1 }
 0x1cc   : > { %v2536_v56 = vadd.f32 %v2486_v57, %v2484_v9  ;;  %v2405_v14 = vrot.slane %v2404_v36, 1  ;;  %v2514_v44 = vadd.f32 %v2513_v59, %v2512_v25  ;;  %v2426_v1 = vrot.slane %v2425_v0, 1 }
 0x1cd   : > { %v2530_v46 = vrot.slane %v2529_v21, 4  ;;  %v2500_v15 = vadd.f32 %v2499_v30, %v2498_v17  ;;  %v2392_v13 = vadd.f32 %v2391_v39, %v2390_v43  ;;  %v2528_v2 = vadd.f32 %v2527_v8, %v2526_v34  ;;  %v4312_v39 = vld [vmem:[#allocation14_spill] sm:$0xff] }
 0x1ce   : > { %v2537_v5 = vrot.slane %v2536_v56, 4  ;;  %v2399_v57 = vadd.f32 %v2398_v33, %v2397_v7  ;;  %v2406_v61 = vadd.f32 %v2405_v14, %v2404_v36  ;;  %v2413_v52 = vadd.f32 %v2412_v31, %v2411_v23  ;;  %v2563_v33 = vld [vmem:[%s4295_s4] sm:$0xff] }
 0x1cf   : > { %v2531_v55 = vadd.f32 %v2530_v46, %v2529_v21  ;;  %v2551_v41 = vsel %vm1627_vm1, %v2507_v27, %v2493_v51  ;;  %v2420_v63 = vadd.f32 %v2419_v26, %v2418_v48  ;;  %v2554_v25 = vsel %vm1627_vm1, %v2514_v44, %v2500_v15  ;;  %v4316_v51 = vld [vmem:[#allocation10_spill] sm:$0xff]  ;;  %v4317_v14 = vld [vmem:[#allocation11_spill] sm:$0xff]  ;;  %v4319_v27 = vld [vmem:[#allocation9_spill] sm:$0xff] }
 0x1d0   : > { %v2538_v53 = vadd.f32 %v2537_v5, %v2536_v56  ;;  %v2552_v10 = vsel %vm1629_vm2, %v2521_v47, %v2551_v41  ;;  %v2427_v32 = vadd.f32 %v2426_v1, %v2425_v0  ;;  %v1843_v17 = vadd.f32 %v1842_v11, %v4134_v42 }
 0x1d1   : > { %v2532_v60 = vrot.slane %v2531_v55, 2  ;;  %v2555_v34 = vsel %vm1629_vm2, %v2528_v2, %v2554_v25  ;;  %v2436_v46 = vsel %vm1627_vm1, %v2392_v13, %v4172_v29  ;;  %v2439_v42 = vsel %vm1627_vm1, %v2399_v57, %v4174_v58 }
 0x1d2   : > { %v2539_v18 = vrot.slane %v2538_v53, 2  ;;  %v2437_v7 = vsel %vm1629_vm2, %v2406_v61, %v2436_v46  ;;  %v1816_v11 = vrot.slane %v4122_v3, 1  ;;  %v2440_v29 = vsel %vm1629_vm2, %v2413_v52, %v2439_v42 }
 0x1d3   : > { %v2533_v4 = vadd.f32 %v2532_v60, %v2531_v55  ;;  %v2438_v36 = vsel %vm1631_vm3, %v2420_v63, %v2437_v7  ;;  %v1823_v5 = vrot.slane %v4124_v24, 1  ;;  %v2441_v45 = vsel %vm1631_vm3, %v2427_v32, %v2440_v29 }
 0x1d4   : > { %v2540_v37 = vadd.f32 %v2539_v18, %v2538_v53  ;;  %v1837_v58 = vrot.slane %v4132_v38, 1  ;;  %v1844_v23 = vrot.slane %v1843_v17, 1  ;;  %v1809_v48 = vrot.slane %v4120_v50, 1  ;;  %v4318_v18 = vld [vmem:[#allocation7_spill] sm:$0xff] }
 0x1d5   : > { %v2534_v9 = vrot.slane %v2533_v4, 1  ;;  %v1851_v55 = vrot.slane %v1850_v35, 1  ;;  %v1817_v59 = vadd.f32 %v1816_v11, %v4122_v3  ;;  %v1824_v40 = vadd.f32 %v1823_v5, %v4124_v24  ;;  %v4313_v24 = vld [vmem:[#allocation15_spill] sm:$0xff] }
 0x1d6   : > { %v2541_v16 = vrot.slane %v2540_v37, 1  ;;  %v1831_v0 = vadd.f32 %v1830_v12, %v4130_v19  ;;  %v1803_v53 = vadd.f32 %v1802_v28, %v4118_v20  ;;  %v1838_v30 = vadd.f32 %v1837_v58, %v4132_v38  ;;  %v4315_v38 = vld [vmem:[#allocation13_spill] sm:$0xff] }
 0x1d7   : > { %v2535_v21 = vadd.f32 %v2534_v9, %v2533_v4  ;;  %v1810_v3 = vadd.f32 %v1809_v48, %v4120_v50 }
 0x1d8   : > { %v2542_v56 = vadd.f32 %v2541_v16, %v2540_v37  ;;  %v1861_v19 = vsel %vm1627_vm1, %v1817_v59, %v1803_v53 }
 0x1d9   : > { %v2553_v43 = vsel %vm1631_vm3, %v2535_v21, %v2552_v10  ;;  %v1862_v20 = vsel %vm1629_vm2, %v1831_v0, %v1861_v19 }
 0x1da   : > { %2971 = vmatpush.msk.msrb.mxu2 %vm1638_vm4, %v2553_v43  ;;  %v2556_v62 = vsel %vm1631_vm3, %v2542_v56, %v2555_v34 }
 0x1db   : > { %2980 = vmatpush.msk.msrb.mxu3 %vm1638_vm4, %v2556_v62 }
 0x1dc   : > { %2972 = vmatpush.msk.msrb.mxu2 %vm1638_vm4, %v2438_v36 }
 0x1dd   : > { %2981 = vmatpush.msk.msrb.mxu3 %vm1638_vm4, %v2441_v45 }
 0x1de   : > { %2973 = vmatpush.msk.msrb.mxu2 %vm1638_vm4, %v4038_v22  ;;  %v1845_v22 = vadd.f32 %v1844_v23, %v1843_v17 }
 0x1df   : > { %2982 = vmatpush.msk.msrb.mxu3 %vm1638_vm4, %v4043_v6  ;;  %v1852_v6 = vadd.f32 %v1851_v55, %v1850_v35 }
 0x1e0   : > { %2974 = vmatpush.msk.msrb.mxu2 %vm1638_vm4, %v4010_v49  ;;  %v4314_v49 = vld [vmem:[#allocation12_spill] sm:$0xff]  ;;  %v1863_v50 = vsel %vm1631_vm3, %v1845_v22, %v1862_v20 }
 0x1e1   : > { %2983 = vmatpush.msk.msrb.mxu3 %vm1638_vm4, %v4015_v54  ;;  %v1864_v54 = vsel %vm1627_vm1, %v1824_v40, %v1810_v3 }
 0x1e2   : > { %2975 = vmatpush.msk.msrb.mxu2 %vm1638_vm4, %v4312_v39  ;;  %v1865_v8 = vsel %vm1629_vm2, %v1838_v30, %v1864_v54 }
 0x1e3   : > { %2984 = vmatpush.msk.msrb.mxu3 %vm1638_vm4, %v4313_v24  ;;  %v1866_v60 = vsel %vm1631_vm3, %v1852_v6, %v1865_v8 }
 0x1e4   : > { %2976 = vmatpush.msk.msrb.mxu2 %vm1638_vm4, %v4314_v49 }
 0x1e5   : > { %2985 = vmatpush.msk.msrb.mxu3 %vm1638_vm4, %v4315_v38 }
 0x1e6   : > { %2977 = vmatpush.msk.msrb.mxu2 %vm1638_vm4, %v1863_v50 }
 0x1e7   : > { %2986 = vmatpush.msk.msrb.mxu3 %vm1638_vm4, %v1866_v60 }
 0x1e8   : > { %2978 = vmatpush.msk.msrb.mxu2 %vm1638_vm4, %v4316_v51 }
 0x1e9   : > { %2987 = vmatpush.msk.msrb.mxu3 %vm1638_vm4, %v4317_v14 }
 0x1ea   : > { %2979 = vmatpush.msk.msrb.mxu2 %vm1638_vm4, %v4318_v18 }
 0x1eb   : > { %2988 = vmatpush.msk.msrb.mxu3 %vm1638_vm4, %v4319_v27  ;;  %2959 = vmatmul.msk.f32.vlgmr.msrb.gmra.mxu2 %vm2588_vm5, %v2563_v33 }
 0x1ec   : > { %2960 = vmatmul.msk.f32.vlgmr.msrb.gmra.mxu3 %vm2588_vm5, %v2563_v33 }
 0x234   : > { %v2586_v31 = vpop.permute.xlu0 %2585 }
 0x26e   : > { %v2609_v26 = vpop.f32.mrf.mxu2 }
 0x26f   : > { %v2610_v4 = vadd.f32 %v2609_v26, %v2586_v31  ;;  %v2629_v44 = vpop.f32.mrf.mxu3 }
 0x270   : > { %v2630_v47 = vadd.f32 %v2629_v44, %v2586_v31 }
 0x271   : > { %2632 = vst [vmem:[%s336_s28] sm:$0xff] %v2610_v4 }
 0x272   : > { %2633 = vst [vmem:[%s336_s28 + $0x8] sm:$0xff] %v2630_v47 }
 0x273   : > { %3085 = shalt.err (!%p3082_p5)
}
 0x274   : > { %2993 = dma.vmem_to_hbm [thread:$0]  (%p3214_p4), %s2651_s30, 256, %s2653_s8, %s2635_s11  }
 0x275 PF: > { %p2999_p6 = scmp.ge.s32.totalorder %s3136_s26, 2  ;;  %s2664_s16 = sand.u32 1, %s3116_s21  }
 0x276   : > { %s2665_s19 = scalar_lea.sflag [#allocation5], %s2664_s16 }
 0x277   : > { %p2996_p7 = pnand %p2999_p6, %p3221_p8 }
 0x279   : > { %p2997_p9 = pneg %p2996_p7 }
 0x27b   : > { %3111 = dma.done.wait (%p2997_p9), %s2665_s19, 256  }
 0x27c   : > { %3113 = vsyncadd (%p2997_p9), %s2665_s19, 4294967040  ;;  %s19_s26 = sadd.s32 1, %s3136_s26   ;;  %s4320_s21 = smov %s3120_s22 }
 0x27d   : > { %p16_p10 = scmp.ge.s32.totalorder %s19_s26, 4   ;;  %s4321_s22 = smov %s3124_s23 }
 0x27e   : > { %s4322_s23 = smov %s3227_s10  ;;  %s4323_s24 = smov %s3132_s25 }
 0x27f   : > { %s4324_s25 = smov %s4326_s29  ;;  %18 = sbr.rel (!%p16_p10) target bundleno = 4 (0x4), region = 112 }
 0x284   :  { %2671 = vsyncpa [#allocation5], 1 }
 0x285   :  { %2673 = vsyncpa [#allocation5 + $0x1], 1 }

</bundles_post_ra>
